<compile_context>
chip_gen: v7x
topology: tpu7x:2x2x1
jax: 0.10.0
libtpu: 0.0.40
codegen_flags: <defaults>
</compile_context>

<pallas_src>
import math
import functools

import jax
import jax.numpy as jnp
from jax.experimental import pallas as pl
from jax.experimental.pallas import tpu as pltpu


def _self_attn_wide_kernel(x_ref, wqkv_ref, wu_ref, bu_ref, o_ref, *,
                           heads: int, emb: int, emb_pad: int):
    """One grid step == one block of Bt batch elements.

    x_ref    : (Bt, T, E)        VMEM, bf16
    wqkv_ref : (E, 3*H*Ep)       VMEM, bf16   fused [Wq|Wk|Wv], head stride Ep (128-aligned)
    wu_ref   : (H*Ep, Ep)        VMEM, bf16   zero rows/cols at padded positions
    bu_ref   : (1, Ep)           VMEM, f32
    o_ref    : (Bt, T, Ep)       VMEM, f32    lane-dense (Ep multiple of 128)
    """
    bt, seq, _ = x_ref.shape
    hep = heads * emb_pad
    rows = bt * seq

    # Fused Q/K/V projection over the whole batch-block slab: one wide MXU call
    # (bf16 x bf16 -> f32 accumulation), then a single f32->bf16 cast.
    x2 = x_ref[...].reshape(rows, emb)
    qkv = jnp.dot(x2, wqkv_ref[...], preferred_element_type=jnp.float32)
    qkv = qkv.astype(jnp.bfloat16)                     # (rows, 3*H*Ep), one cast

    scale = 1.0 / math.sqrt(emb)      # == E**-0.25 applied to both q and k

    # TODO(synk): for large E/T/H, move heads onto a grid axis (weight index_map
    # selects the head slab) or a fori_loop with pl.ds, instead of this unroll.
    head_outs = []
    for h in range(heads):
        lo = h * emb_pad                               # 128-lane aligned -> free views
        qh = qkv[:, lo:lo + emb_pad].reshape(bt, seq, emb_pad)
        kh = qkv[:, hep + lo:hep + lo + emb_pad].reshape(bt, seq, emb_pad)
        vh = qkv[:, 2 * hep + lo:2 * hep + lo + emb_pad].reshape(bt, seq, emb_pad)

        # (Bt, T, T) scores in f32; padded lanes of q/k are exactly zero.
        scores = jnp.einsum("btd,bsd->bts", qh, kh,
                            preferred_element_type=jnp.float32) * scale

        # Exact softmax over the last axis (torch dim=2); EUP is idle at these
        # shapes so the exact divide costs nothing vs the approx reciprocal.
        m = jnp.max(scores, axis=-1, keepdims=True)
        p = jnp.exp(scores - m)
        attn = p / jnp.sum(p, axis=-1, keepdims=True)

        oh = jnp.einsum("bts,bsd->btd", attn.astype(jnp.bfloat16), vh,
                        preferred_element_type=jnp.float32)        # (Bt, T, Ep)
        head_outs.append(oh.astype(jnp.bfloat16).reshape(rows, emb_pad))

    # unifyHeads as ONE matmul: (rows, H*Ep) x (H*Ep, Ep). Concatenating
    # 128-wide, 128-aligned head slabs is a cheap lane-aligned relabel.
    o_slab = jnp.concatenate(head_outs, axis=-1)
    y = jnp.dot(o_slab, wu_ref[...], preferred_element_type=jnp.float32)
    y = y + bu_ref[...]
    # Lane-dense store: Ep is a multiple of 128 -> unmasked vst, dense DMA.
    o_ref[...] = y.reshape(bt, seq, emb_pad).astype(o_ref.dtype)


def _round_up(x: int, m: int) -> int:
    return ((x + m - 1) // m) * m


def _tensorcores_per_chip() -> int:
    """2 on v7x (and other multi-TC parts), else 1. Best-effort Python query."""
    try:
        kind = jax.devices()[0].device_kind.lower()
    except Exception:
        return 1
    if ("v7" in kind) or ("v4" in kind) or ("v5p" in kind):
        return 2
    return 1


def _pick_batch_block(batch: int, n_tc: int) -> int:
    """Generation-aware block choice: grid=(1,) on single-TC chips (v5e/v6e);
    exactly two equal grid steps (one per TensorCore) on multi-TC chips."""
    if n_tc >= 2 and batch >= 2 and batch % 2 == 0:
        return batch // 2
    return batch


def fuse_and_pad_params(wq, wk, wv, wu, bu, *, heads: int):
    """One-time weight prep, hoisted out of the per-call path:
      * fuse [Wq|Wk|Wv] into one (E, 3*H*Ep) bf16 matrix,
      * zero-pad the per-head stride E -> Ep = round_up(E, 128) so every head
        slice in the kernel is a 128-lane-aligned free view,
      * pad Wu to (H*Ep, Ep) (zero rows/cols) and the bias to (1, Ep) so the
        kernel's output store is lane-dense. Zero padding keeps results exact.
    """
    E = wq.shape[0]
    HE = heads * E
    assert wq.shape == (E, HE) and wk.shape == (E, HE) and wv.shape == (E, HE)
    assert wu.shape == (HE, E) and bu.shape == (E,)

    Ep = _round_up(E, 128)
    pad = Ep - E

    def pad_head_cols(w):                              # (E, H*E) -> (E, H*Ep)
        w3 = w.reshape(E, heads, E)
        w3 = jnp.pad(w3, ((0, 0), (0, 0), (0, pad)))
        return w3.reshape(E, heads * Ep)

    wqkv_p = jnp.concatenate(
        [pad_head_cols(wq), pad_head_cols(wk), pad_head_cols(wv)],
        axis=1).astype(jnp.bfloat16)                   # (E, 3*H*Ep)

    wu3 = wu.reshape(heads, E, E)
    wu3 = jnp.pad(wu3, ((0, 0), (0, pad), (0, pad)))
    wu_p = wu3.reshape(heads * Ep, Ep).astype(jnp.bfloat16)   # (H*Ep, Ep)

    bu_p = jnp.pad(bu, (0, pad)).reshape(1, Ep).astype(jnp.float32)
    return wqkv_p, wu_p, bu_p


def self_attention_wide(x, wqkv_p, wu_p, bu_p, *, heads: int, block_b=None):
    """x: (B, T, E); wqkv_p/wu_p/bu_p from fuse_and_pad_params()."""
    B, T, E = x.shape
    Ep = wqkv_p.shape[1] // (3 * heads)
    assert wqkv_p.shape == (E, 3 * heads * Ep)
    assert wu_p.shape == (heads * Ep, Ep) and bu_p.shape == (1, Ep)

    if block_b is None:
        block_b = _pick_batch_block(B, _tensorcores_per_chip())
    assert B % block_b == 0, "batch block must divide batch"
    grid_b = B // block_b

    kernel = functools.partial(_self_attn_wide_kernel,
                               heads=heads, emb=E, emb_pad=Ep)

    out = pl.pallas_call(
        kernel,
        out_shape=jax.ShapeDtypeStruct((B, T, Ep), x.dtype),
        grid_spec=pltpu.PrefetchScalarGridSpec(
            num_scalar_prefetch=0,
            grid=(grid_b,),
            in_specs=[
                pl.BlockSpec((block_b, T, E), lambda b: (b, 0, 0)),     # x
                pl.BlockSpec((E, 3 * heads * Ep), lambda b: (0, 0)),    # [Wq|Wk|Wv]
                pl.BlockSpec((heads * Ep, Ep), lambda b: (0, 0)),       # Wu
                pl.BlockSpec((1, Ep), lambda b: (0, 0)),                # bias
            ],
            out_specs=pl.BlockSpec((block_b, T, Ep), lambda b: (b, 0, 0)),
        ),
        compiler_params=pltpu.CompilerParams(
            dimension_semantics=("parallel",),
            vmem_limit_bytes=32 * 1024 * 1024,
        ),
    )(x.astype(jnp.bfloat16), wqkv_p, wu_p, bu_p)

    return out[..., :E]     # drop the (all-zero) lane padding


def _reference(x, wq, wk, wv, wu, bu, *, heads: int):
    """Pure-JAX (f32) re-implementation of the torch forward for verification."""
    B, T, E = x.shape
    q = (x @ wq).reshape(B, T, heads, E).transpose(0, 2, 1, 3)  # (B, H, T, E)
    k = (x @ wk).reshape(B, T, heads, E).transpose(0, 2, 1, 3)
    v = (x @ wv).reshape(B, T, heads, E).transpose(0, 2, 1, 3)
    q = q / E ** 0.25
    k = k / E ** 0.25
    dot = jnp.einsum("bhtd,bhsd->bhts", q, k)
    attn = jax.nn.softmax(dot, axis=-1)
    out = jnp.einsum("bhts,bhsd->bhtd", attn, v)                # (B, H, T, E)
    out = out.transpose(0, 2, 1, 3).reshape(B, T, heads * E)
    return out @ wu + bu


if __name__ == "__main__":
    B, T, E, H = 4, 8, 32, 8

    key = jax.random.PRNGKey(0)
    kx, kq, kk, kv, ku, kb = jax.random.split(key, 6)

    x = jax.random.normal(kx, (B, T, E), dtype=jnp.float32)

    # nn.Linear(emb, emb*heads, bias=False) weights are (out, in) = (H*E, E);
    # we store the transposed (in, out) layout for direct x @ W.
    bound1 = 1.0 / math.sqrt(E)
    wq = jax.random.uniform(kq, (E, H * E), jnp.float32, -bound1, bound1)
    wk = jax.random.uniform(kk, (E, H * E), jnp.float32, -bound1, bound1)
    wv = jax.random.uniform(kv, (E, H * E), jnp.float32, -bound1, bound1)

    # unifyHeads = nn.Linear(emb*heads, emb) with bias.
    bound2 = 1.0 / math.sqrt(H * E)
    wu = jax.random.uniform(ku, (H * E, E), jnp.float32, -bound2, bound2)
    bu = jax.random.uniform(kb, (E,), jnp.float32, -bound2, bound2)

    # One-time weight prep (fused + 128-lane padded + bf16) hoisted out of the
    # per-call path.
    wqkv_p, wu_p, bu_p = fuse_and_pad_params(wq, wk, wv, wu, bu, heads=H)

    fwd = jax.jit(functools.partial(self_attention_wide, heads=H))
    out = jax.block_until_ready(fwd(x, wqkv_p, wu_p, bu_p))

    ref = _reference(x, wq, wk, wv, wu, bu, heads=H)
    assert out.shape == (B, T, E)
    # bf16 MXU inputs -> loosened tolerance vs the f32 reference.
    assert jnp.allclose(out, ref, atol=5e-2, rtol=5e-2), "mismatch vs reference"

    print("KERNEL_OK")
</pallas_src>

<mosaic_0001>
module attributes {stable_mosaic.version = 11 : i64} {
  func.func @_self_attn_wide_kernel(%arg0: i32, %arg1: memref<4x8x32xbf16, #tpu.memory_space<vmem>>, %arg2: memref<32x3072xbf16, #tpu.memory_space<vmem>>, %arg3: memref<1024x128xbf16, #tpu.memory_space<vmem>>, %arg4: memref<1x128xf32, #tpu.memory_space<vmem>>, %arg5: memref<4x8x128xf32, #tpu.memory_space<vmem>>) attributes {dimension_semantics = [#tpu.dimension_semantics<parallel>], iteration_bounds = array<i64: 1>, scalar_prefetch = 0 : i64, scratch_operands = 0 : i64, tpu.core_type = #tpu.core_type<tc>, window_params = [{transform_indices = @transform_0, window_bounds = array<i64: 4, 8, 32>}, {pipeline_mode = #tpu.pipeline_mode<synchronous>, transform_indices = @transform_1, window_bounds = array<i64: 32, 3072>}, {pipeline_mode = #tpu.pipeline_mode<synchronous>, transform_indices = @transform_2, window_bounds = array<i64: 1024, 128>}, {pipeline_mode = #tpu.pipeline_mode<synchronous>, transform_indices = @transform_3, window_bounds = array<i64: 1, 128>}, {transform_indices = @transform_4, window_bounds = array<i64: 4, 8, 128>}]} {
    %c0 = arith.constant 0 : index
    %c0_0 = arith.constant 0 : index
    %c0_1 = arith.constant 0 : index
    %0 = vector.load %arg1[%c0, %c0_0, %c0_1] : memref<4x8x32xbf16, #tpu.memory_space<vmem>>, vector<4x8x32xbf16>
    %1 = vector.shape_cast %0 : vector<4x8x32xbf16> to vector<32x32xbf16>
    %c0_2 = arith.constant 0 : index
    %c0_3 = arith.constant 0 : index
    %2 = vector.load %arg2[%c0_2, %c0_3] : memref<32x3072xbf16, #tpu.memory_space<vmem>>, vector<32x3072xbf16>
    %cst = arith.constant dense<0.000000e+00> : vector<32x3072xf32>
    %3 = tpu.matmul %1, %2, %cst {dimension_numbers = #tpu.dot_dimension_numbers<[1], [0], [0], [1], [0, 0, 1, 1], [], []>} : vector<32x32xbf16>, vector<32x3072xbf16>, vector<32x3072xf32> -> vector<32x3072xf32>
    %4 = arith.truncf %3 : vector<32x3072xf32> to vector<32x3072xbf16>
    %5 = vector.extract_strided_slice %4 {offsets = [0, 0], sizes = [32, 128], strides = [1, 1]} : vector<32x3072xbf16> to vector<32x128xbf16>
    %6 = vector.shape_cast %5 : vector<32x128xbf16> to vector<4x8x128xbf16>
    %7 = vector.extract_strided_slice %4 {offsets = [0, 1024], sizes = [32, 128], strides = [1, 1]} : vector<32x3072xbf16> to vector<32x128xbf16>
    %8 = vector.shape_cast %7 : vector<32x128xbf16> to vector<4x8x128xbf16>
    %9 = vector.extract_strided_slice %4 {offsets = [0, 2048], sizes = [32, 128], strides = [1, 1]} : vector<32x3072xbf16> to vector<32x128xbf16>
    %10 = vector.shape_cast %9 : vector<32x128xbf16> to vector<4x8x128xbf16>
    "tpu.trace_start"() <{level = 10 : i32, message = "btd,bsd->bts"}> : () -> ()
    %cst_4 = arith.constant dense<0.000000e+00> : vector<4x8x8xf32>
    %11 = tpu.matmul %6, %8, %cst_4 {dimension_numbers = #tpu.dot_dimension_numbers<[2], [2], [1], [1], [0, 0, 0, 1, 1, 1], [0], [0]>} : vector<4x8x128xbf16>, vector<4x8x128xbf16>, vector<4x8x8xf32> -> vector<4x8x8xf32>
    "tpu.trace_stop"() : () -> ()
    %cst_5 = arith.constant 0.176776692 : f32
    %12 = vector.broadcast %cst_5 : f32 to vector<4x8x8xf32>
    %13 = arith.mulf %11, %12 : vector<4x8x8xf32>
    %cst_6 = arith.constant dense<0xFF800000> : vector<4x8xf32>
    %14 = vector.multi_reduction <maximumf>, %13, %cst_6 [2] : vector<4x8x8xf32> to vector<4x8xf32>
    %15 = vector.shape_cast %14 : vector<4x8xf32> to vector<4x8x1xf32>
    %16 = vector.broadcast %15 : vector<4x8x1xf32> to vector<4x8x8xf32>
    %17 = arith.subf %13, %16 : vector<4x8x8xf32>
    %18 = math.exp %17 : vector<4x8x8xf32>
    %cst_7 = arith.constant dense<0.000000e+00> : vector<4x8xf32>
    %19 = vector.multi_reduction <add>, %18, %cst_7 [2] : vector<4x8x8xf32> to vector<4x8xf32>
    %20 = vector.shape_cast %19 : vector<4x8xf32> to vector<4x8x1xf32>
    %21 = vector.broadcast %20 : vector<4x8x1xf32> to vector<4x8x8xf32>
    %22 = arith.divf %18, %21 : vector<4x8x8xf32>
    %23 = arith.truncf %22 : vector<4x8x8xf32> to vector<4x8x8xbf16>
    "tpu.trace_start"() <{level = 10 : i32, message = "bts,bsd->btd"}> : () -> ()
    %cst_8 = arith.constant dense<0.000000e+00> : vector<4x8x128xf32>
    %24 = tpu.matmul %23, %10, %cst_8 {dimension_numbers = #tpu.dot_dimension_numbers<[2], [1], [1], [2], [0, 0, 0, 1, 1, 2], [0], [0]>} : vector<4x8x8xbf16>, vector<4x8x128xbf16>, vector<4x8x128xf32> -> vector<4x8x128xf32>
    "tpu.trace_stop"() : () -> ()
    %25 = arith.truncf %24 : vector<4x8x128xf32> to vector<4x8x128xbf16>
    %26 = vector.shape_cast %25 : vector<4x8x128xbf16> to vector<32x128xbf16>
    %27 = vector.extract_strided_slice %4 {offsets = [0, 128], sizes = [32, 128], strides = [1, 1]} : vector<32x3072xbf16> to vector<32x128xbf16>
    %28 = vector.shape_cast %27 : vector<32x128xbf16> to vector<4x8x128xbf16>
    %29 = vector.extract_strided_slice %4 {offsets = [0, 1152], sizes = [32, 128], strides = [1, 1]} : vector<32x3072xbf16> to vector<32x128xbf16>
    %30 = vector.shape_cast %29 : vector<32x128xbf16> to vector<4x8x128xbf16>
    %31 = vector.extract_strided_slice %4 {offsets = [0, 2176], sizes = [32, 128], strides = [1, 1]} : vector<32x3072xbf16> to vector<32x128xbf16>
    %32 = vector.shape_cast %31 : vector<32x128xbf16> to vector<4x8x128xbf16>
    "tpu.trace_start"() <{level = 10 : i32, message = "btd,bsd->bts"}> : () -> ()
    %cst_9 = arith.constant dense<0.000000e+00> : vector<4x8x8xf32>
    %33 = tpu.matmul %28, %30, %cst_9 {dimension_numbers = #tpu.dot_dimension_numbers<[2], [2], [1], [1], [0, 0, 0, 1, 1, 1], [0], [0]>} : vector<4x8x128xbf16>, vector<4x8x128xbf16>, vector<4x8x8xf32> -> vector<4x8x8xf32>
    "tpu.trace_stop"() : () -> ()
    %cst_10 = arith.constant 0.176776692 : f32
    %34 = vector.broadcast %cst_10 : f32 to vector<4x8x8xf32>
    %35 = arith.mulf %33, %34 : vector<4x8x8xf32>
    %cst_11 = arith.constant dense<0xFF800000> : vector<4x8xf32>
    %36 = vector.multi_reduction <maximumf>, %35, %cst_11 [2] : vector<4x8x8xf32> to vector<4x8xf32>
    %37 = vector.shape_cast %36 : vector<4x8xf32> to vector<4x8x1xf32>
    %38 = vector.broadcast %37 : vector<4x8x1xf32> to vector<4x8x8xf32>
    %39 = arith.subf %35, %38 : vector<4x8x8xf32>
    %40 = math.exp %39 : vector<4x8x8xf32>
    %cst_12 = arith.constant dense<0.000000e+00> : vector<4x8xf32>
    %41 = vector.multi_reduction <add>, %40, %cst_12 [2] : vector<4x8x8xf32> to vector<4x8xf32>
    %42 = vector.shape_cast %41 : vector<4x8xf32> to vector<4x8x1xf32>
    %43 = vector.broadcast %42 : vector<4x8x1xf32> to vector<4x8x8xf32>
    %44 = arith.divf %40, %43 : vector<4x8x8xf32>
    %45 = arith.truncf %44 : vector<4x8x8xf32> to vector<4x8x8xbf16>
    "tpu.trace_start"() <{level = 10 : i32, message = "bts,bsd->btd"}> : () -> ()
    %cst_13 = arith.constant dense<0.000000e+00> : vector<4x8x128xf32>
    %46 = tpu.matmul %45, %32, %cst_13 {dimension_numbers = #tpu.dot_dimension_numbers<[2], [1], [1], [2], [0, 0, 0, 1, 1, 2], [0], [0]>} : vector<4x8x8xbf16>, vector<4x8x128xbf16>, vector<4x8x128xf32> -> vector<4x8x128xf32>
    "tpu.trace_stop"() : () -> ()
    %47 = arith.truncf %46 : vector<4x8x128xf32> to vector<4x8x128xbf16>
    %48 = vector.shape_cast %47 : vector<4x8x128xbf16> to vector<32x128xbf16>
    %49 = vector.extract_strided_slice %4 {offsets = [0, 256], sizes = [32, 128], strides = [1, 1]} : vector<32x3072xbf16> to vector<32x128xbf16>
    %50 = vector.shape_cast %49 : vector<32x128xbf16> to vector<4x8x128xbf16>
    %51 = vector.extract_strided_slice %4 {offsets = [0, 1280], sizes = [32, 128], strides = [1, 1]} : vector<32x3072xbf16> to vector<32x128xbf16>
    %52 = vector.shape_cast %51 : vector<32x128xbf16> to vector<4x8x128xbf16>
    %53 = vector.extract_strided_slice %4 {offsets = [0, 2304], sizes = [32, 128], strides = [1, 1]} : vector<32x3072xbf16> to vector<32x128xbf16>
    %54 = vector.shape_cast %53 : vector<32x128xbf16> to vector<4x8x128xbf16>
    "tpu.trace_start"() <{level = 10 : i32, message = "btd,bsd->bts"}> : () -> ()
    %cst_14 = arith.constant dense<0.000000e+00> : vector<4x8x8xf32>
    %55 = tpu.matmul %50, %52, %cst_14 {dimension_numbers = #tpu.dot_dimension_numbers<[2], [2], [1], [1], [0, 0, 0, 1, 1, 1], [0], [0]>} : vector<4x8x128xbf16>, vector<4x8x128xbf16>, vector<4x8x8xf32> -> vector<4x8x8xf32>
    "tpu.trace_stop"() : () -> ()
    %cst_15 = arith.constant 0.176776692 : f32
    %56 = vector.broadcast %cst_15 : f32 to vector<4x8x8xf32>
    %57 = arith.mulf %55, %56 : vector<4x8x8xf32>
    %cst_16 = arith.constant dense<0xFF800000> : vector<4x8xf32>
    %58 = vector.multi_reduction <maximumf>, %57, %cst_16 [2] : vector<4x8x8xf32> to vector<4x8xf32>
    %59 = vector.shape_cast %58 : vector<4x8xf32> to vector<4x8x1xf32>
    %60 = vector.broadcast %59 : vector<4x8x1xf32> to vector<4x8x8xf32>
    %61 = arith.subf %57, %60 : vector<4x8x8xf32>
    %62 = math.exp %61 : vector<4x8x8xf32>
    %cst_17 = arith.constant dense<0.000000e+00> : vector<4x8xf32>
    %63 = vector.multi_reduction <add>, %62, %cst_17 [2] : vector<4x8x8xf32> to vector<4x8xf32>
    %64 = vector.shape_cast %63 : vector<4x8xf32> to vector<4x8x1xf32>
    %65 = vector.broadcast %64 : vector<4x8x1xf32> to vector<4x8x8xf32>
    %66 = arith.divf %62, %65 : vector<4x8x8xf32>
    %67 = arith.truncf %66 : vector<4x8x8xf32> to vector<4x8x8xbf16>
    "tpu.trace_start"() <{level = 10 : i32, message = "bts,bsd->btd"}> : () -> ()
    %cst_18 = arith.constant dense<0.000000e+00> : vector<4x8x128xf32>
    %68 = tpu.matmul %67, %54, %cst_18 {dimension_numbers = #tpu.dot_dimension_numbers<[2], [1], [1], [2], [0, 0, 0, 1, 1, 2], [0], [0]>} : vector<4x8x8xbf16>, vector<4x8x128xbf16>, vector<4x8x128xf32> -> vector<4x8x128xf32>
    "tpu.trace_stop"() : () -> ()
    %69 = arith.truncf %68 : vector<4x8x128xf32> to vector<4x8x128xbf16>
    %70 = vector.shape_cast %69 : vector<4x8x128xbf16> to vector<32x128xbf16>
    %71 = vector.extract_strided_slice %4 {offsets = [0, 384], sizes = [32, 128], strides = [1, 1]} : vector<32x3072xbf16> to vector<32x128xbf16>
    %72 = vector.shape_cast %71 : vector<32x128xbf16> to vector<4x8x128xbf16>
    %73 = vector.extract_strided_slice %4 {offsets = [0, 1408], sizes = [32, 128], strides = [1, 1]} : vector<32x3072xbf16> to vector<32x128xbf16>
    %74 = vector.shape_cast %73 : vector<32x128xbf16> to vector<4x8x128xbf16>
    %75 = vector.extract_strided_slice %4 {offsets = [0, 2432], sizes = [32, 128], strides = [1, 1]} : vector<32x3072xbf16> to vector<32x128xbf16>
    %76 = vector.shape_cast %75 : vector<32x128xbf16> to vector<4x8x128xbf16>
    "tpu.trace_start"() <{level = 10 : i32, message = "btd,bsd->bts"}> : () -> ()
    %cst_19 = arith.constant dense<0.000000e+00> : vector<4x8x8xf32>
    %77 = tpu.matmul %72, %74, %cst_19 {dimension_numbers = #tpu.dot_dimension_numbers<[2], [2], [1], [1], [0, 0, 0, 1, 1, 1], [0], [0]>} : vector<4x8x128xbf16>, vector<4x8x128xbf16>, vector<4x8x8xf32> -> vector<4x8x8xf32>
    "tpu.trace_stop"() : () -> ()
    %cst_20 = arith.constant 0.176776692 : f32
    %78 = vector.broadcast %cst_20 : f32 to vector<4x8x8xf32>
    %79 = arith.mulf %77, %78 : vector<4x8x8xf32>
    %cst_21 = arith.constant dense<0xFF800000> : vector<4x8xf32>
    %80 = vector.multi_reduction <maximumf>, %79, %cst_21 [2] : vector<4x8x8xf32> to vector<4x8xf32>
    %81 = vector.shape_cast %80 : vector<4x8xf32> to vector<4x8x1xf32>
    %82 = vector.broadcast %81 : vector<4x8x1xf32> to vector<4x8x8xf32>
    %83 = arith.subf %79, %82 : vector<4x8x8xf32>
    %84 = math.exp %83 : vector<4x8x8xf32>
    %cst_22 = arith.constant dense<0.000000e+00> : vector<4x8xf32>
    %85 = vector.multi_reduction <add>, %84, %cst_22 [2] : vector<4x8x8xf32> to vector<4x8xf32>
    %86 = vector.shape_cast %85 : vector<4x8xf32> to vector<4x8x1xf32>
    %87 = vector.broadcast %86 : vector<4x8x1xf32> to vector<4x8x8xf32>
    %88 = arith.divf %84, %87 : vector<4x8x8xf32>
    %89 = arith.truncf %88 : vector<4x8x8xf32> to vector<4x8x8xbf16>
    "tpu.trace_start"() <{level = 10 : i32, message = "bts,bsd->btd"}> : () -> ()
    %cst_23 = arith.constant dense<0.000000e+00> : vector<4x8x128xf32>
    %90 = tpu.matmul %89, %76, %cst_23 {dimension_numbers = #tpu.dot_dimension_numbers<[2], [1], [1], [2], [0, 0, 0, 1, 1, 2], [0], [0]>} : vector<4x8x8xbf16>, vector<4x8x128xbf16>, vector<4x8x128xf32> -> vector<4x8x128xf32>
    "tpu.trace_stop"() : () -> ()
    %91 = arith.truncf %90 : vector<4x8x128xf32> to vector<4x8x128xbf16>
    %92 = vector.shape_cast %91 : vector<4x8x128xbf16> to vector<32x128xbf16>
    %93 = vector.extract_strided_slice %4 {offsets = [0, 512], sizes = [32, 128], strides = [1, 1]} : vector<32x3072xbf16> to vector<32x128xbf16>
    %94 = vector.shape_cast %93 : vector<32x128xbf16> to vector<4x8x128xbf16>
    %95 = vector.extract_strided_slice %4 {offsets = [0, 1536], sizes = [32, 128], strides = [1, 1]} : vector<32x3072xbf16> to vector<32x128xbf16>
    %96 = vector.shape_cast %95 : vector<32x128xbf16> to vector<4x8x128xbf16>
    %97 = vector.extract_strided_slice %4 {offsets = [0, 2560], sizes = [32, 128], strides = [1, 1]} : vector<32x3072xbf16> to vector<32x128xbf16>
    %98 = vector.shape_cast %97 : vector<32x128xbf16> to vector<4x8x128xbf16>
    "tpu.trace_start"() <{level = 10 : i32, message = "btd,bsd->bts"}> : () -> ()
    %cst_24 = arith.constant dense<0.000000e+00> : vector<4x8x8xf32>
    %99 = tpu.matmul %94, %96, %cst_24 {dimension_numbers = #tpu.dot_dimension_numbers<[2], [2], [1], [1], [0, 0, 0, 1, 1, 1], [0], [0]>} : vector<4x8x128xbf16>, vector<4x8x128xbf16>, vector<4x8x8xf32> -> vector<4x8x8xf32>
    "tpu.trace_stop"() : () -> ()
    %cst_25 = arith.constant 0.176776692 : f32
    %100 = vector.broadcast %cst_25 : f32 to vector<4x8x8xf32>
    %101 = arith.mulf %99, %100 : vector<4x8x8xf32>
    %cst_26 = arith.constant dense<0xFF800000> : vector<4x8xf32>
    %102 = vector.multi_reduction <maximumf>, %101, %cst_26 [2] : vector<4x8x8xf32> to vector<4x8xf32>
    %103 = vector.shape_cast %102 : vector<4x8xf32> to vector<4x8x1xf32>
    %104 = vector.broadcast %103 : vector<4x8x1xf32> to vector<4x8x8xf32>
    %105 = arith.subf %101, %104 : vector<4x8x8xf32>
    %106 = math.exp %105 : vector<4x8x8xf32>
    %cst_27 = arith.constant dense<0.000000e+00> : vector<4x8xf32>
    %107 = vector.multi_reduction <add>, %106, %cst_27 [2] : vector<4x8x8xf32> to vector<4x8xf32>
    %108 = vector.shape_cast %107 : vector<4x8xf32> to vector<4x8x1xf32>
    %109 = vector.broadcast %108 : vector<4x8x1xf32> to vector<4x8x8xf32>
    %110 = arith.divf %106, %109 : vector<4x8x8xf32>
    %111 = arith.truncf %110 : vector<4x8x8xf32> to vector<4x8x8xbf16>
    "tpu.trace_start"() <{level = 10 : i32, message = "bts,bsd->btd"}> : () -> ()
    %cst_28 = arith.constant dense<0.000000e+00> : vector<4x8x128xf32>
    %112 = tpu.matmul %111, %98, %cst_28 {dimension_numbers = #tpu.dot_dimension_numbers<[2], [1], [1], [2], [0, 0, 0, 1, 1, 2], [0], [0]>} : vector<4x8x8xbf16>, vector<4x8x128xbf16>, vector<4x8x128xf32> -> vector<4x8x128xf32>
    "tpu.trace_stop"() : () -> ()
    %113 = arith.truncf %112 : vector<4x8x128xf32> to vector<4x8x128xbf16>
    %114 = vector.shape_cast %113 : vector<4x8x128xbf16> to vector<32x128xbf16>
    %115 = vector.extract_strided_slice %4 {offsets = [0, 640], sizes = [32, 128], strides = [1, 1]} : vector<32x3072xbf16> to vector<32x128xbf16>
    %116 = vector.shape_cast %115 : vector<32x128xbf16> to vector<4x8x128xbf16>
    %117 = vector.extract_strided_slice %4 {offsets = [0, 1664], sizes = [32, 128], strides = [1, 1]} : vector<32x3072xbf16> to vector<32x128xbf16>
    %118 = vector.shape_cast %117 : vector<32x128xbf16> to vector<4x8x128xbf16>
    %119 = vector.extract_strided_slice %4 {offsets = [0, 2688], sizes = [32, 128], strides = [1, 1]} : vector<32x3072xbf16> to vector<32x128xbf16>
    %120 = vector.shape_cast %119 : vector<32x128xbf16> to vector<4x8x128xbf16>
    "tpu.trace_start"() <{level = 10 : i32, message = "btd,bsd->bts"}> : () -> ()
    %cst_29 = arith.constant dense<0.000000e+00> : vector<4x8x8xf32>
    %121 = tpu.matmul %116, %118, %cst_29 {dimension_numbers = #tpu.dot_dimension_numbers<[2], [2], [1], [1], [0, 0, 0, 1, 1, 1], [0], [0]>} : vector<4x8x128xbf16>, vector<4x8x128xbf16>, vector<4x8x8xf32> -> vector<4x8x8xf32>
    "tpu.trace_stop"() : () -> ()
    %cst_30 = arith.constant 0.176776692 : f32
    %122 = vector.broadcast %cst_30 : f32 to vector<4x8x8xf32>
    %123 = arith.mulf %121, %122 : vector<4x8x8xf32>
    %cst_31 = arith.constant dense<0xFF800000> : vector<4x8xf32>
    %124 = vector.multi_reduction <maximumf>, %123, %cst_31 [2] : vector<4x8x8xf32> to vector<4x8xf32>
    %125 = vector.shape_cast %124 : vector<4x8xf32> to vector<4x8x1xf32>
    %126 = vector.broadcast %125 : vector<4x8x1xf32> to vector<4x8x8xf32>
    %127 = arith.subf %123, %126 : vector<4x8x8xf32>
    %128 = math.exp %127 : vector<4x8x8xf32>
    %cst_32 = arith.constant dense<0.000000e+00> : vector<4x8xf32>
    %129 = vector.multi_reduction <add>, %128, %cst_32 [2] : vector<4x8x8xf32> to vector<4x8xf32>
    %130 = vector.shape_cast %129 : vector<4x8xf32> to vector<4x8x1xf32>
    %131 = vector.broadcast %130 : vector<4x8x1xf32> to vector<4x8x8xf32>
    %132 = arith.divf %128, %131 : vector<4x8x8xf32>
    %133 = arith.truncf %132 : vector<4x8x8xf32> to vector<4x8x8xbf16>
    "tpu.trace_start"() <{level = 10 : i32, message = "bts,bsd->btd"}> : () -> ()
    %cst_33 = arith.constant dense<0.000000e+00> : vector<4x8x128xf32>
    %134 = tpu.matmul %133, %120, %cst_33 {dimension_numbers = #tpu.dot_dimension_numbers<[2], [1], [1], [2], [0, 0, 0, 1, 1, 2], [0], [0]>} : vector<4x8x8xbf16>, vector<4x8x128xbf16>, vector<4x8x128xf32> -> vector<4x8x128xf32>
    "tpu.trace_stop"() : () -> ()
    %135 = arith.truncf %134 : vector<4x8x128xf32> to vector<4x8x128xbf16>
    %136 = vector.shape_cast %135 : vector<4x8x128xbf16> to vector<32x128xbf16>
    %137 = vector.extract_strided_slice %4 {offsets = [0, 768], sizes = [32, 128], strides = [1, 1]} : vector<32x3072xbf16> to vector<32x128xbf16>
    %138 = vector.shape_cast %137 : vector<32x128xbf16> to vector<4x8x128xbf16>
    %139 = vector.extract_strided_slice %4 {offsets = [0, 1792], sizes = [32, 128], strides = [1, 1]} : vector<32x3072xbf16> to vector<32x128xbf16>
    %140 = vector.shape_cast %139 : vector<32x128xbf16> to vector<4x8x128xbf16>
    %141 = vector.extract_strided_slice %4 {offsets = [0, 2816], sizes = [32, 128], strides = [1, 1]} : vector<32x3072xbf16> to vector<32x128xbf16>
    %142 = vector.shape_cast %141 : vector<32x128xbf16> to vector<4x8x128xbf16>
    "tpu.trace_start"() <{level = 10 : i32, message = "btd,bsd->bts"}> : () -> ()
    %cst_34 = arith.constant dense<0.000000e+00> : vector<4x8x8xf32>
    %143 = tpu.matmul %138, %140, %cst_34 {dimension_numbers = #tpu.dot_dimension_numbers<[2], [2], [1], [1], [0, 0, 0, 1, 1, 1], [0], [0]>} : vector<4x8x128xbf16>, vector<4x8x128xbf16>, vector<4x8x8xf32> -> vector<4x8x8xf32>
    "tpu.trace_stop"() : () -> ()
    %cst_35 = arith.constant 0.176776692 : f32
    %144 = vector.broadcast %cst_35 : f32 to vector<4x8x8xf32>
    %145 = arith.mulf %143, %144 : vector<4x8x8xf32>
    %cst_36 = arith.constant dense<0xFF800000> : vector<4x8xf32>
    %146 = vector.multi_reduction <maximumf>, %145, %cst_36 [2] : vector<4x8x8xf32> to vector<4x8xf32>
    %147 = vector.shape_cast %146 : vector<4x8xf32> to vector<4x8x1xf32>
    %148 = vector.broadcast %147 : vector<4x8x1xf32> to vector<4x8x8xf32>
    %149 = arith.subf %145, %148 : vector<4x8x8xf32>
    %150 = math.exp %149 : vector<4x8x8xf32>
    %cst_37 = arith.constant dense<0.000000e+00> : vector<4x8xf32>
    %151 = vector.multi_reduction <add>, %150, %cst_37 [2] : vector<4x8x8xf32> to vector<4x8xf32>
    %152 = vector.shape_cast %151 : vector<4x8xf32> to vector<4x8x1xf32>
    %153 = vector.broadcast %152 : vector<4x8x1xf32> to vector<4x8x8xf32>
    %154 = arith.divf %150, %153 : vector<4x8x8xf32>
    %155 = arith.truncf %154 : vector<4x8x8xf32> to vector<4x8x8xbf16>
    "tpu.trace_start"() <{level = 10 : i32, message = "bts,bsd->btd"}> : () -> ()
    %cst_38 = arith.constant dense<0.000000e+00> : vector<4x8x128xf32>
    %156 = tpu.matmul %155, %142, %cst_38 {dimension_numbers = #tpu.dot_dimension_numbers<[2], [1], [1], [2], [0, 0, 0, 1, 1, 2], [0], [0]>} : vector<4x8x8xbf16>, vector<4x8x128xbf16>, vector<4x8x128xf32> -> vector<4x8x128xf32>
    "tpu.trace_stop"() : () -> ()
    %157 = arith.truncf %156 : vector<4x8x128xf32> to vector<4x8x128xbf16>
    %158 = vector.shape_cast %157 : vector<4x8x128xbf16> to vector<32x128xbf16>
    %159 = vector.extract_strided_slice %4 {offsets = [0, 896], sizes = [32, 128], strides = [1, 1]} : vector<32x3072xbf16> to vector<32x128xbf16>
    %160 = vector.shape_cast %159 : vector<32x128xbf16> to vector<4x8x128xbf16>
    %161 = vector.extract_strided_slice %4 {offsets = [0, 1920], sizes = [32, 128], strides = [1, 1]} : vector<32x3072xbf16> to vector<32x128xbf16>
    %162 = vector.shape_cast %161 : vector<32x128xbf16> to vector<4x8x128xbf16>
    %163 = vector.extract_strided_slice %4 {offsets = [0, 2944], sizes = [32, 128], strides = [1, 1]} : vector<32x3072xbf16> to vector<32x128xbf16>
    %164 = vector.shape_cast %163 : vector<32x128xbf16> to vector<4x8x128xbf16>
    "tpu.trace_start"() <{level = 10 : i32, message = "btd,bsd->bts"}> : () -> ()
    %cst_39 = arith.constant dense<0.000000e+00> : vector<4x8x8xf32>
    %165 = tpu.matmul %160, %162, %cst_39 {dimension_numbers = #tpu.dot_dimension_numbers<[2], [2], [1], [1], [0, 0, 0, 1, 1, 1], [0], [0]>} : vector<4x8x128xbf16>, vector<4x8x128xbf16>, vector<4x8x8xf32> -> vector<4x8x8xf32>
    "tpu.trace_stop"() : () -> ()
    %cst_40 = arith.constant 0.176776692 : f32
    %166 = vector.broadcast %cst_40 : f32 to vector<4x8x8xf32>
    %167 = arith.mulf %165, %166 : vector<4x8x8xf32>
    %cst_41 = arith.constant dense<0xFF800000> : vector<4x8xf32>
    %168 = vector.multi_reduction <maximumf>, %167, %cst_41 [2] : vector<4x8x8xf32> to vector<4x8xf32>
    %169 = vector.shape_cast %168 : vector<4x8xf32> to vector<4x8x1xf32>
    %170 = vector.broadcast %169 : vector<4x8x1xf32> to vector<4x8x8xf32>
    %171 = arith.subf %167, %170 : vector<4x8x8xf32>
    %172 = math.exp %171 : vector<4x8x8xf32>
    %cst_42 = arith.constant dense<0.000000e+00> : vector<4x8xf32>
    %173 = vector.multi_reduction <add>, %172, %cst_42 [2] : vector<4x8x8xf32> to vector<4x8xf32>
    %174 = vector.shape_cast %173 : vector<4x8xf32> to vector<4x8x1xf32>
    %175 = vector.broadcast %174 : vector<4x8x1xf32> to vector<4x8x8xf32>
    %176 = arith.divf %172, %175 : vector<4x8x8xf32>
    %177 = arith.truncf %176 : vector<4x8x8xf32> to vector<4x8x8xbf16>
    "tpu.trace_start"() <{level = 10 : i32, message = "bts,bsd->btd"}> : () -> ()
    %cst_43 = arith.constant dense<0.000000e+00> : vector<4x8x128xf32>
    %178 = tpu.matmul %177, %164, %cst_43 {dimension_numbers = #tpu.dot_dimension_numbers<[2], [1], [1], [2], [0, 0, 0, 1, 1, 2], [0], [0]>} : vector<4x8x8xbf16>, vector<4x8x128xbf16>, vector<4x8x128xf32> -> vector<4x8x128xf32>
    "tpu.trace_stop"() : () -> ()
    %179 = arith.truncf %178 : vector<4x8x128xf32> to vector<4x8x128xbf16>
    %180 = vector.shape_cast %179 : vector<4x8x128xbf16> to vector<32x128xbf16>
    %181 = tpu.concatenate %26, %48, %70, %92, %114, %136, %158, %180 in 1 : vector<32x128xbf16>, vector<32x128xbf16>, vector<32x128xbf16>, vector<32x128xbf16>, vector<32x128xbf16>, vector<32x128xbf16>, vector<32x128xbf16>, vector<32x128xbf16> -> vector<32x1024xbf16>
    %c0_44 = arith.constant 0 : index
    %c0_45 = arith.constant 0 : index
    %182 = vector.load %arg3[%c0_44, %c0_45] : memref<1024x128xbf16, #tpu.memory_space<vmem>>, vector<1024x128xbf16>
    %cst_46 = arith.constant dense<0.000000e+00> : vector<32x128xf32>
    %183 = tpu.matmul %181, %182, %cst_46 {dimension_numbers = #tpu.dot_dimension_numbers<[1], [0], [0], [1], [0, 0, 1, 1], [], []>} : vector<32x1024xbf16>, vector<1024x128xbf16>, vector<32x128xf32> -> vector<32x128xf32>
    %c0_47 = arith.constant 0 : index
    %c0_48 = arith.constant 0 : index
    %184 = vector.load %arg4[%c0_47, %c0_48] : memref<1x128xf32, #tpu.memory_space<vmem>>, vector<1x128xf32>
    %185 = vector.broadcast %184 : vector<1x128xf32> to vector<32x128xf32>
    %186 = arith.addf %183, %185 : vector<32x128xf32>
    %187 = vector.shape_cast %186 : vector<32x128xf32> to vector<4x8x128xf32>
    %c0_49 = arith.constant 0 : index
    %c0_50 = arith.constant 0 : index
    %c0_51 = arith.constant 0 : index
    %188 = vector.load %arg5[%c0_49, %c0_50, %c0_51] : memref<4x8x128xf32, #tpu.memory_space<vmem>>, vector<4x8x128xf32>
    tpu.vector_store %arg5[%c0_49, %c0_50, %c0_51], %187 {strides = array<i32>} : memref<4x8x128xf32, #tpu.memory_space<vmem>>, vector<4x8x128xf32>,
    return
  }
  func.func @transform_0(%arg0: i32) -> (i32, i32, i32) {
    %c0_i32 = arith.constant 0 : i32
    %c0_i32_0 = arith.constant 0 : i32
    %c0_i32_1 = arith.constant 0 : i32
    return %arg0, %c0_i32, %c0_i32_0 : i32, i32, i32
  }
  func.func @transform_1(%arg0: i32) -> (i32, i32) {
    %c0_i32 = arith.constant 0 : i32
    %c0_i32_0 = arith.constant 0 : i32
    %c0_i32_1 = arith.constant 0 : i32
    return %c0_i32, %c0_i32_0 : i32, i32
  }
  func.func @transform_2(%arg0: i32) -> (i32, i32) {
    %c0_i32 = arith.constant 0 : i32
    %c0_i32_0 = arith.constant 0 : i32
    %c0_i32_1 = arith.constant 0 : i32
    return %c0_i32, %c0_i32_0 : i32, i32
  }
  func.func @transform_3(%arg0: i32) -> (i32, i32) {
    %c0_i32 = arith.constant 0 : i32
    %c0_i32_0 = arith.constant 0 : i32
    %c0_i32_1 = arith.constant 0 : i32
    return %c0_i32, %c0_i32_0 : i32, i32
  }
  func.func @transform_4(%arg0: i32) -> (i32, i32, i32) {
    %c0_i32 = arith.constant 0 : i32
    %c0_i32_0 = arith.constant 0 : i32
    %c0_i32_1 = arith.constant 0 : i32
    return %arg0, %c0_i32, %c0_i32_0 : i32, i32, i32
  }
}

</mosaic_0001>

<bundles_post_ra>
// kernel: self_attention_wide.1
= control target key start
LH: loop header
LB: loop body
LE: loop exit
PB: predicated region body
PF: predicated region fallthrough
CT: control target
= control target key end

     0   :  { %9 = vsyncpa [#allocation3], 0  ;;  %s7602_s0 = inlined_call_operand.vmem [shape: bf16[4,8,32], index: 0, kind: input, shape index: {}]   ;;  %s7603_s1 = inlined_call_operand.hbm [shape: bf16[32,3072], index: 1, kind: input, shape index: {}]   ;;  %s7604_s2 = inlined_call_operand.hbm [shape: bf16[1024,128], index: 2, kind: input, shape index: {}]   ;;  %s7605_s3 = inlined_call_operand.vmem [shape: f32[1,128], index: 3, kind: input, shape index: {}]   ;;  %s7606_s4 = inlined_call_operand.hbm [shape: f32[4,8,128], index: 4, kind: output, shape index: {}]  }
   0x1   :  { %10 = vsyncpa [#allocation6], 0 }
   0x2   :  { %11 = vsyncpa [#allocation4], 0  ;;  %s6676_s15 = smov [#allocation2]   ;;  %s6604_s19 = scalar_lea.hbm %s7603_s1, 6144 }
   0x3   :  { %s19_s16 = sshll.u32 %s6676_s15, 4  ;;  %p6605_p0 = scmp.ne.s32.totalorder %s7603_s1, %s6604_s19  ;;  %s20_s16 = int_to_ptr.vmem [resolvable:$true] %s19_s16 }
   0x4   :  { %p6608_p1 = scmp.lt.u32.totalorder %s6604_s19, %s7603_s1 }
   0x6   :  { %p6610_p2 = pnand %p6608_p1, %p6605_p0 }
   0x8   :  { %6613 = shalt.err (!%p6610_p2)
}
   0x9   :  { %s6614_s24 = scalar_lea.vmem %s20_s16, 6144  ;;  %p6619_p4 = scmp.lt.s32.totalorder %s20_s16, %s20_s16 }
   0xa   :  { %p6615_p3 = scmp.ne.s32.totalorder %s20_s16, %s6614_s24  ;;  %p6620_p5 = scmp.lt.s32.totalorder %s6614_s24, %s6614_s24 }
   0xc   :  { %p6621_p6 = por %p6620_p5, %p6619_p4 }
   0xe   :  { %p6622_p7 = pnand %p6621_p6, %p6615_p3 }
  0x10   :  { %6625 = shalt.err (!%p6622_p7)
}
  0x11   :  { %s6677_s25 = smov 1536   ;;  %s6678_s26 = smov 96  }
  0x12   :  { %25 = dma.hbm_to_vmem [thread:$0]  %s7603_s1, 6144, %s20_s16, [#allocation3], %s6677_s25, %s6677_s25, %s6678_s26  }
  0x13   :  { %s6679_s29 = smov [#allocation5]   ;;  %s6626_s7 = scalar_lea.hbm %s7604_s2, 8192 }
  0x14   :  { %s31_s30 = sshll.u32 %s6679_s29, 4  ;;  %p6627_p8 = scmp.ne.s32.totalorder %s7604_s2, %s6626_s7  ;;  %s32_s30 = int_to_ptr.vmem [resolvable:$true] %s31_s30 }
  0x15   :  { %p6630_p9 = scmp.lt.u32.totalorder %s6626_s7, %s7604_s2 }
  0x17   :  { %p6632_p10 = pnand %p6630_p9, %p6627_p8 }
  0x19   :  { %6635 = shalt.err (!%p6632_p10)
}
  0x1a   :  { %s6636_s12 = scalar_lea.vmem %s32_s30, 8192  ;;  %p6641_p12 = scmp.lt.s32.totalorder %s32_s30, %s32_s30 }
  0x1b   :  { %p6637_p11 = scmp.ne.s32.totalorder %s32_s30, %s6636_s12  ;;  %p6642_p13 = scmp.lt.s32.totalorder %s6636_s12, %s6636_s12 }
  0x1d   :  { %p6643_p0 = por %p6642_p13, %p6641_p12 }
  0x1f   :  { %p6644_p1 = pnand %p6643_p0, %p6637_p11 }
  0x21   :  { %6647 = shalt.err (!%p6644_p1)
}
  0x22   :  { %s6680_s1 = smov 64   ;;  %s6681_s13 = smov 4  }
  0x23   :  { %37 = dma.hbm_to_vmem [thread:$0]  %s7604_s2, 8192, %s32_s30, [#allocation6], %s6680_s1, %s6680_s1, %s6681_s13  }
  0x24   :  { %6670 = dma.done.wait [#allocation3], 6144  }
  0x25   :  { %6671 = vsyncadd [#allocation3], 4294961152 }
  0x26   :  { %6672 = dma.done.wait [#allocation6], 8192  }
  0x27   :  { %6673 = vsyncadd [#allocation6], 4294959104  ;;  %v6682_v0 = vmov 0   ;;  %v51_v1 = vld [vmem:[#allocation2] sm:$0xff]  ;;  %v53_v8 = vld [vmem:[#allocation2 + $0x10] sm:$0xff]  ;;  %vm349_vm0 = vcmask 261120  }
  0x28   :  { %388 = vmatprep.mubr.bf16.mxu0 %v6682_v0  ;;  %441 = vmatprep.mubr.bf16.mxu1 %v6682_v0  ;;  %v63_v2 = vld [vmem:[#allocation2 + $0x60] sm:$0xff]  ;;  %v65_v9 = vld [vmem:[#allocation2 + $0x70] sm:$0xff]  ;;  %v52_v14 = vld [vmem:[#allocation2 + $0x8] sm:$0xff]  ;;  %vm6684_vm1 = vmmov 0   ;;  %vm1294_vm2 = vcmask 1043456   ;;  %vm1242_vm3 = vcmask 64512  }
  0x29   :  { %v75_v3 = vld [vmem:[#allocation2 + $0xc0] sm:$0xff]  ;;  %v5382_v4 = vcombine.high %v51_v1, %v63_v2  ;;  %v5381_v5 = vcombine.low %v51_v1, %v63_v2  ;;  %v5386_v11 = vcombine.high %v53_v8, %v65_v9  ;;  %v77_v12 = vld [vmem:[#allocation2 + $0xd0] sm:$0xff]  ;;  %v64_v15 = vld [vmem:[#allocation2 + $0x68] sm:$0xff]  ;;  %v5385_v21 = vcombine.low %v53_v8, %v65_v9 }
  0x2a   :  { %v87_v6 = vld [vmem:[#allocation2 + $0x120] sm:$0xff]  ;;  %v89_v13 = vld [vmem:[#allocation2 + $0x130] sm:$0xff]  ;;  %v76_v16 = vld [vmem:[#allocation2 + $0xc8] sm:$0xff]  ;;  %v5384_v18 = vcombine.high %v52_v14, %v64_v15  ;;  %v5383_v19 = vcombine.low %v52_v14, %v64_v15 }
  0x2b   :  { %v5406_v7 = vcombine.high %v75_v3, %v87_v6  ;;  %356 = vmatprep.subr.bf16.mxu0 %v5382_v4  ;;  %v5405_v10 = vcombine.low %v75_v3, %v87_v6  ;;  %v6742_v17 = vld [vmem:[%s7602_s0] sm:$0xff]   ;;  %v88_v20 = vld [vmem:[#allocation2 + $0x128] sm:$0xff]  ;;  %v54_v23 = vld [vmem:[#allocation2 + $0x18] sm:$0xff]  ;;  %v5410_v25 = vcombine.high %v77_v12, %v89_v13  ;;  %v5409_v30 = vcombine.low %v77_v12, %v89_v13 }
  0x2c   :  { %357 = vmatpush1.bf16.msra.mxu0 %v5381_v5  ;;  %v5408_v22 = vcombine.high %v76_v16, %v88_v20  ;;  %v66_v24 = vld [vmem:[#allocation2 + $0x78] sm:$0xff]  ;;  %409 = vmatprep.subr.bf16.mxu1 %v5384_v18  ;;  %v55_v26 = vld [vmem:[#allocation2 + $0x20] sm:$0xff]  ;;  %v5407_v28 = vcombine.low %v76_v16, %v88_v20  ;;  %v56_v36 = vld [vmem:[#allocation2 + $0x28] sm:$0xff] }
  0x2d   :  { %358 = vmatprep.subr.bf16.mxu0 %v5406_v7  ;;  %v67_v27 = vld [vmem:[#allocation2 + $0x80] sm:$0xff]  ;;  %410 = vmatpush1.bf16.msra.mxu1 %v5383_v19  ;;  %v5388_v29 = vcombine.high %v54_v23, %v66_v24  ;;  %v78_v31 = vld [vmem:[#allocation2 + $0xd8] sm:$0xff]  ;;  %v5387_v35 = vcombine.low %v54_v23, %v66_v24  ;;  %v68_v37 = vld [vmem:[#allocation2 + $0x88] sm:$0xff] }
  0x2e   :  { %411 = vmatprep.subr.bf16.mxu1 %v5408_v22  ;;  %v90_v32 = vld [vmem:[#allocation2 + $0x138] sm:$0xff]  ;;  %v5390_v34 = vcombine.high %v55_v26, %v67_v27  ;;  %v5392_v40 = vcombine.high %v56_v36, %v68_v37  ;;  %v79_v41 = vld [vmem:[#allocation2 + $0xe0] sm:$0xff]  ;;  %v5389_v43 = vcombine.low %v55_v26, %v67_v27  ;;  %v57_v44 = vld [vmem:[#allocation2 + $0x30] sm:$0xff]  ;;  %v5391_v51 = vcombine.low %v56_v36, %v68_v37 }
  0x2f   :  { %v6750_v33 = vld [vmem:[%s7602_s0 + $0x8] sm:$0xff]   ;;  %v5412_v38 = vcombine.high %v78_v31, %v90_v32  ;;  %v5411_v39 = vcombine.low %v78_v31, %v90_v32  ;;  %v91_v42 = vld [vmem:[#allocation2 + $0x140] sm:$0xff]  ;;  %v69_v45 = vld [vmem:[#allocation2 + $0x90] sm:$0xff] }
  0x30   :  { %359 = vmatpush1.bf16.msra.mxu0 %v5405_v10  ;;  %v5414_v46 = vcombine.high %v79_v41, %v91_v42  ;;  %v80_v47 = vld [vmem:[#allocation2 + $0xe8] sm:$0xff]  ;;  %v5413_v49 = vcombine.low %v79_v41, %v91_v42  ;;  %v5394_v50 = vcombine.high %v57_v44, %v69_v45  ;;  %v58_v52 = vld [vmem:[#allocation2 + $0x38] sm:$0xff]  ;;  %v81_v57 = vld [vmem:[#allocation2 + $0xf0] sm:$0xff]  ;;  %v5393_v59 = vcombine.low %v57_v44, %v69_v45 }
  0x31   :  { %462 = vmatprep.subr.bf16.mxu0 %v5386_v11  ;;  %412 = vmatpush1.bf16.msra.mxu1 %v5407_v28  ;;  %v92_v48 = vld [vmem:[#allocation2 + $0x148] sm:$0xff]  ;;  %v70_v53 = vld [vmem:[#allocation2 + $0x98] sm:$0xff]  ;;  %v93_v58 = vld [vmem:[#allocation2 + $0x150] sm:$0xff] }
  0x32   :  { %515 = vmatprep.subr.bf16.mxu1 %v5388_v29  ;;  %v5416_v54 = vcombine.high %v80_v47, %v92_v48  ;;  %v5415_v55 = vcombine.low %v80_v47, %v92_v48  ;;  %v5396_v56 = vcombine.high %v58_v52, %v70_v53  ;;  %v5418_v60 = vcombine.high %v81_v57, %v93_v58  ;;  %v82_v61 = vld [vmem:[#allocation2 + $0xf8] sm:$0xff]  ;;  %v59_v4 = vld [vmem:[#allocation2 + $0x40] sm:$0xff]  ;;  %v60_v8 = vld [vmem:[#allocation2 + $0x48] sm:$0xff] }
  0x33   :  { %5429 = vmatmul.mubr.msk.bf16.vlgmr.msra.gmra.mrb[0].mxu0 %vm349_vm0, %v6742_v17  ;;  %v94_v62 = vld [vmem:[#allocation2 + $0x158] sm:$0xff]  ;;  %v5417_v63 = vcombine.low %v81_v57, %v93_v58  ;;  %v5395_v1 = vcombine.low %v58_v52, %v70_v53  ;;  %v71_v5 = vld [vmem:[#allocation2 + $0xa0] sm:$0xff]  ;;  %v72_v9 = vld [vmem:[#allocation2 + $0xa8] sm:$0xff] }
  0x34   :  { %398 = vmatprep.mubr.bf16.mxu0 %v6682_v0  ;;  %463 = vmatpush1.bf16.msra.mxu0 %v5385_v21  ;;  %v5420_v2 = vcombine.high %v82_v61, %v94_v62  ;;  %v5419_v3 = vcombine.low %v82_v61, %v94_v62  ;;  %v5398_v6 = vcombine.high %v59_v4, %v71_v5  ;;  %v83_v10 = vld [vmem:[#allocation2 + $0x100] sm:$0xff]  ;;  %v84_v16 = vld [vmem:[#allocation2 + $0x108] sm:$0xff]  ;;  %v61_v21 = vld [vmem:[#allocation2 + $0x50] sm:$0xff] }
  0x35   :  { %464 = vmatprep.subr.bf16.mxu0 %v5410_v25  ;;  %5431 = vmatmul.mubr.msk.bf16.vlgmr.msra.gmra.mrb[0].mxu1 %vm349_vm0, %v6742_v17  ;;  %v5397_v7 = vcombine.low %v59_v4, %v71_v5  ;;  %v5400_v11 = vcombine.high %v60_v8, %v72_v9  ;;  %v95_v12 = vld [vmem:[#allocation2 + $0x160] sm:$0xff]  ;;  %v5399_v13 = vcombine.low %v60_v8, %v72_v9  ;;  %v96_v18 = vld [vmem:[#allocation2 + $0x168] sm:$0xff]  ;;  %v73_v22 = vld [vmem:[#allocation2 + $0xb0] sm:$0xff] }
  0x36   :  { %451 = vmatprep.mubr.bf16.mxu1 %v6682_v0  ;;  %516 = vmatpush1.bf16.msra.mxu1 %v5387_v35  ;;  %v5421_v14 = vcombine.low %v83_v10, %v95_v12  ;;  %v5422_v15 = vcombine.high %v83_v10, %v95_v12  ;;  %v5424_v19 = vcombine.high %v84_v16, %v96_v18  ;;  %v62_v25 = vld [vmem:[#allocation2 + $0x58] sm:$0xff]  ;;  %v85_v27 = vld [vmem:[#allocation2 + $0x110] sm:$0xff] }
  0x37   :  { %517 = vmatprep.subr.bf16.mxu1 %v5412_v38  ;;  %v5423_v20 = vcombine.low %v84_v16, %v96_v18  ;;  %v5402_v23 = vcombine.high %v61_v21, %v73_v22  ;;  %v5401_v24 = vcombine.low %v61_v21, %v73_v22  ;;  %v74_v26 = vld [vmem:[#allocation2 + $0xb8] sm:$0xff]  ;;  %v97_v29 = vld [vmem:[#allocation2 + $0x170] sm:$0xff]  ;;  %v7607_v38 = vmov 0.0  }
  0x38   :  { %465 = vmatpush1.bf16.msra.mxu0 %v5409_v30  ;;  %v5404_v28 = vcombine.high %v62_v25, %v74_v26  ;;  %v5403_v30 = vcombine.low %v62_v25, %v74_v26  ;;  %v5425_v31 = vcombine.low %v85_v27, %v97_v29  ;;  %v5426_v32 = vcombine.high %v85_v27, %v97_v29  ;;  %v98_v35 = vld [vmem:[#allocation2 + $0x178] sm:$0xff] }
  0x39   :  { %568 = vmatprep.subr.bf16.mxu0 %v5390_v34  ;;  %v86_v34 = vld [vmem:[#allocation2 + $0x118] sm:$0xff] }
  0x3a   :  { %518 = vmatpush1.bf16.msra.mxu1 %v5411_v39  ;;  %v5428_v36 = vcombine.high %v86_v34, %v98_v35  ;;  %v5427_v37 = vcombine.low %v86_v34, %v98_v35 }
  0x3b   :  { %5430 = vmatmul.mubr.msk.bf16.gmra.mrb[4].mxu0 %vm349_vm0, %v6750_v33  ;;  %621 = vmatprep.subr.bf16.mxu1 %v5392_v40 }
  0x3c   :  { %494 = vmatprep.mubr.bf16.mxu0 %v6682_v0 }
  0x3d   :  { %5432 = vmatmul.mubr.msk.bf16.gmra.mrb[4].mxu1 %vm349_vm0, %v6750_v33 }
  0x3e   :  { %547 = vmatprep.mubr.bf16.mxu1 %v6682_v0 }
  0x43   :  { %5433 = vmatmul.mubr.msk.bf16.vlgmr.msra.gmra.mrb[8].mxu0 %vm349_vm0, %v6742_v17 }
  0x44   :  { %504 = vmatprep.mubr.bf16.mxu0 %v6682_v0  ;;  %569 = vmatpush1.bf16.msra.mxu0 %v5389_v43 }
  0x45   :  { %570 = vmatprep.subr.bf16.mxu0 %v5414_v46  ;;  %5435 = vmatmul.mubr.msk.bf16.vlgmr.msra.gmra.mrb[8].mxu1 %vm349_vm0, %v6742_v17 }
  0x46   :  { %557 = vmatprep.mubr.bf16.mxu1 %v6682_v0  ;;  %622 = vmatpush1.bf16.msra.mxu1 %v5391_v51 }
  0x47   :  { %623 = vmatprep.subr.bf16.mxu1 %v5416_v54 }
  0x48   :  { %571 = vmatpush1.bf16.msra.mxu0 %v5413_v49 }
  0x49   :  { %674 = vmatprep.subr.bf16.mxu0 %v5394_v50 }
  0x4a   :  { %624 = vmatpush1.bf16.msra.mxu1 %v5415_v55 }
  0x4b   :  { %5434 = vmatmul.mubr.msk.bf16.gmra.mrb[12].mxu0 %vm349_vm0, %v6750_v33  ;;  %727 = vmatprep.subr.bf16.mxu1 %v5396_v56 }
  0x4c   :  { %600 = vmatprep.mubr.bf16.mxu0 %v6682_v0 }
  0x4d   :  { %5436 = vmatmul.mubr.msk.bf16.gmra.mrb[12].mxu1 %vm349_vm0, %v6750_v33 }
  0x4e   :  { %653 = vmatprep.mubr.bf16.mxu1 %v6682_v0 }
  0x53   :  { %5437 = vmatmul.mubr.msk.bf16.vlgmr.msra.gmra.mrb[16].mxu0 %vm349_vm0, %v6742_v17 }
  0x54   :  { %610 = vmatprep.mubr.bf16.mxu0 %v6682_v0  ;;  %675 = vmatpush1.bf16.msra.mxu0 %v5393_v59 }
  0x55   :  { %676 = vmatprep.subr.bf16.mxu0 %v5418_v60  ;;  %5439 = vmatmul.mubr.msk.bf16.vlgmr.msra.gmra.mrb[16].mxu1 %vm349_vm0, %v6742_v17 }
  0x56   :  { %663 = vmatprep.mubr.bf16.mxu1 %v6682_v0  ;;  %728 = vmatpush1.bf16.msra.mxu1 %v5395_v1 }
  0x57   :  { %729 = vmatprep.subr.bf16.mxu1 %v5420_v2 }
  0x58   :  { %677 = vmatpush1.bf16.msra.mxu0 %v5417_v63 }
  0x59   :  { %780 = vmatprep.subr.bf16.mxu0 %v5398_v6 }
  0x5a   :  { %730 = vmatpush1.bf16.msra.mxu1 %v5419_v3 }
  0x5b   :  { %5438 = vmatmul.mubr.msk.bf16.gmra.mrb[20].mxu0 %vm349_vm0, %v6750_v33  ;;  %833 = vmatprep.subr.bf16.mxu1 %v5400_v11 }
  0x5c   :  { %706 = vmatprep.mubr.bf16.mxu0 %v6682_v0 }
  0x5d   :  { %5440 = vmatmul.mubr.msk.bf16.gmra.mrb[20].mxu1 %vm349_vm0, %v6750_v33 }
  0x5e   :  { %759 = vmatprep.mubr.bf16.mxu1 %v6682_v0 }
  0x63   :  { %5441 = vmatmul.mubr.msk.bf16.vlgmr.msra.gmra.mrb[24].mxu0 %vm349_vm0, %v6742_v17 }
  0x64   :  { %716 = vmatprep.mubr.bf16.mxu0 %v6682_v0  ;;  %781 = vmatpush1.bf16.msra.mxu0 %v5397_v7 }
  0x65   :  { %5443 = vmatmul.mubr.msk.bf16.vlgmr.msra.gmra.mrb[24].mxu1 %vm349_vm0, %v6742_v17  ;;  %782 = vmatprep.subr.bf16.mxu0 %v5422_v15 }
  0x66   :  { %769 = vmatprep.mubr.bf16.mxu1 %v6682_v0  ;;  %834 = vmatpush1.bf16.msra.mxu1 %v5399_v13 }
  0x67   :  { %835 = vmatprep.subr.bf16.mxu1 %v5424_v19 }
  0x68   :  { %783 = vmatpush1.bf16.msra.mxu0 %v5421_v14 }
  0x69   :  { %886 = vmatprep.subr.bf16.mxu0 %v5402_v23 }
  0x6a   :  { %836 = vmatpush1.bf16.msra.mxu1 %v5423_v20 }
  0x6b   :  { %5442 = vmatmul.mubr.msk.bf16.gmra.mrb[28].mxu0 %vm349_vm0, %v6750_v33  ;;  %939 = vmatprep.subr.bf16.mxu1 %v5404_v28 }
  0x6c   :  { %812 = vmatprep.mubr.bf16.mxu0 %v6682_v0 }
  0x6d   :  { %5444 = vmatmul.mubr.msk.bf16.gmra.mrb[28].mxu1 %vm349_vm0, %v6750_v33 }
  0x6e   :  { %865 = vmatprep.mubr.bf16.mxu1 %v6682_v0 }
  0x73   :  { %5445 = vmatmul.mubr.msk.bf16.vlgmr.msra.gmra.mrb[32].mxu0 %vm349_vm0, %v6742_v17 }
  0x74   :  { %822 = vmatprep.mubr.bf16.mxu0 %v6682_v0  ;;  %887 = vmatpush1.bf16.msra.mxu0 %v5401_v24 }
  0x75   :  { %5447 = vmatmul.mubr.msk.bf16.vlgmr.msra.gmra.mrb[32].mxu1 %vm349_vm0, %v6742_v17  ;;  %888 = vmatprep.subr.bf16.mxu0 %v5426_v32 }
  0x76   :  { %875 = vmatprep.mubr.bf16.mxu1 %v6682_v0  ;;  %940 = vmatpush1.bf16.msra.mxu1 %v5403_v30 }
  0x77   :  { %941 = vmatprep.subr.bf16.mxu1 %v5428_v36 }
  0x78   :  { %889 = vmatpush1.bf16.msra.mxu0 %v5425_v31 }
  0x79   :  { %6014 = vmatprep.subr.bf16.mxu0 %v7607_v38 }
  0x7a   :  { %942 = vmatpush1.bf16.msra.mxu1 %v5427_v37 }
  0x7b   :  { %5446 = vmatmul.mubr.msk.bf16.gmra.mrb[36].mxu0 %vm349_vm0, %v6750_v33  ;;  %6020 = vmatprep.subr.bf16.mxu1 %v7607_v38 }
  0x7c   :  { %918 = vmatprep.mubr.bf16.mxu0 %v6682_v0 }
  0x7d   :  { %5448 = vmatmul.mubr.msk.bf16.gmra.mrb[36].mxu1 %vm349_vm0, %v6750_v33 }
  0x7e   :  { %971 = vmatprep.mubr.bf16.mxu1 %v6682_v0 }
  0x83   :  { %5449 = vmatmul.mubr.msk.bf16.vlgmr.msra.gmra.mrb[40].mxu0 %vm349_vm0, %v6742_v17 }
  0x84   :  { %928 = vmatprep.mubr.bf16.mxu0 %v6682_v0 }
  0x85   :  { %5451 = vmatmul.mubr.msk.bf16.vlgmr.msra.gmra.mrb[40].mxu1 %vm349_vm0, %v6742_v17 }
  0x86   :  { %981 = vmatprep.mubr.bf16.mxu1 %v6682_v0 }
  0x8b   :  { %5450 = vmatmul.mubr.msk.bf16.gmra.mrb[44].mxu0 %vm349_vm0, %v6750_v33 }
  0x8c   :  { %6016 = vmatprep.mubr.msk.bf16.mxu0 %vm6684_vm1, %v7607_v38 }
  0x8d   :  { %5452 = vmatmul.mubr.msk.bf16.gmra.mrb[44].mxu1 %vm349_vm0, %v6750_v33 }
  0x8e   :  { %6022 = vmatprep.mubr.msk.bf16.mxu1 %vm6684_vm1, %v7607_v38 }
 0x106   :  { %v390_v17 = vpop.f32.mrb[0].mxu0 }
 0x107   :  { %v6825_v0 = vpop.f32.mrb[1].mxu0  ;;  %v5662_v13 = vpack.c.bf16 %v390_v17, %v390_v17 }
 0x108   :  { %v394_v39 = vpop.f32.mrb[2].mxu0  ;;  %v6829_v41 = vpop.f32.mrb[0].mxu1 }
 0x109   :  { %v6827_v40 = vpop.f32.mrb[3].mxu0  ;;  %v6831_v42 = vpop.f32.mrb[1].mxu1  ;;  %v5663_v20 = vpack.c.bf16 %v394_v39, %v394_v39 }
 0x10a   :  { %v6835_v33 = vpop.f32.mrb[2].mxu1 }
 0x10b   :  { %v6839_v45 = vpop.f32.mrb[3].mxu1 }
 0x10e   :  { %v6833_v43 = vpop.f32.mrb[4].mxu0 }
 0x10f   :  { %v6837_v44 = vpop.f32.mrb[5].mxu0  ;;  %v5664_v26 = vpack.c.bf16 %v6833_v43, %v6833_v43 }
 0x110   :  { %v6841_v46 = vpop.f32.mrb[6].mxu0  ;;  %v6845_v48 = vpop.f32.mrb[4].mxu1 }
 0x111   :  { %v6843_v47 = vpop.f32.mrb[7].mxu0  ;;  %v6847_v49 = vpop.f32.mrb[5].mxu1  ;;  %v5665_v31 = vpack.c.bf16 %v6841_v46, %v6841_v46 }
 0x112   :  { %v6851_v51 = vpop.f32.mrb[6].mxu1 }
 0x113   :  { %v6855_v53 = vpop.f32.mrb[7].mxu1 }
 0x116   :  { %v6849_v50 = vpop.f32.mrb[8].mxu0 }
 0x117   :  { %v6853_v52 = vpop.f32.mrb[9].mxu0 }
 0x118   :  { %7609 = vst [vmem:[#allocation11_spill] sm:$0xff] %v6853_v52  ;;  %v6857_v54 = vpop.f32.mrb[10].mxu0  ;;  %v6861_v56 = vpop.f32.mrb[8].mxu1 }
 0x119   :  { %v6859_v55 = vpop.f32.mrb[11].mxu0  ;;  %7611 = vst [vmem:[#allocation13_spill] sm:$0xff] %v6861_v56  ;;  %v6863_v57 = vpop.f32.mrb[9].mxu1 }
 0x11a   :  { %7610 = vst [vmem:[#allocation12_spill] sm:$0xff] %v6859_v55  ;;  %7612 = vst [vmem:[#allocation14_spill] sm:$0xff] %v6863_v57  ;;  %v6867_v59 = vpop.f32.mrb[10].mxu1 }
 0x11b   :  { %7614 = vst [vmem:[#allocation16_spill] sm:$0xff] %v6867_v59  ;;  %v6871_v61 = vpop.f32.mrb[11].mxu1 }
 0x11c   :  { %7616 = vst [vmem:[#allocation18_spill] sm:$0xff] %v6871_v61 }
 0x11e   :  { %v6865_v58 = vpop.f32.mrb[12].mxu0 }
 0x11f   :  { %7613 = vst [vmem:[#allocation15_spill] sm:$0xff] %v6865_v58  ;;  %v6869_v60 = vpop.f32.mrb[13].mxu0 }
 0x120   :  { %7615 = vst [vmem:[#allocation17_spill] sm:$0xff] %v6869_v60  ;;  %v6873_v62 = vpop.f32.mrb[14].mxu0  ;;  %v6877_v1 = vpop.f32.mrb[12].mxu1 }
 0x121   :  { %7617 = vst [vmem:[#allocation19_spill] sm:$0xff] %v6873_v62  ;;  %v6875_v63 = vpop.f32.mrb[15].mxu0  ;;  %7619 = vst [vmem:[#allocation21_spill] sm:$0xff] %v6877_v1  ;;  %v6879_v2 = vpop.f32.mrb[13].mxu1 }
 0x122   :  { %7618 = vst [vmem:[#allocation20_spill] sm:$0xff] %v6875_v63  ;;  %7620 = vst [vmem:[#allocation22_spill] sm:$0xff] %v6879_v2  ;;  %v6881_v4 = vpop.f32.mrb[14].mxu1 }
 0x123   :  { %7621 = vst [vmem:[#allocation23_spill] sm:$0xff] %v6881_v4  ;;  %v6885_v7 = vpop.f32.mrb[15].mxu1 }
 0x124   :  { %7622 = vst [vmem:[#allocation24_spill] sm:$0xff] %v6885_v7 }
 0x126   :  { %v602_v3 = vpop.f32.mrb[16].mxu0 }
 0x127   :  { %v5666_v5 = vpack.c.bf16 %v602_v3, %v602_v3  ;;  %v6883_v6 = vpop.f32.mrb[17].mxu0 }
 0x128   :  { %v606_v8 = vpop.f32.mrb[18].mxu0  ;;  %v6891_v11 = vpop.f32.mrb[16].mxu1 }
 0x129   :  { %v5667_v9 = vpack.c.bf16 %v606_v8, %v606_v8  ;;  %v6887_v10 = vpop.f32.mrb[19].mxu0  ;;  %6015 = vmatpush3.bf16.xpose.msra.mxu0 %v5666_v5  ;;  %v6893_v12 = vpop.f32.mrb[17].mxu1 }
 0x12a   :  { %6026 = vmatprep.subr.bf16.mxu0 %v7607_v38  ;;  %v6895_v15 = vpop.f32.mrb[18].mxu1 }
 0x12b   :  { %6021 = vmatpush3.bf16.xpose.msra.mxu1 %v5667_v9  ;;  %v6899_v19 = vpop.f32.mrb[19].mxu1 }
 0x12c   :  { %6032 = vmatprep.subr.bf16.mxu1 %v7607_v38 }
 0x12e   :  { %v612_v14 = vpop.f32.mrb[20].mxu0 }
 0x12f   :  { %v5668_v16 = vpack.c.bf16 %v612_v14, %v612_v14  ;;  %v6897_v18 = vpop.f32.mrb[21].mxu0 }
 0x130   :  { %v616_v21 = vpop.f32.mrb[22].mxu0  ;;  %6017 = vmatmul.mubr.bf16.vlgmr.msra.gmra.mrb[48].mxu0 %v5662_v13  ;;  %v6908_v24 = vpop.f32.mrb[20].mxu1 }
 0x131   :  { %v5669_v22 = vpack.c.bf16 %v616_v21, %v616_v21  ;;  %6027 = vmatpush3.bf16.xpose.msra.mxu0 %v5668_v16  ;;  %v6901_v23 = vpop.f32.mrb[23].mxu0  ;;  %6028 = vmatprep.mubr.msk.bf16.mxu0 %vm6684_vm1, %v7607_v38  ;;  %v6911_v25 = vpop.f32.mrb[21].mxu1 }
 0x132   :  { %6023 = vmatmul.mubr.bf16.vlgmr.msra.gmra.mrb[48].mxu1 %v5663_v20  ;;  %6038 = vmatprep.subr.bf16.mxu0 %v7607_v38  ;;  %v6915_v27 = vpop.f32.mrb[22].mxu1 }
 0x133   :  { %6033 = vmatpush3.bf16.xpose.msra.mxu1 %v5669_v22  ;;  %6034 = vmatprep.mubr.msk.bf16.mxu1 %vm6684_vm1, %v7607_v38  ;;  %v6919_v29 = vpop.f32.mrb[23].mxu1 }
 0x134   :  { %6044 = vmatprep.subr.bf16.mxu1 %v7607_v38 }
 0x136   :  { %v6917_v28 = vpop.f32.mrb[24].mxu0 }
 0x137   :  { %v6921_v30 = vpop.f32.mrb[25].mxu0 }
 0x138   :  { %7623 = vst [vmem:[#allocation25_spill] sm:$0xff] %v6921_v30  ;;  %6029 = vmatmul.mubr.bf16.vlgmr.msra.gmra.mrb[52].mxu0 %v5664_v26  ;;  %v6925_v32 = vpop.f32.mrb[26].mxu0  ;;  %v6933_v35 = vpop.f32.mrb[24].mxu1 }
 0x139   :  { %v6927_v34 = vpop.f32.mrb[27].mxu0  ;;  %6040 = vmatprep.mubr.msk.bf16.mxu0 %vm6684_vm1, %v7607_v38  ;;  %7625 = vst [vmem:[#allocation27_spill] sm:$0xff] %v6933_v35  ;;  %v6935_v36 = vpop.f32.mrb[25].mxu1 }
 0x13a   :  { %7624 = vst [vmem:[#allocation26_spill] sm:$0xff] %v6927_v34  ;;  %6035 = vmatmul.mubr.bf16.vlgmr.msra.gmra.mrb[52].mxu1 %v5665_v31  ;;  %7626 = vst [vmem:[#allocation28_spill] sm:$0xff] %v6935_v36  ;;  %v6937_v37 = vpop.f32.mrb[26].mxu1 }
 0x13b   :  { %6046 = vmatprep.mubr.msk.bf16.mxu1 %vm6684_vm1, %v7607_v38  ;;  %7627 = vst [vmem:[#allocation29_spill] sm:$0xff] %v6937_v37  ;;  %v6941_v39 = vpop.f32.mrb[27].mxu1 }
 0x13c   :  { %7628 = vst [vmem:[#allocation30_spill] sm:$0xff] %v6941_v39 }
 0x13e   :  { %v6939_v17 = vpop.f32.mrb[28].mxu0 }
 0x13f   :  { %v6943_v43 = vpop.f32.mrb[29].mxu0 }
 0x140   :  { %7629 = vst [vmem:[#allocation31_spill] sm:$0xff] %v6943_v43  ;;  %v6945_v46 = vpop.f32.mrb[30].mxu0  ;;  %v6949_v5 = vpop.f32.mrb[28].mxu1 }
 0x141   :  { %v6947_v3 = vpop.f32.mrb[31].mxu0  ;;  %7631 = vst [vmem:[#allocation33_spill] sm:$0xff] %v6949_v5  ;;  %v6951_v8 = vpop.f32.mrb[29].mxu1 }
 0x142   :  { %7630 = vst [vmem:[#allocation32_spill] sm:$0xff] %v6947_v3  ;;  %7632 = vst [vmem:[#allocation34_spill] sm:$0xff] %v6951_v8  ;;  %v6953_v9 = vpop.f32.mrb[30].mxu1 }
 0x143   :  { %7633 = vst [vmem:[#allocation35_spill] sm:$0xff] %v6953_v9  ;;  %v6955_v13 = vpop.f32.mrb[31].mxu1 }
 0x144   :  { %7634 = vst [vmem:[#allocation36_spill] sm:$0xff] %v6955_v13 }
 0x146   :  { %v814_v14 = vpop.f32.mrb[32].mxu0 }
 0x147   :  { %v5670_v16 = vpack.c.bf16 %v814_v14, %v814_v14  ;;  %v816_v20 = vpop.f32.mrb[33].mxu0  ;;  %v7635_v14 = vmov 0.0  }
 0x148   :  { %v5682_v21 = vpack.c.bf16 %v816_v20, %v816_v20  ;;  %v818_v22 = vpop.f32.mrb[34].mxu0  ;;  %v867_v7 = vpop.f32.mrb[32].mxu1 }
 0x149   :  { %v1296_v26 = vsel %vm1294_vm2, %v5670_v16, 0  ;;  %v5671_v31 = vpack.c.bf16 %v818_v22, %v818_v22  ;;  %v820_v38 = vpop.f32.mrb[35].mxu0  ;;  %v5694_v8 = vpack.c.bf16 %v867_v7, %v867_v7  ;;  %v869_v57 = vpop.f32.mrb[33].mxu1 }
 0x14a   :  { %v6959_v2 = vsel %vm1294_vm2, %v5682_v21, 0  ;;  %v5683_v61 = vpack.c.bf16 %v820_v38, %v820_v38  ;;  %6039 = vmatpush3.bf16.msra.mxu0 %v1296_v26  ;;  %v5706_v39 = vpack.c.bf16 %v869_v57, %v869_v57  ;;  %v871_v36 = vpop.f32.mrb[34].mxu1 }
 0x14b   :  { %v1342_v13 = vsel %vm1294_vm2, %v5671_v31, 0  ;;  %6050 = vmatprep.subr.bf16.mxu0 %v7635_v14  ;;  %v6967_v16 = vsel %vm1294_vm2, %v5694_v8, 0  ;;  %v5695_v22 = vpack.c.bf16 %v871_v36, %v871_v36  ;;  %v873_v4 = vpop.f32.mrb[35].mxu1 }
 0x14c   :  { %v6964_v20 = vsel %vm1294_vm2, %v5683_v61, 0  ;;  %6045 = vmatpush3.bf16.msra.mxu1 %v1342_v13  ;;  %v6970_v38 = vsel %vm1294_vm2, %v5706_v39, 0  ;;  %v5707_v7 = vpack.c.bf16 %v873_v4, %v873_v4 }
 0x14d   :  { %6056 = vmatprep.subr.bf16.mxu1 %v7635_v14  ;;  %v6974_v57 = vsel %vm1294_vm2, %v5695_v22, 0 }
 0x14e   :  { %v824_v21 = vpop.f32.mrb[36].mxu0  ;;  %v6977_v26 = vsel %vm1294_vm2, %v5707_v7, 0 }
 0x14f   :  { %v5672_v61 = vpack.c.bf16 %v824_v21, %v824_v21  ;;  %v826_v31 = vpop.f32.mrb[37].mxu0 }
 0x150   :  { %v5684_v8 = vpack.c.bf16 %v826_v31, %v826_v31  ;;  %v828_v1 = vpop.f32.mrb[38].mxu0  ;;  %v877_v9 = vpop.f32.mrb[36].mxu1 }
 0x151   :  { %v6980_v36 = vsel %vm1294_vm2, %v5672_v61, 0  ;;  %v5673_v13 = vpack.c.bf16 %v828_v1, %v828_v1  ;;  %v830_v39 = vpop.f32.mrb[39].mxu0  ;;  %v5696_v22 = vpack.c.bf16 %v877_v9, %v877_v9  ;;  %v879_v5 = vpop.f32.mrb[37].mxu1 }
 0x152   :  { %v6983_v4 = vsel %vm1294_vm2, %v5684_v8, 0  ;;  %v5685_v59 = vpack.c.bf16 %v830_v39, %v830_v39  ;;  %v5708_v7 = vpack.c.bf16 %v879_v5, %v879_v5  ;;  %v881_v21 = vpop.f32.mrb[38].mxu1 }
 0x153   :  { %v6986_v56 = vsel %vm1294_vm2, %v5673_v13, 0  ;;  %v6992_v61 = vsel %vm1294_vm2, %v5696_v22, 0  ;;  %v5697_v1 = vpack.c.bf16 %v881_v21, %v881_v21  ;;  %v883_v37 = vpop.f32.mrb[39].mxu1 }
 0x154   :  { %v6989_v31 = vsel %vm1294_vm2, %v5685_v59, 0  ;;  %v6995_v35 = vsel %vm1294_vm2, %v5708_v7, 0  ;;  %v5709_v8 = vpack.c.bf16 %v883_v37, %v883_v37 }
 0x155   :  { %v6998_v9 = vsel %vm1294_vm2, %v5697_v1, 0 }
 0x156   :  { %v920_v39 = vpop.f32.mrb[40].mxu0  ;;  %v7001_v13 = vsel %vm1294_vm2, %v5709_v8, 0 }
 0x157   :  { %v5718_v5 = vpack.c.bf16 %v920_v39, %v920_v39  ;;  %v922_v63 = vpop.f32.mrb[41].mxu0 }
 0x158   :  { %v5730_v59 = vpack.c.bf16 %v922_v63, %v922_v63  ;;  %v924_v60 = vpop.f32.mrb[42].mxu0  ;;  %v973_v55 = vpop.f32.mrb[40].mxu1 }
 0x159   :  { %v7004_v22 = vsel %vm1294_vm2, %v5718_v5, 0  ;;  %v5719_v21 = vpack.c.bf16 %v924_v60, %v924_v60  ;;  %v926_v3 = vpop.f32.mrb[43].mxu0  ;;  %v5742_v1 = vpack.c.bf16 %v973_v55, %v973_v55  ;;  %v975_v43 = vpop.f32.mrb[41].mxu1 }
 0x15a   :  { %7636 = vst [vmem:[#allocation37_spill] sm:$0xff] %v7004_v22  ;;  %v7007_v7 = vsel %vm1294_vm2, %v5730_v59, 0  ;;  %v5731_v37 = vpack.c.bf16 %v926_v3, %v926_v3  ;;  %v5754_v8 = vpack.c.bf16 %v975_v43, %v975_v43  ;;  %v977_v39 = vpop.f32.mrb[42].mxu1 }
 0x15b   :  { %7637 = vst [vmem:[#allocation38_spill] sm:$0xff] %v7007_v7  ;;  %v7010_v52 = vsel %vm1294_vm2, %v5719_v21, 0  ;;  %v7016_v5 = vsel %vm1294_vm2, %v5742_v1, 0  ;;  %v5743_v60 = vpack.c.bf16 %v977_v39, %v977_v39  ;;  %v979_v34 = vpop.f32.mrb[43].mxu1 }
 0x15c   :  { %7638 = vst [vmem:[#allocation39_spill] sm:$0xff] %v7010_v52  ;;  %v7013_v63 = vsel %vm1294_vm2, %v5731_v37, 0  ;;  %7640 = vst [vmem:[#allocation41_spill] sm:$0xff] %v7016_v5  ;;  %v7019_v30 = vsel %vm1294_vm2, %v5754_v8, 0  ;;  %v5755_v59 = vpack.c.bf16 %v979_v34, %v979_v34 }
 0x15d   :  { %7639 = vst [vmem:[#allocation40_spill] sm:$0xff] %v7013_v63  ;;  %7641 = vst [vmem:[#allocation42_spill] sm:$0xff] %v7019_v30  ;;  %v7022_v55 = vsel %vm1294_vm2, %v5743_v60, 0 }
 0x15e   :  { %7642 = vst [vmem:[#allocation43_spill] sm:$0xff] %v7022_v55  ;;  %v930_v3 = vpop.f32.mrb[44].mxu0  ;;  %v7025_v43 = vsel %vm1294_vm2, %v5755_v59, 0 }
 0x15f   :  { %v5720_v21 = vpack.c.bf16 %v930_v3, %v930_v3  ;;  %7643 = vst [vmem:[#allocation44_spill] sm:$0xff] %v7025_v43  ;;  %v932_v7 = vpop.f32.mrb[45].mxu0 }
 0x160   :  { %v5732_v37 = vpack.c.bf16 %v932_v7, %v932_v7  ;;  %v934_v63 = vpop.f32.mrb[46].mxu0  ;;  %v983_v5 = vpop.f32.mrb[44].mxu1 }
 0x161   :  { %v7028_v1 = vsel %vm1294_vm2, %v5720_v21, 0  ;;  %v5721_v39 = vpack.c.bf16 %v934_v63, %v934_v63  ;;  %v936_v52 = vpop.f32.mrb[47].mxu0  ;;  %v5744_v34 = vpack.c.bf16 %v983_v5, %v983_v5  ;;  %v985_v30 = vpop.f32.mrb[45].mxu1 }
 0x162   :  { %7644 = vst [vmem:[#allocation45_spill] sm:$0xff] %v7028_v1  ;;  %v7031_v8 = vsel %vm1294_vm2, %v5732_v37, 0  ;;  %v5733_v60 = vpack.c.bf16 %v936_v52, %v936_v52  ;;  %v5756_v59 = vpack.c.bf16 %v985_v30, %v985_v30  ;;  %v987_v43 = vpop.f32.mrb[46].mxu1 }
 0x163   :  { %7645 = vst [vmem:[#allocation46_spill] sm:$0xff] %v7031_v8  ;;  %v7034_v3 = vsel %vm1294_vm2, %v5721_v39, 0  ;;  %v7037_v7 = vsel %vm1294_vm2, %v5744_v34, 0  ;;  %v5745_v63 = vpack.c.bf16 %v987_v43, %v987_v43  ;;  %v989_v55 = vpop.f32.mrb[47].mxu1 }
 0x164   :  { %7646 = vst [vmem:[#allocation47_spill] sm:$0xff] %v7034_v3  ;;  %7647 = vst [vmem:[#allocation48_spill] sm:$0xff] %v7037_v7  ;;  %v7040_v21 = vsel %vm1294_vm2, %v5733_v60, 0  ;;  %v7043_v1 = vsel %vm1294_vm2, %v5756_v59, 0  ;;  %v5757_v37 = vpack.c.bf16 %v989_v55, %v989_v55 }
 0x165   :  { %7648 = vst [vmem:[#allocation49_spill] sm:$0xff] %v7040_v21  ;;  %7649 = vst [vmem:[#allocation50_spill] sm:$0xff] %v7043_v1  ;;  %v7046_v52 = vsel %vm1294_vm2, %v5745_v63, 0 }
 0x166   :  { %7650 = vst [vmem:[#allocation51_spill] sm:$0xff] %v7046_v52  ;;  %v7049_v5 = vsel %vm1294_vm2, %v5757_v37, 0 }
 0x167   :  { %7651 = vst [vmem:[#allocation52_spill] sm:$0xff] %v7049_v5 }
 0x203   :  { %v1112_v30 = vpop.f32.mrb[48].mxu0 }
 0x204   :  { %v1238_v39 = vmul.f32 0.17677669, %v1112_v30  ;;  %v6018_v34 = vpop.f32.mrb[49].mxu0 }
 0x205   :  { %v1115_v7 = vpop.f32.mrb[50].mxu0  ;;  %v1152_v8 = vpop.f32.mrb[48].mxu1 }
 0x206   :  { %v1239_v60 = vmul.f32 0.17677669, %v1152_v8  ;;  %v6019_v21 = vpop.f32.mrb[51].mxu0  ;;  %v6024_v43 = vpop.f32.mrb[49].mxu1  ;;  %v1243_v3 = vsel %vm1242_vm3, %v1238_v39, -inf }
 0x207   :  { %v1155_v59 = vpop.f32.mrb[50].mxu1  ;;  %1244 = vmax.xlane.f32.xlu0 %v1243_v3 }
 0x208   :  { %v6025_v55 = vpop.f32.mrb[51].mxu1  ;;  %v1246_v63 = vsel %vm1242_vm3, %v1239_v60, -inf }
 0x20b   :  { %1247 = vmax.xlane.f32.xlu0 %v1246_v63  ;;  %v1192_v1 = vpop.f32.mrb[52].mxu0 }
 0x20c   :  { %v1240_v37 = vmul.f32 0.17677669, %v1192_v1  ;;  %v6030_v5 = vpop.f32.mrb[53].mxu0 }
 0x20d   :  { %v1195_v52 = vpop.f32.mrb[54].mxu0  ;;  %v1232_v62 = vpop.f32.mrb[52].mxu1 }
 0x20e   :  { %v1241_v30 = vmul.f32 0.17677669, %v1232_v62  ;;  %v6031_v34 = vpop.f32.mrb[55].mxu0  ;;  %v6036_v7 = vpop.f32.mrb[53].mxu1  ;;  %v1249_v8 = vsel %vm1242_vm3, %v1240_v37, -inf }
 0x20f   :  { %v1235_v21 = vpop.f32.mrb[54].mxu1  ;;  %1250 = vmax.xlane.f32.xlu1 %v1249_v8 }
 0x210   :  { %v6037_v43 = vpop.f32.mrb[55].mxu1  ;;  %v1252_v59 = vsel %vm1242_vm3, %v1241_v30, -inf }
 0x213   :  { %1253 = vmax.xlane.f32.xlu1 %v1252_v59 }
 0x294   :  { %v1245_v3 = vpop.xlane.xlu0 %1244 }
 0x295   :  { %v1255_v55 = vsub.f32 %v1238_v39, %v1245_v3 }
 0x297   :  { %v1259_v22 = vmul.f32 1.442695, %v1255_v55 }
 0x298   :  { %v1248_v63 = vpop.xlane.xlu0 %1247 }
 0x299   :  { %6476 = vpow2.f32 %v1259_v22  ;;  %v1256_v1 = vsub.f32 %v1239_v60, %v1248_v63 }
 0x29b   :  { %v1261_v5 = vmul.f32 1.442695, %v1256_v1 }
 0x29c   :  { %v1251_v52 = vpop.xlane.xlu1 %1250 }
 0x29d   :  { %6478 = vpow2.f32 %v1261_v5  ;;  %v1257_v62 = vsub.f32 %v1240_v37, %v1251_v52 }
 0x29f   :  { %v1263_v34 = vmul.f32 1.442695, %v1257_v62 }
 0x2a0   :  { %v1254_v7 = vpop.xlane.xlu1 %1253 }
 0x2a1   :  { %6480 = vpow2.f32 %v1263_v34  ;;  %v1258_v58 = vsub.f32 %v1241_v30, %v1254_v7 }
 0x2a3   :  { %v6477_v21 = vpop.eup %6476  ;;  %v1265_v8 = vmul.f32 1.442695, %v1258_v58 }
 0x2a4   :  { %v1267_v43 = vsel %vm1242_vm3, %v6477_v21, 0.0 }
 0x2a5   :  { %6482 = vpow2.f32 %v1265_v8  ;;  %1268 = vadd.xlane.f32.xlu0 %v1267_v43 }
 0x2a7   :  { %v6479_v59 = vpop.eup %6478 }
 0x2a8   :  { %v1270_v39 = vsel %vm1242_vm3, %v6479_v59, 0.0 }
 0x2a9   :  { %1271 = vadd.xlane.f32.xlu1 %v1270_v39 }
 0x2ab   :  { %v6481_v22 = vpop.eup %6480 }
 0x2ac   :  { %v1273_v60 = vsel %vm1242_vm3, %v6481_v22, 0.0 }
 0x2ad   :  { %1274 = vadd.xlane.f32.xlu0 %v1273_v60  ;;  %v5680_v60 = vpack.c.bf16 %v6897_v18, %v6897_v18 }
 0x2af   :  { %v6483_v3 = vpop.eup %6482 }
 0x2b0   :  { %v1276_v37 = vsel %vm1242_vm3, %v6483_v3, 0.0 }
 0x2b1   :  { %1277 = vadd.xlane.f32.xlu1 %v1276_v37 }
 0x332   :  { %v1269_v55 = vpop.xlane.xlu0 %1268 }
 0x333   :  { %6484 = vrcp.f32 %v1269_v55 }
 0x336   :  { %v1272_v30 = vpop.xlane.xlu1 %1271 }
 0x337   :  { %6486 = vrcp.f32 %v1272_v30 }
 0x33a   :  { %v1275_v58 = vpop.xlane.xlu0 %1274 }
 0x33b   :  { %6488 = vrcp.f32 %v1275_v58 }
 0x33d   :  { %v6485_v63 = vpop.eup %6484 }
 0x33e   :  { %v1280_v1 = vmul.f32 %v6485_v63, %v6477_v21  ;;  %v1278_v5 = vpop.xlane.xlu1 %1277 }
 0x33f   :  { %6490 = vrcp.f32 %v1278_v5 }
 0x340   :  { %v1287_v52 = vpack.c.bf16 %v1280_v1, %v1280_v1 }
 0x341   :  { %v6487_v62 = vpop.eup %6486 }
 0x342   :  { %v1282_v34 = vmul.f32 %v6487_v62, %v6479_v59  ;;  %6041 = vmatmul.mubr.msk.bf16.vlgmr.msra.gmra.mrb[56].mxu0 %vm1242_vm3, %v1287_v52 }
 0x343   :  { %6051 = vmatpush3.bf16.msra.mxu0 %v6980_v36  ;;  %6052 = vmatprep.mubr.msk.bf16.mxu0 %vm6684_vm1, %v7635_v14  ;;  %v5678_v36 = vpack.c.bf16 %v6883_v6, %v6883_v6  ;;  %v5674_v6 = vpack.c.bf16 %v6825_v0, %v6825_v0  ;;  %v5676_v0 = vpack.c.bf16 %v6837_v44, %v6837_v44 }
 0x344   :  { %v1288_v7 = vpack.c.bf16 %v1282_v34, %v1282_v34  ;;  %6062 = vmatprep.subr.bf16.mxu0 %v7635_v14 }
 0x345   :  { %v6489_v8 = vpop.eup %6488 }
 0x346   :  { %v1284_v43 = vmul.f32 %v6489_v8, %v6481_v22  ;;  %6047 = vmatmul.mubr.msk.bf16.vlgmr.msra.gmra.mrb[56].mxu1 %vm1242_vm3, %v1288_v7 }
 0x347   :  { %6057 = vmatpush3.bf16.msra.mxu1 %v6986_v56  ;;  %6058 = vmatprep.mubr.msk.bf16.mxu1 %vm6684_vm1, %v7635_v14  ;;  %v5679_v56 = vpack.c.bf16 %v6887_v10, %v6887_v10  ;;  %v5675_v10 = vpack.c.bf16 %v6827_v40, %v6827_v40  ;;  %v5677_v40 = vpack.c.bf16 %v6843_v47, %v6843_v47 }
 0x348   :  { %v1289_v21 = vpack.c.bf16 %v1284_v43, %v1284_v43  ;;  %6068 = vmatprep.subr.bf16.mxu1 %v7635_v14 }
 0x349   :  { %v6491_v59 = vpop.eup %6490 }
 0x34a   :  { %v1286_v39 = vmul.f32 %v6491_v59, %v6483_v3  ;;  %6053 = vmatmul.mubr.msk.bf16.vlgmr.msra.gmra.mrb[60].mxu0 %vm1242_vm3, %v1289_v21  ;;  %v5681_v3 = vpack.c.bf16 %v6901_v23, %v6901_v23 }
 0x34b   :  { %6064 = vmatprep.mubr.msk.bf16.mxu0 %vm6684_vm1, %v7635_v14 }
 0x34c   :  { %6063 = vmatpush3.bf16.xpose.msra.mxu0 %v5678_v36  ;;  %v1290_v22 = vpack.c.bf16 %v1286_v39, %v1286_v39 }
 0x34d   :  { %6074 = vmatprep.subr.bf16.mxu0 %v7635_v14 }
 0x34e   :  { %6059 = vmatmul.mubr.msk.bf16.vlgmr.msra.gmra.mrb[60].mxu1 %vm1242_vm3, %v1290_v22 }
 0x34f   :  { %6070 = vmatprep.mubr.msk.bf16.mxu1 %vm6684_vm1, %v7635_v14 }
 0x350   :  { %6069 = vmatpush3.bf16.xpose.msra.mxu1 %v5679_v56 }
 0x351   :  { %6080 = vmatprep.subr.bf16.mxu1 %v7635_v14 }
 0x353   :  { %6065 = vmatmul.mubr.bf16.vlgmr.msra.gmra.mrb[64].mxu0 %v5674_v6 }
 0x354   :  { %6075 = vmatpush3.bf16.xpose.msra.mxu0 %v5680_v60  ;;  %6076 = vmatprep.mubr.msk.bf16.mxu0 %vm6684_vm1, %v7635_v14 }
 0x355   :  { %6086 = vmatprep.subr.bf16.mxu0 %v7635_v14 }
 0x357   :  { %6071 = vmatmul.mubr.bf16.vlgmr.msra.gmra.mrb[64].mxu1 %v5675_v10 }
 0x358   :  { %6081 = vmatpush3.bf16.xpose.msra.mxu1 %v5681_v3  ;;  %6082 = vmatprep.mubr.msk.bf16.mxu1 %vm6684_vm1, %v7635_v14 }
 0x359   :  { %6092 = vmatprep.subr.bf16.mxu1 %v7635_v14 }
 0x35b   :  { %6077 = vmatmul.mubr.bf16.vlgmr.msra.gmra.mrb[68].mxu0 %v5676_v0 }
 0x35c   :  { %6087 = vmatpush3.bf16.msra.mxu0 %v6959_v2  ;;  %6088 = vmatprep.mubr.msk.bf16.mxu0 %vm6684_vm1, %v7635_v14 }
 0x35d   :  { %6098 = vmatprep.subr.bf16.mxu0 %v7635_v14 }
 0x35f   :  { %6083 = vmatmul.mubr.bf16.vlgmr.msra.gmra.mrb[68].mxu1 %v5677_v40 }
 0x360   :  { %6093 = vmatpush3.bf16.msra.mxu1 %v6964_v20  ;;  %6094 = vmatprep.mubr.msk.bf16.mxu1 %vm6684_vm1, %v7635_v14 }
 0x361   :  { %6104 = vmatprep.subr.bf16.mxu1 %v7635_v14 }
 0x415   :  { %v7107_v44 = vpop.f32.mrb[56].mxu0 }
 0x416   :  { %v6042_v18 = vpop.f32.mrb[57].mxu0 }
 0x417   :  { %v1335_v2 = vpop.f32.mrb[58].mxu0 }
 0x418   :  { %v6043_v23 = vpop.f32.mrb[59].mxu0 }
 0x419   :  { %v7109_v37 = vpop.f32.mrb[56].mxu1 }
 0x41a   :  { %v5758_v47 = vpack.c.bf16 %v7109_v37, %v7107_v44  ;;  %v6048_v55 = vpop.f32.mrb[57].mxu1  ;;  %v6463_v44 = vld [vmem:[#allocation5 + $0x188] sm:$0xff]   ;;  %v6449_v37 = vld [vmem:[#allocation5 + $0x110] sm:$0xff]  }
 0x41b   :  { %v1381_v30 = vpop.f32.mrb[58].mxu1 }
 0x41c   :  { %v6049_v58 = vpop.f32.mrb[59].mxu1 }
 0x41d   :  { %v7113_v63 = vpop.f32.mrb[60].mxu0 }
 0x41e   :  { %v6054_v20 = vpop.f32.mrb[61].mxu0 }
 0x41f   :  { %v1427_v1 = vpop.f32.mrb[62].mxu0 }
 0x420   :  { %v6055_v5 = vpop.f32.mrb[63].mxu0 }
 0x421   :  { %v7115_v52 = vpop.f32.mrb[60].mxu1 }
 0x422   :  { %v5759_v62 = vpack.c.bf16 %v7115_v52, %v7113_v63  ;;  %v6060_v34 = vpop.f32.mrb[61].mxu1  ;;  %v6453_v63 = vld [vmem:[#allocation5 + $0x120] sm:$0xff]  }
 0x423   :  { %v1473_v7 = vpop.f32.mrb[62].mxu1  ;;  %v6468_v52 = vld [vmem:[#allocation5 + $0x1e0] sm:$0xff]  }
 0x424   :  { %v6061_v8 = vpop.f32.mrb[63].mxu1 }
 0x426   :  { %v1552_v43 = vpop.f32.mrb[64].mxu0 }
 0x427   :  { %v1678_v21 = vmul.f32 0.17677669, %v1552_v43  ;;  %v6066_v59 = vpop.f32.mrb[65].mxu0 }
 0x428   :  { %v1555_v36 = vpop.f32.mrb[66].mxu0 }
 0x429   :  { %v6067_v39 = vpop.f32.mrb[67].mxu0  ;;  %v1682_v22 = vsel %vm1242_vm3, %v1678_v21, -inf }
 0x42a   :  { %v1592_v56 = vpop.f32.mrb[64].mxu1  ;;  %1683 = vmax.xlane.f32.xlu0 %v1682_v22 }
 0x42b   :  { %v1679_v6 = vmul.f32 0.17677669, %v1592_v56  ;;  %v6072_v60 = vpop.f32.mrb[65].mxu1 }
 0x42c   :  { %v1595_v10 = vpop.f32.mrb[66].mxu1 }
 0x42d   :  { %v6073_v3 = vpop.f32.mrb[67].mxu1  ;;  %v1685_v0 = vsel %vm1242_vm3, %v1679_v6, -inf }
 0x42e   :  { %1686 = vmax.xlane.f32.xlu1 %v1685_v0  ;;  %v1632_v40 = vpop.f32.mrb[68].mxu0 }
 0x42f   :  { %v1680_v18 = vmul.f32 0.17677669, %v1632_v40  ;;  %v6078_v2 = vpop.f32.mrb[69].mxu0 }
 0x430   :  { %v1635_v23 = vpop.f32.mrb[70].mxu0 }
 0x431   :  { %v6079_v55 = vpop.f32.mrb[71].mxu0  ;;  %v1688_v30 = vsel %vm1242_vm3, %v1680_v18, -inf }
 0x432   :  { %v1672_v58 = vpop.f32.mrb[68].mxu1  ;;  %1689 = vmax.xlane.f32.xlu0 %v1688_v30 }
 0x433   :  { %v1681_v20 = vmul.f32 0.17677669, %v1672_v58  ;;  %v6084_v1 = vpop.f32.mrb[69].mxu1 }
 0x434   :  { %v1675_v5 = vpop.f32.mrb[70].mxu1 }
 0x435   :  { %v6085_v34 = vpop.f32.mrb[71].mxu1  ;;  %v1691_v7 = vsel %vm1242_vm3, %v1681_v20, -inf }
 0x436   :  { %1692 = vmax.xlane.f32.xlu1 %v1691_v7 }
 0x4b7   :  { %v1684_v8 = vpop.xlane.xlu0 %1683 }
 0x4b8   :  { %v1694_v43 = vsub.f32 %v1678_v21, %v1684_v8 }
 0x4ba   :  { %v1698_v59 = vmul.f32 1.442695, %v1694_v43 }
 0x4bb   :  { %v1687_v36 = vpop.xlane.xlu1 %1686 }
 0x4bc   :  { %6492 = vpow2.f32 %v1698_v59  ;;  %v1695_v39 = vsub.f32 %v1679_v6, %v1687_v36 }
 0x4be   :  { %v1700_v22 = vmul.f32 1.442695, %v1695_v39 }
 0x4bf   :  { %v1690_v56 = vpop.xlane.xlu0 %1689 }
 0x4c0   :  { %6494 = vpow2.f32 %v1700_v22  ;;  %v1696_v60 = vsub.f32 %v1680_v18, %v1690_v56 }
 0x4c2   :  { %v1702_v10 = vmul.f32 1.442695, %v1696_v60 }
 0x4c3   :  { %v1693_v3 = vpop.xlane.xlu1 %1692 }
 0x4c4   :  { %6496 = vpow2.f32 %v1702_v10  ;;  %v1697_v0 = vsub.f32 %v1681_v20, %v1693_v3 }
 0x4c6   :  { %v6493_v40 = vpop.eup %6492  ;;  %v1704_v2 = vmul.f32 1.442695, %v1697_v0 }
 0x4c7   :  { %v1706_v23 = vsel %vm1242_vm3, %v6493_v40, 0.0 }
 0x4c8   :  { %6498 = vpow2.f32 %v1704_v2  ;;  %1707 = vadd.xlane.f32.xlu0 %v1706_v23  ;;  %v5693_v2 = vpack.c.bf16 %v6915_v27, %v6915_v27 }
 0x4ca   :  { %v6495_v55 = vpop.eup %6494 }
 0x4cb   :  { %v1709_v21 = vsel %vm1242_vm3, %v6495_v55, 0.0 }
 0x4cc   :  { %1710 = vadd.xlane.f32.xlu1 %v1709_v21 }
 0x4ce   :  { %v6497_v30 = vpop.eup %6496 }
 0x4cf   :  { %v1712_v6 = vsel %vm1242_vm3, %v6497_v30, 0.0 }
 0x4d0   :  { %1713 = vadd.xlane.f32.xlu0 %v1712_v6 }
 0x4d2   :  { %v6499_v58 = vpop.eup %6498 }
 0x4d3   :  { %v1715_v18 = vsel %vm1242_vm3, %v6499_v58, 0.0 }
 0x4d4   :  { %1716 = vadd.xlane.f32.xlu1 %v1715_v18 }
 0x555   :  { %v1708_v1 = vpop.xlane.xlu0 %1707 }
 0x556   :  { %6500 = vrcp.f32 %v1708_v1 }
 0x559   :  { %v1711_v20 = vpop.xlane.xlu1 %1710 }
 0x55a   :  { %6502 = vrcp.f32 %v1711_v20 }
 0x55d   :  { %v1714_v5 = vpop.xlane.xlu0 %1713 }
 0x55e   :  { %6504 = vrcp.f32 %v1714_v5 }
 0x560   :  { %v6501_v34 = vpop.eup %6500 }
 0x561   :  { %v1719_v7 = vmul.f32 %v6501_v34, %v6493_v40  ;;  %v1717_v8 = vpop.xlane.xlu1 %1716  ;;  %v5692_v40 = vpack.c.bf16 %v6908_v24, %v6908_v24 }
 0x562   :  { %6506 = vrcp.f32 %v1717_v8 }
 0x563   :  { %v1726_v43 = vpack.c.bf16 %v1719_v7, %v1719_v7 }
 0x564   :  { %v6503_v59 = vpop.eup %6502 }
 0x565   :  { %v1721_v36 = vmul.f32 %v6503_v59, %v6495_v55  ;;  %6089 = vmatmul.mubr.msk.bf16.vlgmr.msra.gmra.mrb[72].mxu0 %vm1242_vm3, %v1726_v43 }
 0x566   :  { %6099 = vmatpush3.bf16.msra.mxu0 %v6983_v4  ;;  %6100 = vmatprep.mubr.msk.bf16.mxu0 %vm6684_vm1, %v7635_v14  ;;  %v5690_v4 = vpack.c.bf16 %v6891_v11, %v6891_v11  ;;  %v5686_v11 = vpack.c.bf16 %v6829_v41, %v6829_v41  ;;  %v5688_v41 = vpack.c.bf16 %v6845_v48, %v6845_v48 }
 0x567   :  { %v1727_v39 = vpack.c.bf16 %v1721_v36, %v1721_v36  ;;  %6110 = vmatprep.subr.bf16.mxu0 %v7635_v14 }
 0x568   :  { %v6505_v22 = vpop.eup %6504 }
 0x569   :  { %v1723_v56 = vmul.f32 %v6505_v22, %v6497_v30  ;;  %6095 = vmatmul.mubr.msk.bf16.vlgmr.msra.gmra.mrb[72].mxu1 %vm1242_vm3, %v1727_v39 }
 0x56a   :  { %6105 = vmatpush3.bf16.msra.mxu1 %v6989_v31  ;;  %6106 = vmatprep.mubr.msk.bf16.mxu1 %vm6684_vm1, %v7635_v14  ;;  %v5691_v31 = vpack.c.bf16 %v6895_v15, %v6895_v15  ;;  %v5687_v15 = vpack.c.bf16 %v6835_v33, %v6835_v33  ;;  %v5689_v33 = vpack.c.bf16 %v6851_v51, %v6851_v51 }
 0x56b   :  { %v1728_v60 = vpack.c.bf16 %v1723_v56, %v1723_v56  ;;  %6116 = vmatprep.subr.bf16.mxu1 %v7635_v14 }
 0x56c   :  { %v6507_v10 = vpop.eup %6506 }
 0x56d   :  { %v1725_v3 = vmul.f32 %v6507_v10, %v6499_v58  ;;  %6101 = vmatmul.mubr.msk.bf16.vlgmr.msra.gmra.mrb[76].mxu0 %vm1242_vm3, %v1728_v60 }
 0x56e   :  { %6112 = vmatprep.mubr.msk.bf16.mxu0 %vm6684_vm1, %v7635_v14 }
 0x56f   :  { %6111 = vmatpush3.bf16.xpose.msra.mxu0 %v5690_v4  ;;  %v1729_v0 = vpack.c.bf16 %v1725_v3, %v1725_v3 }
 0x570   :  { %6122 = vmatprep.subr.bf16.mxu0 %v7635_v14 }
 0x571   :  { %6107 = vmatmul.mubr.msk.bf16.vlgmr.msra.gmra.mrb[76].mxu1 %vm1242_vm3, %v1729_v0 }
 0x572   :  { %6118 = vmatprep.mubr.msk.bf16.mxu1 %vm6684_vm1, %v7635_v14 }
 0x573   :  { %6117 = vmatpush3.bf16.xpose.msra.mxu1 %v5691_v31 }
 0x574   :  { %6128 = vmatprep.subr.bf16.mxu1 %v7635_v14 }
 0x576   :  { %6113 = vmatmul.mubr.bf16.vlgmr.msra.gmra.mrb[80].mxu0 %v5686_v11 }
 0x577   :  { %6123 = vmatpush3.bf16.xpose.msra.mxu0 %v5692_v40  ;;  %6124 = vmatprep.mubr.msk.bf16.mxu0 %vm6684_vm1, %v7635_v14 }
 0x578   :  { %6134 = vmatprep.subr.bf16.mxu0 %v7635_v14 }
 0x57a   :  { %6119 = vmatmul.mubr.bf16.vlgmr.msra.gmra.mrb[80].mxu1 %v5687_v15 }
 0x57b   :  { %6129 = vmatpush3.bf16.xpose.msra.mxu1 %v5693_v2  ;;  %6130 = vmatprep.mubr.msk.bf16.mxu1 %vm6684_vm1, %v7635_v14 }
 0x57c   :  { %6140 = vmatprep.subr.bf16.mxu1 %v7635_v14 }
 0x57e   :  { %6125 = vmatmul.mubr.bf16.vlgmr.msra.gmra.mrb[84].mxu0 %v5688_v41 }
 0x57f   :  { %6135 = vmatpush3.bf16.msra.mxu0 %v6967_v16  ;;  %6136 = vmatprep.mubr.msk.bf16.mxu0 %vm6684_vm1, %v7635_v14 }
 0x580   :  { %6146 = vmatprep.subr.bf16.mxu0 %v7635_v14 }
 0x582   :  { %6131 = vmatmul.mubr.bf16.vlgmr.msra.gmra.mrb[84].mxu1 %v5689_v33 }
 0x583   :  { %6141 = vmatpush3.bf16.msra.mxu1 %v6974_v57  ;;  %6142 = vmatprep.mubr.msk.bf16.mxu1 %vm6684_vm1, %v7635_v14 }
 0x584   :  { %6152 = vmatprep.subr.bf16.mxu1 %v7635_v14 }
 0x638   :  { %v7175_v48 = vpop.f32.mrb[72].mxu0 }
 0x639   :  { %v6090_v24 = vpop.f32.mrb[73].mxu0 }
 0x63a   :  { %v1773_v27 = vpop.f32.mrb[74].mxu0 }
 0x63b   :  { %v6091_v16 = vpop.f32.mrb[75].mxu0 }
 0x63c   :  { %v7177_v23 = vpop.f32.mrb[72].mxu1 }
 0x63d   :  { %v5760_v51 = vpack.c.bf16 %v7177_v23, %v7175_v48  ;;  %v6096_v55 = vpop.f32.mrb[73].mxu1  ;;  %v6423_v48 = vld [vmem:[#allocation5 + $0xd0] sm:$0xff]   ;;  %v6424_v23 = vld [vmem:[#allocation5 + $0x18] sm:$0xff]  }
 0x63e   :  { %v1819_v21 = vpop.f32.mrb[74].mxu1 }
 0x63f   :  { %v6097_v30 = vpop.f32.mrb[75].mxu1 }
 0x640   :  { %v7181_v6 = vpop.f32.mrb[76].mxu0 }
 0x641   :  { %v6102_v57 = vpop.f32.mrb[77].mxu0 }
 0x642   :  { %v1865_v58 = vpop.f32.mrb[78].mxu0 }
 0x643   :  { %v6103_v18 = vpop.f32.mrb[79].mxu0 }
 0x644   :  { %v7183_v1 = vpop.f32.mrb[76].mxu1 }
 0x645   :  { %v5761_v20 = vpack.c.bf16 %v7183_v1, %v7181_v6  ;;  %v6108_v5 = vpop.f32.mrb[77].mxu1  ;;  %v6450_v6 = vld [vmem:[#allocation5 + $0x158] sm:$0xff]   ;;  %v6465_v1 = vld [vmem:[#allocation5 + $0x190] sm:$0xff]  }
 0x646   :  { %v1911_v34 = vpop.f32.mrb[78].mxu1 }
 0x647   :  { %v6109_v7 = vpop.f32.mrb[79].mxu1 }
 0x649   :  { %v1990_v8 = vpop.f32.mrb[80].mxu0 }
 0x64a   :  { %v2116_v43 = vmul.f32 0.17677669, %v1990_v8  ;;  %v6114_v59 = vpop.f32.mrb[81].mxu0 }
 0x64b   :  { %v1993_v36 = vpop.f32.mrb[82].mxu0 }
 0x64c   :  { %v6115_v39 = vpop.f32.mrb[83].mxu0  ;;  %v2120_v22 = vsel %vm1242_vm3, %v2116_v43, -inf }
 0x64d   :  { %v2030_v56 = vpop.f32.mrb[80].mxu1  ;;  %2121 = vmax.xlane.f32.xlu0 %v2120_v22 }
 0x64e   :  { %v2117_v60 = vmul.f32 0.17677669, %v2030_v56  ;;  %v6120_v10 = vpop.f32.mrb[81].mxu1 }
 0x64f   :  { %v2033_v4 = vpop.f32.mrb[82].mxu1 }
 0x650   :  { %v6121_v3 = vpop.f32.mrb[83].mxu1  ;;  %v2123_v0 = vsel %vm1242_vm3, %v2117_v60, -inf }
 0x651   :  { %2124 = vmax.xlane.f32.xlu1 %v2123_v0  ;;  %v2070_v31 = vpop.f32.mrb[84].mxu0 }
 0x652   :  { %v2118_v11 = vmul.f32 0.17677669, %v2070_v31  ;;  %v6126_v40 = vpop.f32.mrb[85].mxu0 }
 0x653   :  { %v2073_v15 = vpop.f32.mrb[86].mxu0 }
 0x654   :  { %v6127_v2 = vpop.f32.mrb[87].mxu0  ;;  %v2126_v41 = vsel %vm1242_vm3, %v2118_v11, -inf }
 0x655   :  { %v2110_v33 = vpop.f32.mrb[84].mxu1  ;;  %2127 = vmax.xlane.f32.xlu0 %v2126_v41 }
 0x656   :  { %v2119_v24 = vmul.f32 0.17677669, %v2110_v33  ;;  %v6132_v27 = vpop.f32.mrb[85].mxu1 }
 0x657   :  { %v2113_v16 = vpop.f32.mrb[86].mxu1 }
 0x658   :  { %v6133_v55 = vpop.f32.mrb[87].mxu1  ;;  %v2129_v21 = vsel %vm1242_vm3, %v2119_v24, -inf }
 0x659   :  { %2130 = vmax.xlane.f32.xlu1 %v2129_v21 }
 0x6da   :  { %v2122_v30 = vpop.xlane.xlu0 %2121 }
 0x6db   :  { %v2132_v57 = vsub.f32 %v2116_v43, %v2122_v30 }
 0x6dd   :  { %v2136_v58 = vmul.f32 1.442695, %v2132_v57 }
 0x6de   :  { %v2125_v18 = vpop.xlane.xlu1 %2124 }
 0x6df   :  { %6508 = vpow2.f32 %v2136_v58  ;;  %v2133_v5 = vsub.f32 %v2117_v60, %v2125_v18 }
 0x6e1   :  { %v2138_v34 = vmul.f32 1.442695, %v2133_v5 }
 0x6e2   :  { %v2128_v7 = vpop.xlane.xlu0 %2127 }
 0x6e3   :  { %6510 = vpow2.f32 %v2138_v34  ;;  %v2134_v8 = vsub.f32 %v2118_v11, %v2128_v7  ;;  %v5704_v34 = vpack.c.bf16 %v6911_v25, %v6911_v25  ;;  %v5705_v7 = vpack.c.bf16 %v6919_v29, %v6919_v29 }
 0x6e5   :  { %v2140_v59 = vmul.f32 1.442695, %v2134_v8 }
 0x6e6   :  { %v2131_v36 = vpop.xlane.xlu1 %2130 }
 0x6e7   :  { %6512 = vpow2.f32 %v2140_v59  ;;  %v2135_v39 = vsub.f32 %v2119_v24, %v2131_v36 }
 0x6e9   :  { %v6509_v22 = vpop.eup %6508  ;;  %v2142_v56 = vmul.f32 1.442695, %v2135_v39 }
 0x6ea   :  { %v2144_v10 = vsel %vm1242_vm3, %v6509_v22, 0.0 }
 0x6eb   :  { %6514 = vpow2.f32 %v2142_v56  ;;  %2145 = vadd.xlane.f32.xlu0 %v2144_v10 }
 0x6ed   :  { %v6511_v4 = vpop.eup %6510 }
 0x6ee   :  { %v2147_v43 = vsel %vm1242_vm3, %v6511_v4, 0.0 }
 0x6ef   :  { %2148 = vadd.xlane.f32.xlu1 %v2147_v43 }
 0x6f1   :  { %v6513_v3 = vpop.eup %6512 }
 0x6f2   :  { %v2150_v60 = vsel %vm1242_vm3, %v6513_v3, 0.0 }
 0x6f3   :  { %2151 = vadd.xlane.f32.xlu0 %v2150_v60 }
 0x6f5   :  { %v6515_v0 = vpop.eup %6514 }
 0x6f6   :  { %v2153_v31 = vsel %vm1242_vm3, %v6515_v0, 0.0 }
 0x6f7   :  { %2154 = vadd.xlane.f32.xlu1 %v2153_v31 }
 0x778   :  { %v2146_v11 = vpop.xlane.xlu0 %2145 }
 0x779   :  { %6516 = vrcp.f32 %v2146_v11 }
 0x77c   :  { %v2149_v40 = vpop.xlane.xlu1 %2148 }
 0x77d   :  { %6518 = vrcp.f32 %v2149_v40 }
 0x780   :  { %v2152_v15 = vpop.xlane.xlu0 %2151 }
 0x781   :  { %6520 = vrcp.f32 %v2152_v15 }
 0x783   :  { %v6517_v2 = vpop.eup %6516 }
 0x784   :  { %v2157_v41 = vmul.f32 %v6517_v2, %v6509_v22  ;;  %v2155_v33 = vpop.xlane.xlu1 %2154 }
 0x785   :  { %6522 = vrcp.f32 %v2155_v33 }
 0x786   :  { %v2164_v24 = vpack.c.bf16 %v2157_v41, %v2157_v41 }
 0x787   :  { %v6519_v27 = vpop.eup %6518 }
 0x788   :  { %v2159_v16 = vmul.f32 %v6519_v27, %v6511_v4  ;;  %6137 = vmatmul.mubr.msk.bf16.vlgmr.msra.gmra.mrb[88].mxu0 %vm1242_vm3, %v2164_v24 }
 0x789   :  { %6147 = vmatpush3.bf16.msra.mxu0 %v6992_v61  ;;  %6148 = vmatprep.mubr.msk.bf16.mxu0 %vm6684_vm1, %v7635_v14  ;;  %v5702_v61 = vpack.c.bf16 %v6893_v12, %v6893_v12  ;;  %v5698_v12 = vpack.c.bf16 %v6831_v42, %v6831_v42  ;;  %v5700_v42 = vpack.c.bf16 %v6847_v49, %v6847_v49 }
 0x78a   :  { %v2165_v55 = vpack.c.bf16 %v2159_v16, %v2159_v16  ;;  %6158 = vmatprep.subr.bf16.mxu0 %v7635_v14 }
 0x78b   :  { %v6521_v21 = vpop.eup %6520 }
 0x78c   :  { %v2161_v30 = vmul.f32 %v6521_v21, %v6513_v3  ;;  %6143 = vmatmul.mubr.msk.bf16.vlgmr.msra.gmra.mrb[88].mxu1 %vm1242_vm3, %v2165_v55 }
 0x78d   :  { %6153 = vmatpush3.bf16.msra.mxu1 %v6998_v9  ;;  %6154 = vmatprep.mubr.msk.bf16.mxu1 %vm6684_vm1, %v7635_v14  ;;  %v5703_v9 = vpack.c.bf16 %v6899_v19, %v6899_v19  ;;  %v5699_v19 = vpack.c.bf16 %v6839_v45, %v6839_v45  ;;  %v5701_v45 = vpack.c.bf16 %v6855_v53, %v6855_v53 }
 0x78e   :  { %v2166_v57 = vpack.c.bf16 %v2161_v30, %v2161_v30  ;;  %6164 = vmatprep.subr.bf16.mxu1 %v7635_v14 }
 0x78f   :  { %v6523_v58 = vpop.eup %6522 }
 0x790   :  { %v2163_v18 = vmul.f32 %v6523_v58, %v6515_v0  ;;  %6149 = vmatmul.mubr.msk.bf16.vlgmr.msra.gmra.mrb[92].mxu0 %vm1242_vm3, %v2166_v57 }
 0x791   :  { %6160 = vmatprep.mubr.msk.bf16.mxu0 %vm6684_vm1, %v7635_v14 }
 0x792   :  { %6159 = vmatpush3.bf16.xpose.msra.mxu0 %v5702_v61  ;;  %v2167_v5 = vpack.c.bf16 %v2163_v18, %v2163_v18 }
 0x793   :  { %6170 = vmatprep.subr.bf16.mxu0 %v7635_v14 }
 0x794   :  { %6155 = vmatmul.mubr.msk.bf16.vlgmr.msra.gmra.mrb[92].mxu1 %vm1242_vm3, %v2167_v5 }
 0x795   :  { %6166 = vmatprep.mubr.msk.bf16.mxu1 %vm6684_vm1, %v7635_v14 }
 0x796   :  { %6165 = vmatpush3.bf16.xpose.msra.mxu1 %v5703_v9 }
 0x797   :  { %6176 = vmatprep.subr.bf16.mxu1 %v7635_v14 }
 0x799   :  { %6161 = vmatmul.mubr.bf16.vlgmr.msra.gmra.mrb[96].mxu0 %v5698_v12 }
 0x79a   :  { %6171 = vmatpush3.bf16.xpose.msra.mxu0 %v5704_v34  ;;  %6172 = vmatprep.mubr.msk.bf16.mxu0 %vm6684_vm1, %v7635_v14 }
 0x79b   :  { %6182 = vmatprep.subr.bf16.mxu0 %v7635_v14 }
 0x79d   :  { %6167 = vmatmul.mubr.bf16.vlgmr.msra.gmra.mrb[96].mxu1 %v5699_v19 }
 0x79e   :  { %6177 = vmatpush3.bf16.xpose.msra.mxu1 %v5705_v7  ;;  %6178 = vmatprep.mubr.msk.bf16.mxu1 %vm6684_vm1, %v7635_v14 }
 0x79f   :  { %6188 = vmatprep.subr.bf16.mxu1 %v7635_v14 }
 0x7a1   :  { %6173 = vmatmul.mubr.bf16.vlgmr.msra.gmra.mrb[100].mxu0 %v5700_v42 }
 0x7a2   :  { %6183 = vmatpush3.bf16.msra.mxu0 %v6970_v38  ;;  %6184 = vmatprep.mubr.msk.bf16.mxu0 %vm6684_vm1, %v7635_v14 }
 0x7a3   :  { %6194 = vmatprep.subr.bf16.mxu0 %v7635_v14 }
 0x7a5   :  { %6179 = vmatmul.mubr.bf16.vlgmr.msra.gmra.mrb[100].mxu1 %v5701_v45 }
 0x7a6   :  { %6189 = vmatpush3.bf16.msra.mxu1 %v6977_v26  ;;  %6190 = vmatprep.mubr.msk.bf16.mxu1 %vm6684_vm1, %v7635_v14 }
 0x7a7   :  { %6200 = vmatprep.subr.bf16.mxu1 %v7635_v14 }
 0x85b   :  { %v7243_v49 = vpop.f32.mrb[88].mxu0 }
 0x85c   :  { %v6138_v25 = vpop.f32.mrb[89].mxu0 }
 0x85d   :  { %v2211_v29 = vpop.f32.mrb[90].mxu0 }
 0x85e   :  { %v6139_v38 = vpop.f32.mrb[91].mxu0 }
 0x85f   :  { %v7245_v8 = vpop.f32.mrb[88].mxu1 }
 0x860   :  { %v5762_v53 = vpack.c.bf16 %v7245_v8, %v7243_v49  ;;  %v6144_v59 = vpop.f32.mrb[89].mxu1  ;;  %v6466_v49 = vld [vmem:[#allocation5 + $0x1d8] sm:$0xff]   ;;  %v6452_v8 = vld [vmem:[#allocation5 + $0x160] sm:$0xff]  }
 0x861   :  { %v2257_v36 = vpop.f32.mrb[90].mxu1 }
 0x862   :  { %v6145_v39 = vpop.f32.mrb[91].mxu1 }
 0x863   :  { %v7249_v22 = vpop.f32.mrb[92].mxu0 }
 0x864   :  { %v6150_v26 = vpop.f32.mrb[93].mxu0 }
 0x865   :  { %v2303_v56 = vpop.f32.mrb[94].mxu0 }
 0x866   :  { %v6151_v10 = vpop.f32.mrb[95].mxu0 }
 0x867   :  { %v7251_v4 = vpop.f32.mrb[92].mxu1 }
 0x868   :  { %v5763_v43 = vpack.c.bf16 %v7251_v4, %v7249_v22  ;;  %v6156_v3 = vpop.f32.mrb[93].mxu1  ;;  %v6457_v22 = vld [vmem:[#allocation5 + $0x130] sm:$0xff]   ;;  %v6458_v4 = vld [vmem:[#allocation5 + $0x178] sm:$0xff]  }
 0x869   :  { %v2349_v60 = vpop.f32.mrb[94].mxu1 }
 0x86a   :  { %v6157_v0 = vpop.f32.mrb[95].mxu1 }
 0x86c   :  { %v2428_v31 = vpop.f32.mrb[96].mxu0 }
 0x86d   :  { %v2554_v11 = vmul.f32 0.17677669, %v2428_v31  ;;  %v6162_v40 = vpop.f32.mrb[97].mxu0 }
 0x86e   :  { %v2431_v15 = vpop.f32.mrb[98].mxu0 }
 0x86f   :  { %v6163_v2 = vpop.f32.mrb[99].mxu0  ;;  %v2558_v41 = vsel %vm1242_vm3, %v2554_v11, -inf }
 0x870   :  { %v2468_v33 = vpop.f32.mrb[96].mxu1  ;;  %2559 = vmax.xlane.f32.xlu0 %v2558_v41 }
 0x871   :  { %v2555_v24 = vmul.f32 0.17677669, %v2468_v33  ;;  %v6168_v27 = vpop.f32.mrb[97].mxu1 }
 0x872   :  { %v2471_v16 = vpop.f32.mrb[98].mxu1 }
 0x873   :  { %v6169_v55 = vpop.f32.mrb[99].mxu1  ;;  %v2561_v21 = vsel %vm1242_vm3, %v2555_v24, -inf }
 0x874   :  { %2562 = vmax.xlane.f32.xlu1 %v2561_v21  ;;  %v2508_v30 = vpop.f32.mrb[100].mxu0 }
 0x875   :  { %v2556_v57 = vmul.f32 0.17677669, %v2508_v30  ;;  %v6174_v58 = vpop.f32.mrb[101].mxu0 }
 0x876   :  { %v2511_v61 = vpop.f32.mrb[102].mxu0 }
 0x877   :  { %v6175_v18 = vpop.f32.mrb[103].mxu0  ;;  %v2564_v5 = vsel %vm1242_vm3, %v2556_v57, -inf }
 0x878   :  { %v2548_v9 = vpop.f32.mrb[100].mxu1  ;;  %2565 = vmax.xlane.f32.xlu0 %v2564_v5 }
 0x879   :  { %v2557_v12 = vmul.f32 0.17677669, %v2548_v9  ;;  %v6180_v34 = vpop.f32.mrb[101].mxu1 }
 0x87a   :  { %v2551_v19 = vpop.f32.mrb[102].mxu1 }
 0x87b   :  { %v6181_v7 = vpop.f32.mrb[103].mxu1  ;;  %v2567_v42 = vsel %vm1242_vm3, %v2557_v12, -inf }
 0x87c   :  { %2568 = vmax.xlane.f32.xlu1 %v2567_v42  ;;  %v5716_v42 = vpack.c.bf16 %v6939_v17, %v6939_v17 }
 0x8fd   :  { %v2560_v45 = vpop.xlane.xlu0 %2559 }
 0x8fe   :  { %v2570_v25 = vsub.f32 %v2554_v11, %v2560_v45  ;;  %v5717_v45 = vpack.c.bf16 %v6945_v46, %v6945_v46  ;;  %v7655_v46 = vld [vmem:[#allocation39_spill] sm:$0xff] }
 0x900   :  { %v2574_v29 = vmul.f32 1.442695, %v2570_v25  ;;  %v7653_v25 = vld [vmem:[#allocation37_spill] sm:$0xff] }
 0x901   :  { %v2563_v38 = vpop.xlane.xlu1 %2562 }
 0x902   :  { %6524 = vpow2.f32 %v2574_v29  ;;  %v2571_v59 = vsub.f32 %v2555_v24, %v2563_v38 }
 0x904   :  { %v2576_v36 = vmul.f32 1.442695, %v2571_v59 }
 0x905   :  { %v2566_v39 = vpop.xlane.xlu0 %2565 }
 0x906   :  { %6526 = vpow2.f32 %v2576_v36  ;;  %v2572_v26 = vsub.f32 %v2556_v57, %v2566_v39 }
 0x908   :  { %v2578_v56 = vmul.f32 1.442695, %v2572_v26 }
 0x909   :  { %v2569_v10 = vpop.xlane.xlu1 %2568 }
 0x90a   :  { %6528 = vpow2.f32 %v2578_v56  ;;  %v2573_v3 = vsub.f32 %v2557_v12, %v2569_v10 }
 0x90c   :  { %v6525_v60 = vpop.eup %6524  ;;  %v2580_v0 = vmul.f32 1.442695, %v2573_v3 }
 0x90d   :  { %v2582_v31 = vsel %vm1242_vm3, %v6525_v60, 0.0 }
 0x90e   :  { %6530 = vpow2.f32 %v2580_v0  ;;  %2583 = vadd.xlane.f32.xlu0 %v2582_v31 }
 0x910   :  { %v6527_v40 = vpop.eup %6526 }
 0x911   :  { %v2585_v11 = vsel %vm1242_vm3, %v6527_v40, 0.0 }
 0x912   :  { %2586 = vadd.xlane.f32.xlu1 %v2585_v11 }
 0x914   :  { %v6529_v15 = vpop.eup %6528 }
 0x915   :  { %v2588_v2 = vsel %vm1242_vm3, %v6529_v15, 0.0 }
 0x916   :  { %2589 = vadd.xlane.f32.xlu0 %v2588_v2 }
 0x918   :  { %v6531_v41 = vpop.eup %6530 }
 0x919   :  { %v2591_v33 = vsel %vm1242_vm3, %v6531_v41, 0.0 }
 0x91a   :  { %2592 = vadd.xlane.f32.xlu1 %v2591_v33 }
 0x99b   :  { %v2584_v24 = vpop.xlane.xlu0 %2583 }
 0x99c   :  { %6532 = vrcp.f32 %v2584_v24 }
 0x99f   :  { %v2587_v27 = vpop.xlane.xlu1 %2586 }
 0x9a0   :  { %6534 = vrcp.f32 %v2587_v27 }
 0x9a3   :  { %v2590_v16 = vpop.xlane.xlu0 %2589 }
 0x9a4   :  { %6536 = vrcp.f32 %v2590_v16 }
 0x9a6   :  { %v6533_v55 = vpop.eup %6532 }
 0x9a7   :  { %v2595_v21 = vmul.f32 %v6533_v55, %v6525_v60  ;;  %v2593_v30 = vpop.xlane.xlu1 %2592 }
 0x9a8   :  { %6538 = vrcp.f32 %v2593_v30 }
 0x9a9   :  { %v2602_v57 = vpack.c.bf16 %v2595_v21, %v2595_v21 }
 0x9aa   :  { %v6535_v58 = vpop.eup %6534 }
 0x9ab   :  { %v2597_v61 = vmul.f32 %v6535_v58, %v6527_v40  ;;  %6185 = vmatmul.mubr.msk.bf16.vlgmr.msra.gmra.mrb[104].mxu0 %vm1242_vm3, %v2602_v57 }
 0x9ac   :  { %6195 = vmatpush3.bf16.msra.mxu0 %v6995_v35  ;;  %6196 = vmatprep.mubr.msk.bf16.mxu0 %vm6684_vm1, %v7635_v14  ;;  %v5714_v35 = vpack.c.bf16 %v6917_v28, %v6917_v28  ;;  %v5710_v28 = vpack.c.bf16 %v6849_v50, %v6849_v50  ;;  %v7652_v50 = vld [vmem:[#allocation15_spill] sm:$0xff] }
 0x9ad   :  { %v2603_v18 = vpack.c.bf16 %v2597_v61, %v2597_v61  ;;  %6206 = vmatprep.subr.bf16.mxu0 %v7635_v14  ;;  %v5712_v17 = vpack.c.bf16 %v7652_v50, %v7652_v50 }
 0x9ae   :  { %v6537_v5 = vpop.eup %6536 }
 0x9af   :  { %v2599_v9 = vmul.f32 %v6537_v5, %v6529_v15  ;;  %6191 = vmatmul.mubr.msk.bf16.vlgmr.msra.gmra.mrb[104].mxu1 %vm1242_vm3, %v2603_v18 }
 0x9b0   :  { %6201 = vmatpush3.bf16.msra.mxu1 %v7001_v13  ;;  %6202 = vmatprep.mubr.msk.bf16.mxu1 %vm6684_vm1, %v7635_v14  ;;  %v5715_v13 = vpack.c.bf16 %v6925_v32, %v6925_v32  ;;  %v5711_v32 = vpack.c.bf16 %v6857_v54, %v6857_v54  ;;  %v7654_v54 = vld [vmem:[#allocation19_spill] sm:$0xff] }
 0x9b1   :  { %v2604_v12 = vpack.c.bf16 %v2599_v9, %v2599_v9  ;;  %6212 = vmatprep.subr.bf16.mxu1 %v7635_v14  ;;  %v5713_v29 = vpack.c.bf16 %v7654_v54, %v7654_v54 }
 0x9b2   :  { %v6539_v34 = vpop.eup %6538 }
 0x9b3   :  { %v2601_v19 = vmul.f32 %v6539_v34, %v6531_v41  ;;  %6197 = vmatmul.mubr.msk.bf16.vlgmr.msra.gmra.mrb[108].mxu0 %vm1242_vm3, %v2604_v12 }
 0x9b4   :  { %6208 = vmatprep.mubr.msk.bf16.mxu0 %vm6684_vm1, %v7635_v14 }
 0x9b5   :  { %6207 = vmatpush3.bf16.xpose.msra.mxu0 %v5714_v35  ;;  %v2605_v7 = vpack.c.bf16 %v2601_v19, %v2601_v19 }
 0x9b6   :  { %6218 = vmatprep.subr.bf16.mxu0 %v7635_v14 }
 0x9b7   :  { %6203 = vmatmul.mubr.msk.bf16.vlgmr.msra.gmra.mrb[108].mxu1 %vm1242_vm3, %v2605_v7 }
 0x9b8   :  { %6214 = vmatprep.mubr.msk.bf16.mxu1 %vm6684_vm1, %v7635_v14 }
 0x9b9   :  { %6213 = vmatpush3.bf16.xpose.msra.mxu1 %v5715_v13 }
 0x9ba   :  { %6224 = vmatprep.subr.bf16.mxu1 %v7635_v14 }
 0x9bc   :  { %6209 = vmatmul.mubr.bf16.vlgmr.msra.gmra.mrb[112].mxu0 %v5710_v28 }
 0x9bd   :  { %6219 = vmatpush3.bf16.xpose.msra.mxu0 %v5716_v42  ;;  %6220 = vmatprep.mubr.msk.bf16.mxu0 %vm6684_vm1, %v7635_v14 }
 0x9be   :  { %6230 = vmatprep.subr.bf16.mxu0 %v7635_v14 }
 0x9c0   :  { %6215 = vmatmul.mubr.bf16.vlgmr.msra.gmra.mrb[112].mxu1 %v5711_v32 }
 0x9c1   :  { %6225 = vmatpush3.bf16.xpose.msra.mxu1 %v5717_v45  ;;  %6226 = vmatprep.mubr.msk.bf16.mxu1 %vm6684_vm1, %v7635_v14 }
 0x9c2   :  { %6236 = vmatprep.subr.bf16.mxu1 %v7635_v14 }
 0x9c4   :  { %6221 = vmatmul.mubr.bf16.vlgmr.msra.gmra.mrb[116].mxu0 %v5712_v17 }
 0x9c5   :  { %6231 = vmatpush3.bf16.msra.mxu0 %v7653_v25  ;;  %6232 = vmatprep.mubr.msk.bf16.mxu0 %vm6684_vm1, %v7635_v14 }
 0x9c6   :  { %6242 = vmatprep.subr.bf16.mxu0 %v7635_v14 }
 0x9c8   :  { %6227 = vmatmul.mubr.bf16.vlgmr.msra.gmra.mrb[116].mxu1 %v5713_v29 }
 0x9c9   :  { %6237 = vmatpush3.bf16.msra.mxu1 %v7655_v46  ;;  %6238 = vmatprep.mubr.msk.bf16.mxu1 %vm6684_vm1, %v7635_v14 }
 0x9ca   :  { %6248 = vmatprep.subr.bf16.mxu1 %v7635_v14 }
 0xa7e   :  { %v7311_v38 = vpop.f32.mrb[104].mxu0 }
 0xa7f   :  { %v6186_v59 = vpop.f32.mrb[105].mxu0 }
 0xa80   :  { %v2649_v36 = vpop.f32.mrb[106].mxu0 }
 0xa81   :  { %v6187_v39 = vpop.f32.mrb[107].mxu0 }
 0xa82   :  { %v7313_v26 = vpop.f32.mrb[104].mxu1 }
 0xa83   :  { %v5764_v56 = vpack.c.bf16 %v7313_v26, %v7311_v38  ;;  %v6192_v10 = vpop.f32.mrb[105].mxu1  ;;  %v6430_v38 = vld [vmem:[#allocation5 + $0x68] sm:$0xff]   ;;  %v6431_v26 = vld [vmem:[#allocation5 + $0xe0] sm:$0xff]  }
 0xa84   :  { %v2695_v3 = vpop.f32.mrb[106].mxu1 }
 0xa85   :  { %v6193_v60 = vpop.f32.mrb[107].mxu1 }
 0xa86   :  { %v7317_v0 = vpop.f32.mrb[108].mxu0 }
 0xa87   :  { %v6198_v31 = vpop.f32.mrb[109].mxu0 }
 0xa88   :  { %v2741_v40 = vpop.f32.mrb[110].mxu0 }
 0xa89   :  { %v6199_v11 = vpop.f32.mrb[111].mxu0 }
 0xa8a   :  { %v7319_v15 = vpop.f32.mrb[108].mxu1 }
 0xa8b   :  { %v5765_v2 = vpack.c.bf16 %v7319_v15, %v7317_v0  ;;  %v6204_v41 = vpop.f32.mrb[109].mxu1  ;;  %v6469_v0 = vld [vmem:[#allocation5 + $0x1a0] sm:$0xff]   ;;  %v6455_v15 = vld [vmem:[#allocation5 + $0x128] sm:$0xff]  }
 0xa8c   :  { %v2787_v33 = vpop.f32.mrb[110].mxu1 }
 0xa8d   :  { %v6205_v24 = vpop.f32.mrb[111].mxu1 }
 0xa8f   :  { %v2866_v27 = vpop.f32.mrb[112].mxu0 }
 0xa90   :  { %v2992_v16 = vmul.f32 0.17677669, %v2866_v27  ;;  %v6210_v55 = vpop.f32.mrb[113].mxu0 }
 0xa91   :  { %v2869_v21 = vpop.f32.mrb[114].mxu0 }
 0xa92   :  { %v6211_v30 = vpop.f32.mrb[115].mxu0  ;;  %v2996_v57 = vsel %vm1242_vm3, %v2992_v16, -inf }
 0xa93   :  { %v2906_v58 = vpop.f32.mrb[112].mxu1  ;;  %2997 = vmax.xlane.f32.xlu0 %v2996_v57 }
 0xa94   :  { %v2993_v61 = vmul.f32 0.17677669, %v2906_v58  ;;  %v6216_v18 = vpop.f32.mrb[113].mxu1 }
 0xa95   :  { %v2909_v5 = vpop.f32.mrb[114].mxu1 }
 0xa96   :  { %v6217_v9 = vpop.f32.mrb[115].mxu1  ;;  %v2999_v12 = vsel %vm1242_vm3, %v2993_v61, -inf }
 0xa97   :  { %3000 = vmax.xlane.f32.xlu1 %v2999_v12  ;;  %v2946_v34 = vpop.f32.mrb[116].mxu0 }
 0xa98   :  { %v2994_v35 = vmul.f32 0.17677669, %v2946_v34  ;;  %v6222_v19 = vpop.f32.mrb[117].mxu0 }
 0xa99   :  { %v2949_v7 = vpop.f32.mrb[118].mxu0  ;;  %v7656_v19 = vld [vmem:[#allocation45_spill] sm:$0xff] }
 0xa9a   :  { %v6223_v13 = vpop.f32.mrb[119].mxu0  ;;  %v3002_v28 = vsel %vm1242_vm3, %v2994_v35, -inf }
 0xa9b   :  { %v2986_v42 = vpop.f32.mrb[116].mxu1  ;;  %3003 = vmax.xlane.f32.xlu0 %v3002_v28 }
 0xa9c   :  { %v2995_v32 = vmul.f32 0.17677669, %v2986_v42  ;;  %v6228_v45 = vpop.f32.mrb[117].mxu1  ;;  %v7657_v42 = vld [vmem:[#allocation47_spill] sm:$0xff] }
 0xa9d   :  { %v2989_v50 = vpop.f32.mrb[118].mxu1 }
 0xa9e   :  { %v6229_v17 = vpop.f32.mrb[119].mxu1  ;;  %v3005_v25 = vsel %vm1242_vm3, %v2995_v32, -inf  ;;  %v7658_v50 = vld [vmem:[#allocation25_spill] sm:$0xff] }
 0xa9f   :  { %3006 = vmax.xlane.f32.xlu1 %v3005_v25  ;;  %v5726_v17 = vpack.c.bf16 %v7658_v50, %v7658_v50 }
 0xb20   :  { %v2998_v54 = vpop.xlane.xlu0 %2997 }
 0xb21   :  { %v3008_v29 = vsub.f32 %v2992_v16, %v2998_v54 }
 0xb23   :  { %v3012_v46 = vmul.f32 1.442695, %v3008_v29  ;;  %v7659_v29 = vld [vmem:[#allocation26_spill] sm:$0xff] }
 0xb24   :  { %v3001_v59 = vpop.xlane.xlu1 %3000 }
 0xb25   :  { %6540 = vpow2.f32 %v3012_v46  ;;  %v3009_v36 = vsub.f32 %v2993_v61, %v3001_v59  ;;  %v5727_v46 = vpack.c.bf16 %v7659_v29, %v7659_v29  ;;  %v7660_v59 = vld [vmem:[#allocation11_spill] sm:$0xff] }
 0xb27   :  { %v3014_v39 = vmul.f32 1.442695, %v3009_v36  ;;  %v5722_v36 = vpack.c.bf16 %v7660_v59, %v7660_v59 }
 0xb28   :  { %v3004_v10 = vpop.xlane.xlu0 %3003 }
 0xb29   :  { %6542 = vpow2.f32 %v3014_v39  ;;  %v3010_v3 = vsub.f32 %v2994_v35, %v3004_v10  ;;  %v7661_v39 = vld [vmem:[#allocation31_spill] sm:$0xff] }
 0xb2a   :  { %v5728_v10 = vpack.c.bf16 %v7661_v39, %v7661_v39 }
 0xb2b   :  { %v3016_v60 = vmul.f32 1.442695, %v3010_v3  ;;  %v7662_v3 = vld [vmem:[#allocation12_spill] sm:$0xff] }
 0xb2c   :  { %v3007_v31 = vpop.xlane.xlu1 %3006 }
 0xb2d   :  { %6544 = vpow2.f32 %v3016_v60  ;;  %v3011_v40 = vsub.f32 %v2995_v32, %v3007_v31  ;;  %v5723_v60 = vpack.c.bf16 %v7662_v3, %v7662_v3  ;;  %v7663_v31 = vld [vmem:[#allocation32_spill] sm:$0xff] }
 0xb2f   :  { %v6541_v11 = vpop.eup %6540  ;;  %v3018_v41 = vmul.f32 1.442695, %v3011_v40  ;;  %v5729_v40 = vpack.c.bf16 %v7663_v31, %v7663_v31 }
 0xb30   :  { %v3020_v33 = vsel %vm1242_vm3, %v6541_v11, 0.0 }
 0xb31   :  { %6546 = vpow2.f32 %v3018_v41  ;;  %3021 = vadd.xlane.f32.xlu0 %v3020_v33  ;;  %v7665_v33 = vld [vmem:[#allocation38_spill] sm:$0xff] }
 0xb33   :  { %v6543_v24 = vpop.eup %6542 }
 0xb34   :  { %v3023_v27 = vsel %vm1242_vm3, %v6543_v24, 0.0 }
 0xb35   :  { %3024 = vadd.xlane.f32.xlu1 %v3023_v27 }
 0xb37   :  { %v6545_v16 = vpop.eup %6544 }
 0xb38   :  { %v3026_v55 = vsel %vm1242_vm3, %v6545_v16, 0.0 }
 0xb39   :  { %3027 = vadd.xlane.f32.xlu0 %v3026_v55 }
 0xb3b   :  { %v6547_v21 = vpop.eup %6546 }
 0xb3c   :  { %v3029_v30 = vsel %vm1242_vm3, %v6547_v21, 0.0 }
 0xb3d   :  { %3030 = vadd.xlane.f32.xlu1 %v3029_v30 }
 0xbbe   :  { %v3022_v57 = vpop.xlane.xlu0 %3021 }
 0xbbf   :  { %6548 = vrcp.f32 %v3022_v57 }
 0xbc2   :  { %v3025_v58 = vpop.xlane.xlu1 %3024 }
 0xbc3   :  { %6550 = vrcp.f32 %v3025_v58 }
 0xbc6   :  { %v3028_v61 = vpop.xlane.xlu0 %3027 }
 0xbc7   :  { %6552 = vrcp.f32 %v3028_v61 }
 0xbc9   :  { %v6549_v18 = vpop.eup %6548 }
 0xbca   :  { %v3033_v5 = vmul.f32 %v6549_v18, %v6541_v11  ;;  %v3031_v9 = vpop.xlane.xlu1 %3030  ;;  %v7664_v11 = vld [vmem:[#allocation17_spill] sm:$0xff] }
 0xbcb   :  { %6554 = vrcp.f32 %v3031_v9  ;;  %v5724_v41 = vpack.c.bf16 %v7664_v11, %v7664_v11 }
 0xbcc   :  { %v3040_v12 = vpack.c.bf16 %v3033_v5, %v3033_v5 }
 0xbcd   :  { %v6551_v34 = vpop.eup %6550 }
 0xbce   :  { %v3035_v35 = vmul.f32 %v6551_v34, %v6543_v24  ;;  %6233 = vmatmul.mubr.msk.bf16.vlgmr.msra.gmra.mrb[120].mxu0 %vm1242_vm3, %v3040_v12  ;;  %v7666_v24 = vld [vmem:[#allocation20_spill] sm:$0xff] }
 0xbcf   :  { %6243 = vmatpush3.bf16.msra.mxu0 %v7656_v19  ;;  %6244 = vmatprep.mubr.msk.bf16.mxu0 %vm6684_vm1, %v7635_v14  ;;  %v5725_v27 = vpack.c.bf16 %v7666_v24, %v7666_v24 }
 0xbd0   :  { %v3041_v7 = vpack.c.bf16 %v3035_v35, %v3035_v35  ;;  %6254 = vmatprep.subr.bf16.mxu0 %v7635_v14 }
 0xbd1   :  { %v6553_v13 = vpop.eup %6552 }
 0xbd2   :  { %v3037_v28 = vmul.f32 %v6553_v13, %v6545_v16  ;;  %6239 = vmatmul.mubr.msk.bf16.vlgmr.msra.gmra.mrb[120].mxu1 %vm1242_vm3, %v3041_v7  ;;  %v7667_v16 = vld [vmem:[#allocation40_spill] sm:$0xff] }
 0xbd3   :  { %6249 = vmatpush3.bf16.msra.mxu1 %v7657_v42  ;;  %6250 = vmatprep.mubr.msk.bf16.mxu1 %vm6684_vm1, %v7635_v14 }
 0xbd4   :  { %v3042_v32 = vpack.c.bf16 %v3037_v28, %v3037_v28  ;;  %6260 = vmatprep.subr.bf16.mxu1 %v7635_v14 }
 0xbd5   :  { %v6555_v45 = vpop.eup %6554 }
 0xbd6   :  { %v3039_v25 = vmul.f32 %v6555_v45, %v6547_v21  ;;  %6245 = vmatmul.mubr.msk.bf16.vlgmr.msra.gmra.mrb[124].mxu0 %vm1242_vm3, %v3042_v32 }
 0xbd7   :  { %6256 = vmatprep.mubr.msk.bf16.mxu0 %vm6684_vm1, %v7635_v14 }
 0xbd8   :  { %6255 = vmatpush3.bf16.xpose.msra.mxu0 %v5726_v17  ;;  %v3043_v54 = vpack.c.bf16 %v3039_v25, %v3039_v25 }
 0xbd9   :  { %6266 = vmatprep.subr.bf16.mxu0 %v7635_v14 }
 0xbda   :  { %6251 = vmatmul.mubr.msk.bf16.vlgmr.msra.gmra.mrb[124].mxu1 %vm1242_vm3, %v3043_v54 }
 0xbdb   :  { %6262 = vmatprep.mubr.msk.bf16.mxu1 %vm6684_vm1, %v7635_v14 }
 0xbdc   :  { %6261 = vmatpush3.bf16.xpose.msra.mxu1 %v5727_v46 }
 0xbdd   :  { %6272 = vmatprep.subr.bf16.mxu1 %v7635_v14 }
 0xbdf   :  { %6257 = vmatmul.mubr.bf16.vlgmr.msra.gmra.mrb[128].mxu0 %v5722_v36 }
 0xbe0   :  { %6267 = vmatpush3.bf16.xpose.msra.mxu0 %v5728_v10  ;;  %6268 = vmatprep.mubr.msk.bf16.mxu0 %vm6684_vm1, %v7635_v14 }
 0xbe1   :  { %6278 = vmatprep.subr.bf16.mxu0 %v7635_v14 }
 0xbe3   :  { %6263 = vmatmul.mubr.bf16.vlgmr.msra.gmra.mrb[128].mxu1 %v5723_v60 }
 0xbe4   :  { %6273 = vmatpush3.bf16.xpose.msra.mxu1 %v5729_v40  ;;  %6274 = vmatprep.mubr.msk.bf16.mxu1 %vm6684_vm1, %v7635_v14 }
 0xbe5   :  { %6284 = vmatprep.subr.bf16.mxu1 %v7635_v14 }
 0xbe7   :  { %6269 = vmatmul.mubr.bf16.vlgmr.msra.gmra.mrb[132].mxu0 %v5724_v41 }
 0xbe8   :  { %6279 = vmatpush3.bf16.msra.mxu0 %v7665_v33  ;;  %6280 = vmatprep.mubr.msk.bf16.mxu0 %vm6684_vm1, %v7635_v14 }
 0xbe9   :  { %6290 = vmatprep.subr.bf16.mxu0 %v7635_v14 }
 0xbeb   :  { %6275 = vmatmul.mubr.bf16.vlgmr.msra.gmra.mrb[132].mxu1 %v5725_v27 }
 0xbec   :  { %6285 = vmatpush3.bf16.msra.mxu1 %v7667_v16  ;;  %6286 = vmatprep.mubr.msk.bf16.mxu1 %vm6684_vm1, %v7635_v14 }
 0xbed   :  { %6296 = vmatprep.subr.bf16.mxu1 %v7635_v14 }
 0xca1   :  { %v7379_v55 = vpop.f32.mrb[120].mxu0 }
 0xca2   :  { %v6234_v21 = vpop.f32.mrb[121].mxu0 }
 0xca3   :  { %v3087_v30 = vpop.f32.mrb[122].mxu0 }
 0xca4   :  { %v6235_v57 = vpop.f32.mrb[123].mxu0 }
 0xca5   :  { %v7381_v58 = vpop.f32.mrb[120].mxu1 }
 0xca6   :  { %v5766_v61 = vpack.c.bf16 %v7381_v58, %v7379_v55  ;;  %v6240_v18 = vpop.f32.mrb[121].mxu1 }
 0xca7   :  { %v3133_v5 = vpop.f32.mrb[122].mxu1 }
 0xca8   :  { %v6241_v9 = vpop.f32.mrb[123].mxu1 }
 0xca9   :  { %v7385_v12 = vpop.f32.mrb[124].mxu0 }
 0xcaa   :  { %v6246_v34 = vpop.f32.mrb[125].mxu0 }
 0xcab   :  { %v3179_v35 = vpop.f32.mrb[126].mxu0 }
 0xcac   :  { %v6247_v19 = vpop.f32.mrb[127].mxu0 }
 0xcad   :  { %v7387_v7 = vpop.f32.mrb[124].mxu1 }
 0xcae   :  { %v5767_v13 = vpack.c.bf16 %v7387_v7, %v7385_v12  ;;  %v6252_v28 = vpop.f32.mrb[125].mxu1 }
 0xcaf   :  { %v3225_v42 = vpop.f32.mrb[126].mxu1 }
 0xcb0   :  { %v6253_v32 = vpop.f32.mrb[127].mxu1 }
 0xcb2   :  { %v3304_v45 = vpop.f32.mrb[128].mxu0 }
 0xcb3   :  { %v3430_v50 = vmul.f32 0.17677669, %v3304_v45  ;;  %v6258_v17 = vpop.f32.mrb[129].mxu0 }
 0xcb4   :  { %v3307_v25 = vpop.f32.mrb[130].mxu0 }
 0xcb5   :  { %v6259_v54 = vpop.f32.mrb[131].mxu0  ;;  %v3434_v29 = vsel %vm1242_vm3, %v3430_v50, -inf }
 0xcb6   :  { %v3344_v46 = vpop.f32.mrb[128].mxu1  ;;  %3435 = vmax.xlane.f32.xlu0 %v3434_v29 }
 0xcb7   :  { %v3431_v59 = vmul.f32 0.17677669, %v3344_v46  ;;  %v6264_v36 = vpop.f32.mrb[129].mxu1 }
 0xcb8   :  { %v3347_v39 = vpop.f32.mrb[130].mxu1 }
 0xcb9   :  { %v6265_v10 = vpop.f32.mrb[131].mxu1  ;;  %v3437_v3 = vsel %vm1242_vm3, %v3431_v59, -inf }
 0xcba   :  { %3438 = vmax.xlane.f32.xlu1 %v3437_v3  ;;  %v3384_v60 = vpop.f32.mrb[132].mxu0 }
 0xcbb   :  { %v3432_v31 = vmul.f32 0.17677669, %v3384_v60  ;;  %v6270_v40 = vpop.f32.mrb[133].mxu0 }
 0xcbc   :  { %v3387_v11 = vpop.f32.mrb[134].mxu0 }
 0xcbd   :  { %v6271_v41 = vpop.f32.mrb[135].mxu0  ;;  %v3440_v33 = vsel %vm1242_vm3, %v3432_v31, -inf }
 0xcbe   :  { %v3424_v24 = vpop.f32.mrb[132].mxu1  ;;  %3441 = vmax.xlane.f32.xlu0 %v3440_v33 }
 0xcbf   :  { %v3433_v27 = vmul.f32 0.17677669, %v3424_v24  ;;  %v6276_v16 = vpop.f32.mrb[133].mxu1 }
 0xcc0   :  { %v3427_v21 = vpop.f32.mrb[134].mxu1  ;;  %v7668_v16 = vld [vmem:[#allocation46_spill] sm:$0xff] }
 0xcc1   :  { %v6277_v30 = vpop.f32.mrb[135].mxu1  ;;  %v3443_v57 = vsel %vm1242_vm3, %v3433_v27, -inf }
 0xcc2   :  { %3444 = vmax.xlane.f32.xlu1 %v3443_v57 }
 0xd43   :  { %v3436_v18 = vpop.xlane.xlu0 %3435 }
 0xd44   :  { %v3446_v5 = vsub.f32 %v3430_v50, %v3436_v18  ;;  %v7669_v18 = vld [vmem:[#allocation49_spill] sm:$0xff] }
 0xd46   :  { %v3450_v9 = vmul.f32 1.442695, %v3446_v5 }
 0xd47   :  { %v3439_v34 = vpop.xlane.xlu1 %3438 }
 0xd48   :  { %6556 = vpow2.f32 %v3450_v9  ;;  %v3447_v35 = vsub.f32 %v3431_v59, %v3439_v34  ;;  %v7670_v34 = vld [vmem:[#allocation27_spill] sm:$0xff] }
 0xd4a   :  { %v3452_v19 = vmul.f32 1.442695, %v3447_v35  ;;  %v5738_v35 = vpack.c.bf16 %v7670_v34, %v7670_v34 }
 0xd4b   :  { %v3442_v28 = vpop.xlane.xlu0 %3441 }
 0xd4c   :  { %6558 = vpow2.f32 %v3452_v19  ;;  %v3448_v42 = vsub.f32 %v3432_v31, %v3442_v28 }
 0xd4e   :  { %v3454_v32 = vmul.f32 1.442695, %v3448_v42  ;;  %v7671_v42 = vld [vmem:[#allocation29_spill] sm:$0xff] }
 0xd4f   :  { %v3445_v45 = vpop.xlane.xlu1 %3444 }
 0xd50   :  { %6560 = vpow2.f32 %v3454_v32  ;;  %v3449_v17 = vsub.f32 %v3433_v27, %v3445_v45  ;;  %v5739_v32 = vpack.c.bf16 %v7671_v42, %v7671_v42  ;;  %v7672_v45 = vld [vmem:[#allocation13_spill] sm:$0xff] }
 0xd52   :  { %v6557_v25 = vpop.eup %6556  ;;  %v3456_v54 = vmul.f32 1.442695, %v3449_v17  ;;  %v5734_v17 = vpack.c.bf16 %v7672_v45, %v7672_v45 }
 0xd53   :  { %v3458_v29 = vsel %vm1242_vm3, %v6557_v25, 0.0 }
 0xd54   :  { %6562 = vpow2.f32 %v3456_v54  ;;  %3459 = vadd.xlane.f32.xlu0 %v3458_v29  ;;  %v7674_v29 = vld [vmem:[#allocation16_spill] sm:$0xff] }
 0xd56   :  { %v6559_v46 = vpop.eup %6558 }
 0xd57   :  { %v3461_v50 = vsel %vm1242_vm3, %v6559_v46, 0.0 }
 0xd58   :  { %3462 = vadd.xlane.f32.xlu1 %v3461_v50  ;;  %v7675_v50 = vld [vmem:[#allocation35_spill] sm:$0xff] }
 0xd5a   :  { %v6561_v36 = vpop.eup %6560 }
 0xd5b   :  { %v3464_v59 = vsel %vm1242_vm3, %v6561_v36, 0.0 }
 0xd5c   :  { %3465 = vadd.xlane.f32.xlu0 %v3464_v59  ;;  %v7676_v59 = vld [vmem:[#allocation21_spill] sm:$0xff] }
 0xd5e   :  { %v6563_v39 = vpop.eup %6562 }
 0xd5f   :  { %v3467_v10 = vsel %vm1242_vm3, %v6563_v39, 0.0 }
 0xd60   :  { %3468 = vadd.xlane.f32.xlu1 %v3467_v10  ;;  %v7677_v10 = vld [vmem:[#allocation41_spill] sm:$0xff] }
 0xde1   :  { %v3460_v3 = vpop.xlane.xlu0 %3459 }
 0xde2   :  { %6564 = vrcp.f32 %v3460_v3  ;;  %v7678_v3 = vld [vmem:[#allocation23_spill] sm:$0xff] }
 0xde5   :  { %v3463_v60 = vpop.xlane.xlu1 %3462 }
 0xde6   :  { %6566 = vrcp.f32 %v3463_v60  ;;  %v5737_v60 = vpack.c.bf16 %v7678_v3, %v7678_v3 }
 0xde9   :  { %v3466_v31 = vpop.xlane.xlu0 %3465 }
 0xdea   :  { %6568 = vrcp.f32 %v3466_v31  ;;  %v7679_v31 = vld [vmem:[#allocation43_spill] sm:$0xff] }
 0xdec   :  { %v6565_v40 = vpop.eup %6564 }
 0xded   :  { %v3471_v11 = vmul.f32 %v6565_v40, %v6557_v25  ;;  %v3469_v41 = vpop.xlane.xlu1 %3468  ;;  %v7673_v25 = vld [vmem:[#allocation33_spill] sm:$0xff] }
 0xdee   :  { %6570 = vrcp.f32 %v3469_v41  ;;  %v5740_v54 = vpack.c.bf16 %v7673_v25, %v7673_v25 }
 0xdef   :  { %v3478_v33 = vpack.c.bf16 %v3471_v11, %v3471_v11 }
 0xdf0   :  { %v6567_v24 = vpop.eup %6566 }
 0xdf1   :  { %v3473_v27 = vmul.f32 %v6567_v24, %v6559_v46  ;;  %6281 = vmatmul.mubr.msk.bf16.vlgmr.msra.gmra.mrb[136].mxu0 %vm1242_vm3, %v3478_v33  ;;  %v5735_v46 = vpack.c.bf16 %v7674_v29, %v7674_v29 }
 0xdf2   :  { %6291 = vmatpush3.bf16.msra.mxu0 %v7668_v16  ;;  %6292 = vmatprep.mubr.msk.bf16.mxu0 %vm6684_vm1, %v7635_v14 }
 0xdf3   :  { %v3479_v21 = vpack.c.bf16 %v3473_v27, %v3473_v27  ;;  %6302 = vmatprep.subr.bf16.mxu0 %v7635_v14 }
 0xdf4   :  { %v6569_v30 = vpop.eup %6568 }
 0xdf5   :  { %v3475_v57 = vmul.f32 %v6569_v30, %v6561_v36  ;;  %6287 = vmatmul.mubr.msk.bf16.vlgmr.msra.gmra.mrb[136].mxu1 %vm1242_vm3, %v3479_v21  ;;  %v5741_v36 = vpack.c.bf16 %v7675_v50, %v7675_v50 }
 0xdf6   :  { %6297 = vmatpush3.bf16.msra.mxu1 %v7669_v18  ;;  %6298 = vmatprep.mubr.msk.bf16.mxu1 %vm6684_vm1, %v7635_v14 }
 0xdf7   :  { %v3480_v5 = vpack.c.bf16 %v3475_v57, %v3475_v57  ;;  %6308 = vmatprep.subr.bf16.mxu1 %v7635_v14 }
 0xdf8   :  { %v6571_v9 = vpop.eup %6570 }
 0xdf9   :  { %v3477_v19 = vmul.f32 %v6571_v9, %v6563_v39  ;;  %6293 = vmatmul.mubr.msk.bf16.vlgmr.msra.gmra.mrb[140].mxu0 %vm1242_vm3, %v3480_v5  ;;  %v5736_v39 = vpack.c.bf16 %v7676_v59, %v7676_v59 }
 0xdfa   :  { %6304 = vmatprep.mubr.msk.bf16.mxu0 %vm6684_vm1, %v7635_v14 }
 0xdfb   :  { %6303 = vmatpush3.bf16.xpose.msra.mxu0 %v5738_v35  ;;  %v3481_v28 = vpack.c.bf16 %v3477_v19, %v3477_v19 }
 0xdfc   :  { %6314 = vmatprep.subr.bf16.mxu0 %v7635_v14 }
 0xdfd   :  { %6299 = vmatmul.mubr.msk.bf16.vlgmr.msra.gmra.mrb[140].mxu1 %vm1242_vm3, %v3481_v28 }
 0xdfe   :  { %6310 = vmatprep.mubr.msk.bf16.mxu1 %vm6684_vm1, %v7635_v14 }
 0xdff   :  { %6309 = vmatpush3.bf16.xpose.msra.mxu1 %v5739_v32 }
 0xe00   :  { %6320 = vmatprep.subr.bf16.mxu1 %v7635_v14 }
 0xe02   :  { %6305 = vmatmul.mubr.bf16.vlgmr.msra.gmra.mrb[144].mxu0 %v5734_v17 }
 0xe03   :  { %6315 = vmatpush3.bf16.xpose.msra.mxu0 %v5740_v54  ;;  %6316 = vmatprep.mubr.msk.bf16.mxu0 %vm6684_vm1, %v7635_v14 }
 0xe04   :  { %6326 = vmatprep.subr.bf16.mxu0 %v7635_v14 }
 0xe06   :  { %6311 = vmatmul.mubr.bf16.vlgmr.msra.gmra.mrb[144].mxu1 %v5735_v46 }
 0xe07   :  { %6321 = vmatpush3.bf16.xpose.msra.mxu1 %v5741_v36  ;;  %6322 = vmatprep.mubr.msk.bf16.mxu1 %vm6684_vm1, %v7635_v14 }
 0xe08   :  { %6332 = vmatprep.subr.bf16.mxu1 %v7635_v14 }
 0xe0a   :  { %6317 = vmatmul.mubr.bf16.vlgmr.msra.gmra.mrb[148].mxu0 %v5736_v39 }
 0xe0b   :  { %6327 = vmatpush3.bf16.msra.mxu0 %v7677_v10  ;;  %6328 = vmatprep.mubr.msk.bf16.mxu0 %vm6684_vm1, %v7635_v14 }
 0xe0c   :  { %6338 = vmatprep.subr.bf16.mxu0 %v7635_v14 }
 0xe0e   :  { %6323 = vmatmul.mubr.bf16.vlgmr.msra.gmra.mrb[148].mxu1 %v5737_v60 }
 0xe0f   :  { %6333 = vmatpush3.bf16.msra.mxu1 %v7679_v31  ;;  %6334 = vmatprep.mubr.msk.bf16.mxu1 %vm6684_vm1, %v7635_v14 }
 0xe10   :  { %6344 = vmatprep.subr.bf16.mxu1 %v7635_v14 }
 0xec4   :  { %v7447_v40 = vpop.f32.mrb[136].mxu0 }
 0xec5   :  { %v6282_v11 = vpop.f32.mrb[137].mxu0 }
 0xec6   :  { %v3525_v41 = vpop.f32.mrb[138].mxu0 }
 0xec7   :  { %v6283_v33 = vpop.f32.mrb[139].mxu0 }
 0xec8   :  { %v7449_v24 = vpop.f32.mrb[136].mxu1 }
 0xec9   :  { %v5768_v27 = vpack.c.bf16 %v7449_v24, %v7447_v40  ;;  %v6288_v16 = vpop.f32.mrb[137].mxu1  ;;  %v6456_v40 = vld [vmem:[#allocation5 + $0x170] sm:$0xff]   ;;  %v6471_v24 = vld [vmem:[#allocation5 + $0x1a8] sm:$0xff]  }
 0xeca   :  { %v3571_v21 = vpop.f32.mrb[138].mxu1 }
 0xecb   :  { %v6289_v30 = vpop.f32.mrb[139].mxu1 }
 0xecc   :  { %v7453_v57 = vpop.f32.mrb[140].mxu0 }
 0xecd   :  { %v6294_v18 = vpop.f32.mrb[141].mxu0 }
 0xece   :  { %v3617_v5 = vpop.f32.mrb[142].mxu0 }
 0xecf   :  { %v6295_v9 = vpop.f32.mrb[143].mxu0 }
 0xed0   :  { %v7455_v34 = vpop.f32.mrb[140].mxu1 }
 0xed1   :  { %v5769_v35 = vpack.c.bf16 %v7455_v34, %v7453_v57  ;;  %v6300_v19 = vpop.f32.mrb[141].mxu1 }
 0xed2   :  { %v3663_v28 = vpop.f32.mrb[142].mxu1 }
 0xed3   :  { %v6301_v42 = vpop.f32.mrb[143].mxu1 }
 0xed5   :  { %v3742_v32 = vpop.f32.mrb[144].mxu0 }
 0xed6   :  { %v3868_v45 = vmul.f32 0.17677669, %v3742_v32  ;;  %v6306_v17 = vpop.f32.mrb[145].mxu0 }
 0xed7   :  { %v3745_v25 = vpop.f32.mrb[146].mxu0 }
 0xed8   :  { %v6307_v54 = vpop.f32.mrb[147].mxu0  ;;  %v3872_v29 = vsel %vm1242_vm3, %v3868_v45, -inf }
 0xed9   :  { %v3782_v46 = vpop.f32.mrb[144].mxu1  ;;  %3873 = vmax.xlane.f32.xlu0 %v3872_v29 }
 0xeda   :  { %v3869_v50 = vmul.f32 0.17677669, %v3782_v46  ;;  %v6312_v36 = vpop.f32.mrb[145].mxu1 }
 0xedb   :  { %v3785_v59 = vpop.f32.mrb[146].mxu1 }
 0xedc   :  { %v6313_v39 = vpop.f32.mrb[147].mxu1  ;;  %v3875_v10 = vsel %vm1242_vm3, %v3869_v50, -inf }
 0xedd   :  { %3876 = vmax.xlane.f32.xlu1 %v3875_v10  ;;  %v3822_v3 = vpop.f32.mrb[148].mxu0 }
 0xede   :  { %v3870_v60 = vmul.f32 0.17677669, %v3822_v3  ;;  %v6318_v31 = vpop.f32.mrb[149].mxu0 }
 0xedf   :  { %v3825_v11 = vpop.f32.mrb[150].mxu0 }
 0xee0   :  { %v6319_v41 = vpop.f32.mrb[151].mxu0  ;;  %v3878_v33 = vsel %vm1242_vm3, %v3870_v60, -inf }
 0xee1   :  { %v3862_v16 = vpop.f32.mrb[148].mxu1  ;;  %3879 = vmax.xlane.f32.xlu0 %v3878_v33 }
 0xee2   :  { %v3871_v21 = vmul.f32 0.17677669, %v3862_v16  ;;  %v6324_v30 = vpop.f32.mrb[149].mxu1 }
 0xee3   :  { %v3865_v18 = vpop.f32.mrb[150].mxu1 }
 0xee4   :  { %v6325_v5 = vpop.f32.mrb[151].mxu1  ;;  %v3881_v9 = vsel %vm1242_vm3, %v3871_v21, -inf }
 0xee5   :  { %3882 = vmax.xlane.f32.xlu1 %v3881_v9 }
 0xf66   :  { %v3874_v19 = vpop.xlane.xlu0 %3873 }
 0xf67   :  { %v3884_v28 = vsub.f32 %v3868_v45, %v3874_v19 }
 0xf69   :  { %v3888_v42 = vmul.f32 1.442695, %v3884_v28 }
 0xf6a   :  { %v3877_v32 = vpop.xlane.xlu1 %3876 }
 0xf6b   :  { %6572 = vpow2.f32 %v3888_v42  ;;  %v3885_v17 = vsub.f32 %v3869_v50, %v3877_v32  ;;  %v7680_v42 = vld [vmem:[#allocation48_spill] sm:$0xff] }
 0xf6d   :  { %v3890_v25 = vmul.f32 1.442695, %v3885_v17 }
 0xf6e   :  { %v3880_v54 = vpop.xlane.xlu0 %3879 }
 0xf6f   :  { %6574 = vpow2.f32 %v3890_v25  ;;  %v3886_v29 = vsub.f32 %v3870_v60, %v3880_v54  ;;  %v7681_v54 = vld [vmem:[#allocation51_spill] sm:$0xff] }
 0xf71   :  { %v3892_v46 = vmul.f32 1.442695, %v3886_v29 }
 0xf72   :  { %v3883_v36 = vpop.xlane.xlu1 %3882 }
 0xf73   :  { %6576 = vpow2.f32 %v3892_v46  ;;  %v3887_v59 = vsub.f32 %v3871_v21, %v3883_v36  ;;  %v7682_v36 = vld [vmem:[#allocation28_spill] sm:$0xff] }
 0xf75   :  { %v6573_v39 = vpop.eup %6572  ;;  %v3894_v10 = vmul.f32 1.442695, %v3887_v59  ;;  %v5750_v59 = vpack.c.bf16 %v7682_v36, %v7682_v36 }
 0xf76   :  { %v3896_v3 = vsel %vm1242_vm3, %v6573_v39, 0.0 }
 0xf77   :  { %6578 = vpow2.f32 %v3894_v10  ;;  %3897 = vadd.xlane.f32.xlu0 %v3896_v3  ;;  %v7683_v3 = vld [vmem:[#allocation30_spill] sm:$0xff] }
 0xf79   :  { %v6575_v31 = vpop.eup %6574 }
 0xf7a   :  { %v3899_v45 = vsel %vm1242_vm3, %v6575_v31, 0.0 }
 0xf7b   :  { %3900 = vadd.xlane.f32.xlu1 %v3899_v45  ;;  %v7684_v45 = vld [vmem:[#allocation14_spill] sm:$0xff] }
 0xf7d   :  { %v6577_v11 = vpop.eup %6576 }
 0xf7e   :  { %v3902_v50 = vsel %vm1242_vm3, %v6577_v11, 0.0 }
 0xf7f   :  { %3903 = vadd.xlane.f32.xlu0 %v3902_v50  ;;  %v7685_v50 = vld [vmem:[#allocation34_spill] sm:$0xff] }
 0xf81   :  { %v6579_v41 = vpop.eup %6578 }
 0xf82   :  { %v3905_v60 = vsel %vm1242_vm3, %v6579_v41, 0.0 }
 0xf83   :  { %3906 = vadd.xlane.f32.xlu1 %v3905_v60  ;;  %v7686_v60 = vld [vmem:[#allocation18_spill] sm:$0xff] }
0x1004   :  { %v3898_v33 = vpop.xlane.xlu0 %3897 }
0x1005   :  { %6580 = vrcp.f32 %v3898_v33  ;;  %v5747_v33 = vpack.c.bf16 %v7686_v60, %v7686_v60 }
0x1008   :  { %v3901_v16 = vpop.xlane.xlu1 %3900 }
0x1009   :  { %6582 = vrcp.f32 %v3901_v16  ;;  %v7687_v16 = vld [vmem:[#allocation36_spill] sm:$0xff] }
0x100c   :  { %v3904_v21 = vpop.xlane.xlu0 %3903 }
0x100d   :  { %6584 = vrcp.f32 %v3904_v21  ;;  %v5753_v21 = vpack.c.bf16 %v7687_v16, %v7687_v16 }
0x100f   :  { %v6581_v30 = vpop.eup %6580 }
0x1010   :  { %v3909_v18 = vmul.f32 %v6581_v30, %v6573_v39  ;;  %v3907_v5 = vpop.xlane.xlu1 %3906  ;;  %v7688_v30 = vld [vmem:[#allocation22_spill] sm:$0xff] }
0x1011   :  { %6586 = vrcp.f32 %v3907_v5  ;;  %v7689_v5 = vld [vmem:[#allocation42_spill] sm:$0xff] }
0x1012   :  { %v3916_v9 = vpack.c.bf16 %v3909_v18, %v3909_v18  ;;  %v5748_v18 = vpack.c.bf16 %v7688_v30, %v7688_v30 }
0x1013   :  { %v6583_v19 = vpop.eup %6582 }
0x1014   :  { %v3911_v28 = vmul.f32 %v6583_v19, %v6575_v31  ;;  %6329 = vmatmul.mubr.msk.bf16.vlgmr.msra.gmra.mrb[152].mxu0 %vm1242_vm3, %v3916_v9  ;;  %v5751_v31 = vpack.c.bf16 %v7683_v3, %v7683_v3  ;;  %v7690_v9 = vld [vmem:[#allocation24_spill] sm:$0xff] }
0x1015   :  { %6339 = vmatpush3.bf16.msra.mxu0 %v7680_v42  ;;  %6340 = vmatprep.mubr.msk.bf16.mxu0 %vm6684_vm1, %v7635_v14  ;;  %v5749_v19 = vpack.c.bf16 %v7690_v9, %v7690_v9 }
0x1016   :  { %v3917_v32 = vpack.c.bf16 %v3911_v28, %v3911_v28  ;;  %6350 = vmatprep.subr.bf16.mxu0 %v7635_v14  ;;  %v7691_v28 = vld [vmem:[#allocation44_spill] sm:$0xff] }
0x1017   :  { %v6585_v17 = vpop.eup %6584 }
0x1018   :  { %v3913_v25 = vmul.f32 %v6585_v17, %v6577_v11  ;;  %6335 = vmatmul.mubr.msk.bf16.vlgmr.msra.gmra.mrb[152].mxu1 %vm1242_vm3, %v3917_v32  ;;  %v5746_v11 = vpack.c.bf16 %v7684_v45, %v7684_v45 }
0x1019   :  { %6345 = vmatpush3.bf16.msra.mxu1 %v7681_v54  ;;  %6346 = vmatprep.mubr.msk.bf16.mxu1 %vm6684_vm1, %v7635_v14 }
0x101a   :  { %v3918_v29 = vpack.c.bf16 %v3913_v25, %v3913_v25  ;;  %6356 = vmatprep.subr.bf16.mxu1 %v7635_v14 }
0x101b   :  { %v6587_v46 = vpop.eup %6586 }
0x101c   :  { %v3915_v39 = vmul.f32 %v6587_v46, %v6579_v41  ;;  %6341 = vmatmul.mubr.msk.bf16.vlgmr.msra.gmra.mrb[156].mxu0 %vm1242_vm3, %v3918_v29  ;;  %v5752_v41 = vpack.c.bf16 %v7685_v50, %v7685_v50 }
0x101d   :  { %6352 = vmatprep.mubr.msk.bf16.mxu0 %vm6684_vm1, %v7635_v14 }
0x101e   :  { %6351 = vmatpush3.bf16.xpose.msra.mxu0 %v5750_v59  ;;  %v3919_v10 = vpack.c.bf16 %v3915_v39, %v3915_v39 }
0x101f   :  { %6362 = vmatprep.subr.bf16.mxu0 %v7635_v14 }
0x1020   :  { %6347 = vmatmul.mubr.msk.bf16.vlgmr.msra.gmra.mrb[156].mxu1 %vm1242_vm3, %v3919_v10 }
0x1021   :  { %6358 = vmatprep.mubr.msk.bf16.mxu1 %vm6684_vm1, %v7635_v14 }
0x1022   :  { %6357 = vmatpush3.bf16.xpose.msra.mxu1 %v5751_v31 }
0x1023   :  { %6368 = vmatprep.subr.bf16.mxu1 %v7635_v14 }
0x1025   :  { %6353 = vmatmul.mubr.bf16.vlgmr.msra.gmra.mrb[160].mxu0 %v5746_v11 }
0x1026   :  { %6363 = vmatpush3.bf16.xpose.msra.mxu0 %v5752_v41  ;;  %6364 = vmatprep.mubr.msk.bf16.mxu0 %vm6684_vm1, %v7635_v14 }
0x1027   :  { %6374 = vmatprep.subr.bf16.mxu0 %v7635_v14 }
0x1029   :  { %6359 = vmatmul.mubr.bf16.vlgmr.msra.gmra.mrb[160].mxu1 %v5747_v33 }
0x102a   :  { %6369 = vmatpush3.bf16.xpose.msra.mxu1 %v5753_v21  ;;  %6370 = vmatprep.mubr.msk.bf16.mxu1 %vm6684_vm1, %v7635_v14 }
0x102b   :  { %6380 = vmatprep.subr.bf16.mxu1 %v7635_v14 }
0x102d   :  { %6365 = vmatmul.mubr.bf16.vlgmr.msra.gmra.mrb[164].mxu0 %v5748_v18 }
0x102e   :  { %6375 = vmatpush3.bf16.msra.mxu0 %v7689_v5  ;;  %6376 = vmatprep.mubr.msk.bf16.mxu0 %vm6684_vm1, %v7635_v14 }
0x102f   :  { %6386 = vmatprep.subr.bf16.mxu0 %v7635_v14 }
0x1031   :  { %6371 = vmatmul.mubr.bf16.vlgmr.msra.gmra.mrb[164].mxu1 %v5749_v19 }
0x1032   :  { %6381 = vmatpush3.bf16.msra.mxu1 %v7691_v28  ;;  %6382 = vmatprep.mubr.msk.bf16.mxu1 %vm6684_vm1, %v7635_v14 }
0x1033   :  { %6392 = vmatprep.subr.bf16.mxu1 %v7635_v14 }
0x10e7   :  { %v7515_v42 = vpop.f32.mrb[152].mxu0 }
0x10e8   :  { %v6330_v32 = vpop.f32.mrb[153].mxu0 }
0x10e9   :  { %v3963_v17 = vpop.f32.mrb[154].mxu0 }
0x10ea   :  { %v6331_v25 = vpop.f32.mrb[155].mxu0 }
0x10eb   :  { %v7517_v54 = vpop.f32.mrb[152].mxu1 }
0x10ec   :  { %v5770_v29 = vpack.c.bf16 %v7517_v54, %v7515_v42  ;;  %v6336_v46 = vpop.f32.mrb[153].mxu1  ;;  %v5597_v42 = vld [vmem:[%s7605_s3] ss:$0 sm:$0xff]  ;;  %s6685_s3 = smov [#allocation7]  }
0x10ed   :  { %v4009_v36 = vpop.f32.mrb[154].mxu1  ;;  %s5366_s20 = sshll.u32 %s6685_s3, 4  ;;  %s5367_s20 = int_to_ptr.vmem [resolvable:$true] %s5366_s20 }
0x10ee   :  { %v6337_v59 = vpop.f32.mrb[155].mxu1  ;;  %s6648_s21 = scalar_lea.vmem %s5367_s20, 512  ;;  %p6653_p3 = scmp.lt.s32.totalorder %s5367_s20, %s5367_s20 }
0x10ef   :  { %v7521_v39 = vpop.f32.mrb[156].mxu0  ;;  %p6649_p2 = scmp.ne.s32.totalorder %s5367_s20, %s6648_s21  ;;  %p6654_p4 = scmp.lt.s32.totalorder %s6648_s21, %s6648_s21 }
0x10f0   :  { %v6342_v10 = vpop.f32.mrb[157].mxu0 }
0x10f1   :  { %v4055_v3 = vpop.f32.mrb[158].mxu0  ;;  %p6655_p5 = por %p6654_p4, %p6653_p3 }
0x10f2   :  { %v6343_v31 = vpop.f32.mrb[159].mxu0 }
0x10f3   :  { %v7523_v45 = vpop.f32.mrb[156].mxu1  ;;  %p6656_p6 = pnand %p6655_p5, %p6649_p2 }
0x10f4   :  { %v5771_v11 = vpack.c.bf16 %v7523_v45, %v7521_v39  ;;  %v6348_v50 = vpop.f32.mrb[157].mxu1 }
0x10f5   :  { %v4101_v41 = vpop.f32.mrb[158].mxu1 }
0x10f6   :  { %v6349_v60 = vpop.f32.mrb[159].mxu1 }
0x10f8   :  { %v4180_v33 = vpop.f32.mrb[160].mxu0 }
0x10f9   :  { %v4306_v16 = vmul.f32 0.17677669, %v4180_v33  ;;  %v6354_v21 = vpop.f32.mrb[161].mxu0 }
0x10fa   :  { %v4183_v30 = vpop.f32.mrb[162].mxu0 }
0x10fb   :  { %v6355_v18 = vpop.f32.mrb[163].mxu0  ;;  %v4310_v5 = vsel %vm1242_vm3, %v4306_v16, -inf }
0x10fc   :  { %v4220_v9 = vpop.f32.mrb[160].mxu1  ;;  %4311 = vmax.xlane.f32.xlu0 %v4310_v5 }
0x10fd   :  { %v4307_v19 = vmul.f32 0.17677669, %v4220_v9  ;;  %v6360_v28 = vpop.f32.mrb[161].mxu1 }
0x10fe   :  { %v4223_v32 = vpop.f32.mrb[162].mxu1 }
0x10ff   :  { %v6361_v17 = vpop.f32.mrb[163].mxu1  ;;  %v4313_v25 = vsel %vm1242_vm3, %v4307_v19, -inf }
0x1100   :  { %4314 = vmax.xlane.f32.xlu1 %v4313_v25  ;;  %v4260_v46 = vpop.f32.mrb[164].mxu0 }
0x1101   :  { %v4308_v36 = vmul.f32 0.17677669, %v4260_v46  ;;  %v6366_v59 = vpop.f32.mrb[165].mxu0 }
0x1102   :  { %v4263_v10 = vpop.f32.mrb[166].mxu0 }
0x1103   :  { %v6367_v3 = vpop.f32.mrb[167].mxu0  ;;  %v4316_v31 = vsel %vm1242_vm3, %v4308_v36, -inf }
0x1104   :  { %v4300_v50 = vpop.f32.mrb[164].mxu1  ;;  %4317 = vmax.xlane.f32.xlu0 %v4316_v31 }
0x1105   :  { %v4309_v41 = vmul.f32 0.17677669, %v4300_v50  ;;  %v6372_v60 = vpop.f32.mrb[165].mxu1 }
0x1106   :  { %v4303_v33 = vpop.f32.mrb[166].mxu1 }
0x1107   :  { %v6373_v21 = vpop.f32.mrb[167].mxu1  ;;  %v4319_v30 = vsel %vm1242_vm3, %v4309_v41, -inf }
0x1108   :  { %4320 = vmax.xlane.f32.xlu1 %v4319_v30 }
0x1189   :  { %v4312_v18 = vpop.xlane.xlu0 %4311 }
0x118a   :  { %v4322_v5 = vsub.f32 %v4306_v16, %v4312_v18 }
0x118c   :  { %v4326_v9 = vmul.f32 1.442695, %v4322_v5 }
0x118d   :  { %v4315_v28 = vpop.xlane.xlu1 %4314 }
0x118e   :  { %6588 = vpow2.f32 %v4326_v9  ;;  %v4323_v32 = vsub.f32 %v4307_v19, %v4315_v28 }
0x1190   :  { %v4328_v17 = vmul.f32 1.442695, %v4323_v32 }
0x1191   :  { %v4318_v25 = vpop.xlane.xlu0 %4317 }
0x1192   :  { %6590 = vpow2.f32 %v4328_v17  ;;  %v4324_v46 = vsub.f32 %v4308_v36, %v4318_v25  ;;  %v6412_v25 = vld [vmem:[#allocation5 + $0x40] sm:$0xff]  }
0x1194   :  { %v4330_v59 = vmul.f32 1.442695, %v4324_v46 }
0x1195   :  { %v4321_v10 = vpop.xlane.xlu1 %4320 }
0x1196   :  { %6592 = vpow2.f32 %v4330_v59  ;;  %v4325_v3 = vsub.f32 %v4309_v41, %v4321_v10  ;;  %v7692_v10 = vld [vmem:[#allocation50_spill] sm:$0xff] }
0x1198   :  { %v6589_v31 = vpop.eup %6588  ;;  %v4332_v50 = vmul.f32 1.442695, %v4325_v3 }
0x1199   :  { %v4334_v60 = vsel %vm1242_vm3, %v6589_v31, 0.0 }
0x119a   :  { %6594 = vpow2.f32 %v4332_v50  ;;  %4335 = vadd.xlane.f32.xlu0 %v4334_v60  ;;  %v6415_v50 = vld [vmem:[#allocation5 + $0xc0] sm:$0xff]  }
0x119c   :  { %v6591_v33 = vpop.eup %6590 }
0x119d   :  { %v4337_v16 = vsel %vm1242_vm3, %v6591_v33, 0.0 }
0x119e   :  { %4338 = vadd.xlane.f32.xlu1 %v4337_v16 }
0x11a0   :  { %v6593_v21 = vpop.eup %6592 }
0x11a1   :  { %v4340_v19 = vsel %vm1242_vm3, %v6593_v21, 0.0 }
0x11a2   :  { %4341 = vadd.xlane.f32.xlu0 %v4340_v19  ;;  %v6413_v19 = vld [vmem:[#allocation5] sm:$0xff]  }
0x11a4   :  { %v6595_v30 = vpop.eup %6594 }
0x11a5   :  { %v4343_v36 = vsel %vm1242_vm3, %v6595_v30, 0.0 }
0x11a6   :  { %4344 = vadd.xlane.f32.xlu1 %v4343_v36  ;;  %v6414_v36 = vld [vmem:[#allocation5 + $0x48] sm:$0xff]  }
0x1227   :  { %v4336_v18 = vpop.xlane.xlu0 %4335 }
0x1228   :  { %6596 = vrcp.f32 %v4336_v18 }
0x122b   :  { %v4339_v41 = vpop.xlane.xlu1 %4338 }
0x122c   :  { %6598 = vrcp.f32 %v4339_v41 }
0x122f   :  { %v4342_v5 = vpop.xlane.xlu0 %4341 }
0x1230   :  { %6600 = vrcp.f32 %v4342_v5  ;;  %v6417_v5 = vld [vmem:[#allocation5 + $0x80] sm:$0xff]  }
0x1232   :  { %v6597_v9 = vpop.eup %6596 }
0x1233   :  { %v4347_v28 = vmul.f32 %v6597_v9, %v6589_v31  ;;  %v4345_v32 = vpop.xlane.xlu1 %4344  ;;  %v7693_v31 = vld [vmem:[#allocation52_spill] sm:$0xff] }
0x1234   :  { %6602 = vrcp.f32 %v4345_v32  ;;  %v6419_v32 = vld [vmem:[#allocation5 + $0xc8] sm:$0xff]  }
0x1235   :  { %v4354_v17 = vpack.c.bf16 %v4347_v28, %v4347_v28  ;;  %v6418_v28 = vld [vmem:[#allocation5 + $0x50] sm:$0xff]  }
0x1236   :  { %v6599_v46 = vpop.eup %6598 }
0x1237   :  { %v4349_v59 = vmul.f32 %v6599_v46, %v6591_v33  ;;  %6377 = vmatmul.mubr.msk.bf16.vlgmr.msra.gmra.mrb[168].mxu0 %vm1242_vm3, %v4354_v17  ;;  %v6421_v17 = vld [vmem:[#allocation5 + $0x88] sm:$0xff]   ;;  %v6427_v46 = vld [vmem:[#allocation5 + $0xd8] sm:$0xff]  }
0x1238   :  { %6387 = vmatpush3.bf16.msra.mxu0 %v7692_v10  ;;  %6388 = vmatprep.mubr.msk.bf16.mxu0 %vm6684_vm1, %v7635_v14  ;;  %v6429_v10 = vld [vmem:[#allocation5 + $0x98] sm:$0xff]  }
0x1239   :  { %v4355_v3 = vpack.c.bf16 %v4349_v59, %v4349_v59  ;;  %5902 = vmatprep.subr.bf16.mxu0 %v6412_v25  ;;  %v6426_v25 = vld [vmem:[#allocation5 + $0x60] sm:$0xff]  }
0x123a   :  { %v6601_v60 = vpop.eup %6600  ;;  %v6428_v59 = vld [vmem:[#allocation5 + $0x20] sm:$0xff]  }
0x123b   :  { %v4351_v16 = vmul.f32 %v6601_v60, %v6593_v21  ;;  %6383 = vmatmul.mubr.msk.bf16.vlgmr.msra.gmra.mrb[168].mxu1 %vm1242_vm3, %v4355_v3  ;;  %v6416_v21 = vld [vmem:[#allocation5 + $0x8] sm:$0xff]   ;;  %v6433_v3 = vld [vmem:[#allocation5 + $0xa0] sm:$0xff]  }
0x123c   :  { %6393 = vmatpush3.bf16.msra.mxu1 %v7693_v31  ;;  %6394 = vmatprep.mubr.msk.bf16.mxu1 %vm6684_vm1, %v7635_v14  ;;  %v6420_v14 = vld [vmem:[#allocation5 + $0x10] sm:$0xff]   ;;  %v6435_v60 = vld [vmem:[#allocation5 + $0xe8] sm:$0xff]  }
0x123d   :  { %v4356_v33 = vpack.c.bf16 %v4351_v16, %v4351_v16  ;;  %5930 = vmatprep.subr.bf16.mxu1 %v6415_v50  ;;  %v6434_v50 = vld [vmem:[#allocation5 + $0x70] sm:$0xff]   ;;  %v6437_v31 = vld [vmem:[#allocation5 + $0xa8] sm:$0xff]  }
0x123e   :  { %v6603_v18 = vpop.eup %6602  ;;  %v6436_v16 = vld [vmem:[#allocation5 + $0x30] sm:$0xff]  }
0x123f   :  { %v4353_v41 = vmul.f32 %v6603_v18, %v6595_v30  ;;  %6389 = vmatmul.mubr.msk.bf16.vlgmr.msra.gmra.mrb[172].mxu0 %vm1242_vm3, %v4356_v33  ;;  %v6422_v30 = vld [vmem:[#allocation5 + $0x58] sm:$0xff]   ;;  %v6439_v33 = vld [vmem:[#allocation5 + $0xf0] sm:$0xff]  }
0x1240   :  { %5903 = vmatpush3.bf16.msra.mxu0 %v6413_v19  ;;  %5193 = vmatprep.mubr.bf16.mxu0 %v5760_v51  ;;  %v6425_v51 = vld [vmem:[#allocation5 + $0x90] sm:$0xff]   ;;  %v6438_v19 = vld [vmem:[#allocation5 + $0x78] sm:$0xff]  }
0x1241   :  { %v4357_v9 = vpack.c.bf16 %v4353_v41, %v4353_v41  ;;  %5904 = vmatprep.subr.bf16.mxu0 %v6414_v36  ;;  %v6440_v36 = vld [vmem:[#allocation5 + $0x38] sm:$0xff]   ;;  %v6441_v18 = vld [vmem:[#allocation5 + $0xb0] sm:$0xff]  }
0x1242   :  { %v6442_v41 = vld [vmem:[#allocation5 + $0xf8] sm:$0xff]  }
0x1243   :  { %6395 = vmatmul.mubr.msk.bf16.vlgmr.msra.gmra.mrb[172].mxu1 %vm1242_vm3, %v4357_v9  ;;  %v6445_v9 = vld [vmem:[#allocation5 + $0x100] sm:$0xff]  }
0x1244   :  { %5905 = vmatpush3.bf16.msra.mxu0 %v6416_v21  ;;  %5931 = vmatpush3.bf16.msra.mxu1 %v6417_v5  ;;  %v6443_v21 = vld [vmem:[#allocation5 + $0x140] sm:$0xff]   ;;  %v6444_v5 = vld [vmem:[#allocation5 + $0xb8] sm:$0xff]  }
0x1245   :  { %5242 = vmatprep.mubr.bf16.mxu1 %v5764_v56  ;;  %5906 = vmatprep.subr.bf16.mxu0 %v6418_v28  ;;  %v6432_v56 = vld [vmem:[#allocation5 + $0x28] sm:$0xff]   ;;  %v6460_v28 = vld [vmem:[#allocation5 + $0x1c0] sm:$0xff]  }
0x1246   :  { %5932 = vmatprep.subr.bf16.mxu1 %v6419_v32  ;;  %v6446_v32 = vld [vmem:[#allocation5 + $0x148] sm:$0xff]  }
0x1248   :  { %5907 = vmatpush3.bf16.msra.mxu0 %v6420_v14  ;;  %5933 = vmatpush3.bf16.msra.mxu1 %v6421_v17  ;;  %v6461_v14 = vld [vmem:[#allocation5 + $0x180] sm:$0xff]   ;;  %v6447_v17 = vld [vmem:[#allocation5 + $0x108] sm:$0xff]  }
0x1249   :  { %5908 = vmatprep.subr.bf16.mxu0 %v6422_v30  ;;  %5934 = vmatprep.subr.bf16.mxu1 %v6423_v48  ;;  %v6462_v30 = vld [vmem:[#allocation5 + $0x1c8] sm:$0xff]   ;;  %v6448_v48 = vld [vmem:[#allocation5 + $0x150] sm:$0xff]  }
0x124c   :  { %5909 = vmatpush3.bf16.msra.mxu0 %v6424_v23  ;;  %5935 = vmatpush3.bf16.msra.mxu1 %v6425_v51  ;;  %v6473_v23 = vld [vmem:[#allocation5 + $0x1b0] sm:$0xff]   ;;  %v6474_v51 = vld [vmem:[#allocation5 + $0x1f8] sm:$0xff]  }
0x124d   :  { %5910 = vmatprep.subr.bf16.mxu0 %v6426_v25  ;;  %5936 = vmatprep.subr.bf16.mxu1 %v6427_v46  ;;  %v6475_v25 = vld [vmem:[#allocation5 + $0x1b8] sm:$0xff]  }
0x1250   :  { %5911 = vmatpush3.bf16.msra.mxu0 %v6428_v59  ;;  %5937 = vmatpush3.bf16.msra.mxu1 %v6429_v10 }
0x1251   :  { %5912 = vmatprep.subr.bf16.mxu0 %v6430_v38  ;;  %5938 = vmatprep.subr.bf16.mxu1 %v6431_v26 }
0x1254   :  { %5913 = vmatpush3.bf16.msra.mxu0 %v6432_v56  ;;  %5939 = vmatpush3.bf16.msra.mxu1 %v6433_v3 }
0x1255   :  { %5914 = vmatprep.subr.bf16.mxu0 %v6434_v50  ;;  %5940 = vmatprep.subr.bf16.mxu1 %v6435_v60 }
0x1258   :  { %5915 = vmatpush3.bf16.msra.mxu0 %v6436_v16  ;;  %5941 = vmatpush3.bf16.msra.mxu1 %v6437_v31 }
0x1259   :  { %5916 = vmatprep.subr.bf16.mxu0 %v6438_v19  ;;  %5942 = vmatprep.subr.bf16.mxu1 %v6439_v33 }
0x125c   :  { %5917 = vmatpush3.bf16.msra.mxu0 %v6440_v36  ;;  %5943 = vmatpush3.bf16.msra.mxu1 %v6441_v18 }
0x125d   :  { %5944 = vmatprep.subr.bf16.mxu1 %v6442_v41  ;;  %5958 = vmatprep.subr.bf16.mxu0 %v6443_v21 }
0x125f   :  { %5194 = vmatmul.mubr.bf16.vlgmr.msra.gmra.mrb[176].mxu0 %v5758_v47  ;;  %v6464_v47 = vld [vmem:[#allocation5 + $0x1d0] sm:$0xff]  }
0x1260   :  { %5201 = vmatprep.mubr.bf16.mxu0 %v5761_v20  ;;  %5945 = vmatpush3.bf16.msra.mxu1 %v6444_v5  ;;  %v6451_v20 = vld [vmem:[#allocation5 + $0x118] sm:$0xff]  }
0x1261   :  { %5959 = vmatpush3.bf16.msra.mxu0 %v6445_v9  ;;  %5986 = vmatprep.subr.bf16.mxu1 %v6460_v28 }
0x1262   :  { %5960 = vmatprep.subr.bf16.mxu0 %v6446_v32 }
0x1263   :  { %5243 = vmatmul.mubr.bf16.vlgmr.msra.gmra.mrb[176].mxu1 %v5762_v53  ;;  %v6467_v53 = vld [vmem:[#allocation5 + $0x198] sm:$0xff]  }
0x1264   :  { %5250 = vmatprep.mubr.bf16.mxu1 %v5765_v2  ;;  %5987 = vmatpush3.bf16.msra.mxu1 %v6461_v14  ;;  %v6470_v2 = vld [vmem:[#allocation5 + $0x1e8] sm:$0xff]  }
0x1265   :  { %5961 = vmatpush3.bf16.msra.mxu0 %v6447_v17  ;;  %5988 = vmatprep.subr.bf16.mxu1 %v6462_v30 }
0x1266   :  { %5962 = vmatprep.subr.bf16.mxu0 %v6448_v48 }
0x1267   :  { %5202 = vmatmul.mubr.bf16.gmra.mrb[180].mxu0 %v5759_v62  ;;  %v6454_v62 = vld [vmem:[#allocation5 + $0x168] sm:$0xff]  }
0x1268   :  { %5291 = vmatprep.mubr.bf16.mxu0 %v5768_v27  ;;  %5989 = vmatpush3.bf16.msra.mxu1 %v6463_v44  ;;  %v6472_v27 = vld [vmem:[#allocation5 + $0x1f0] sm:$0xff]  }
0x1269   :  { %5963 = vmatpush3.bf16.msra.mxu0 %v6449_v37  ;;  %5990 = vmatprep.subr.bf16.mxu1 %v6464_v47 }
0x126a   :  { %5964 = vmatprep.subr.bf16.mxu0 %v6450_v6 }
0x126b   :  { %5251 = vmatmul.mubr.bf16.gmra.mrb[180].mxu1 %v5763_v43  ;;  %v6459_v43 = vld [vmem:[#allocation5 + $0x138] sm:$0xff]  }
0x126c   :  { %5991 = vmatpush3.bf16.msra.mxu1 %v6465_v1 }
0x126d   :  { %5965 = vmatpush3.bf16.msra.mxu0 %v6451_v20  ;;  %5992 = vmatprep.subr.bf16.mxu1 %v6466_v49 }
0x126e   :  { %5966 = vmatprep.subr.bf16.mxu0 %v6452_v8 }
0x1270   :  { %5993 = vmatpush3.bf16.msra.mxu1 %v6467_v53 }
0x1271   :  { %5967 = vmatpush3.bf16.msra.mxu0 %v6453_v63  ;;  %5994 = vmatprep.subr.bf16.mxu1 %v6468_v52 }
0x1272   :  { %5968 = vmatprep.subr.bf16.mxu0 %v6454_v62 }
0x1274   :  { %5995 = vmatpush3.bf16.msra.mxu1 %v6469_v0 }
0x1275   :  { %5969 = vmatpush3.bf16.msra.mxu0 %v6455_v15  ;;  %5996 = vmatprep.subr.bf16.mxu1 %v6470_v2 }
0x1276   :  { %5970 = vmatprep.subr.bf16.mxu0 %v6456_v40 }
0x1278   :  { %5997 = vmatpush3.bf16.msra.mxu1 %v6471_v24 }
0x1279   :  { %5971 = vmatpush3.bf16.msra.mxu0 %v6457_v22  ;;  %5998 = vmatprep.subr.bf16.mxu1 %v6472_v27 }
0x127a   :  { %5972 = vmatprep.subr.bf16.mxu0 %v6458_v4 }
0x127c   :  { %5999 = vmatpush3.bf16.msra.mxu1 %v6473_v23 }
0x127d   :  { %5973 = vmatpush3.bf16.msra.mxu0 %v6459_v43  ;;  %6000 = vmatprep.subr.bf16.mxu1 %v6474_v51 }
0x1280   :  { %5292 = vmatmul.mubr.bf16.vlgmr.msra.gmra.mrb[184].mxu0 %v5766_v61  ;;  %6001 = vmatpush3.bf16.msra.mxu1 %v6475_v25 }
0x1281   :  { %5299 = vmatprep.mubr.bf16.mxu0 %v5769_v35 }
0x1288   :  { %5300 = vmatmul.mubr.bf16.gmra.mrb[188].mxu0 %v5767_v13 }
0x130a   :  { %v4398_v46 = vpop.f32.mrb[168].mxu0 }
0x130b   :  { %v6378_v59 = vpop.f32.mrb[169].mxu0 }
0x130c   :  { %v4401_v55 = vpop.f32.mrb[170].mxu0 }
0x130d   :  { %v6379_v58 = vpop.f32.mrb[171].mxu0 }
0x130e   :  { %v4444_v61 = vpop.f32.mrb[168].mxu1 }
0x130f   :  { %v5772_v10 = vpack.c.bf16 %v4444_v61, %v4398_v46  ;;  %v6384_v57 = vpop.f32.mrb[169].mxu1 }
0x1310   :  { %v4447_v34 = vpop.f32.mrb[170].mxu1 }
0x1311   :  { %v6385_v35 = vpop.f32.mrb[171].mxu1  ;;  %5340 = vmatprep.mubr.bf16.mxu1 %v5772_v10 }
0x1312   :  { %v4490_v12 = vpop.f32.mrb[172].mxu0  ;;  %5341 = vmatmul.mubr.bf16.vlgmr.msra.gmra.mrb[184].mxu1 %v5770_v29 }
0x1313   :  { %v6390_v7 = vpop.f32.mrb[173].mxu0 }
0x1314   :  { %v4493_v13 = vpop.f32.mrb[174].mxu0 }
0x1315   :  { %v6391_v38 = vpop.f32.mrb[175].mxu0 }
0x1316   :  { %v4536_v26 = vpop.f32.mrb[172].mxu1 }
0x1317   :  { %v5773_v56 = vpack.c.bf16 %v4536_v26, %v4490_v12  ;;  %v6396_v3 = vpop.f32.mrb[173].mxu1 }
0x1318   :  { %v4539_v50 = vpop.f32.mrb[174].mxu1 }
0x1319   :  { %v6397_v60 = vpop.f32.mrb[175].mxu1  ;;  %5348 = vmatprep.mubr.bf16.mxu1 %v5773_v56 }
0x131a   :  { %5349 = vmatmul.mubr.bf16.gmra.mrb[188].mxu1 %v5771_v11 }
0x1332   :  { %v5918_v16 = vpop.f32.mrb[176].mxu0 }
0x1333   :  { %v5919_v31 = vpop.f32.mrb[177].mxu0 }
0x1334   :  { %v5920_v19 = vadd.f32 %v5919_v31, %v5918_v16  ;;  %v5921_v33 = vpop.f32.mrb[178].mxu0 }
0x1335   :  { %v5922_v54 = vpop.f32.mrb[179].mxu0 }
0x1336   :  { %v5923_v29 = vadd.f32 %v5922_v54, %v5921_v33  ;;  %v5946_v36 = vpop.f32.mrb[176].mxu1  ;;  %v5196_v41 = vadd.f32 %v5920_v19, %v5597_v42 }
0x1337   :  { %v5947_v18 = vpop.f32.mrb[177].mxu1 }
0x1338   :  { %v5948_v21 = vadd.f32 %v5947_v18, %v5946_v36  ;;  %v5949_v5 = vpop.f32.mrb[178].mxu1  ;;  %v5199_v28 = vadd.f32 %v5923_v29, %v5597_v42 }
0x1339   :  { %v5950_v9 = vpop.f32.mrb[179].mxu1 }
0x133a   :  { %v5245_v32 = vadd.f32 %v5948_v21, %v5196_v41  ;;  %v5951_v39 = vadd.f32 %v5950_v9, %v5949_v5  ;;  %v5924_v45 = vpop.f32.mrb[180].mxu0 }
0x133b   :  { %v5925_v11 = vpop.f32.mrb[181].mxu0 }
0x133c   :  { %v5248_v14 = vadd.f32 %v5951_v39, %v5199_v28  ;;  %v5926_v17 = vadd.f32 %v5925_v11, %v5924_v45  ;;  %v5927_v30 = vpop.f32.mrb[182].mxu0 }
0x133d   :  { %v5928_v48 = vpop.f32.mrb[183].mxu0 }
0x133e   :  { %v5929_v44 = vadd.f32 %v5928_v48, %v5927_v30  ;;  %v5952_v37 = vpop.f32.mrb[180].mxu1  ;;  %v5204_v6 = vadd.f32 %v5926_v17, %v5597_v42 }
0x133f   :  { %v5953_v47 = vpop.f32.mrb[181].mxu1 }
0x1340   :  { %v5954_v1 = vadd.f32 %v5953_v47, %v5952_v37  ;;  %v5955_v20 = vpop.f32.mrb[182].mxu1  ;;  %v5207_v8 = vadd.f32 %v5929_v44, %v5597_v42 }
0x1341   :  { %v5956_v49 = vpop.f32.mrb[183].mxu1 }
0x1342   :  { %v5253_v53 = vadd.f32 %v5954_v1, %v5204_v6  ;;  %v5957_v63 = vadd.f32 %v5956_v49, %v5955_v20 }
0x1344   :  { %v5256_v52 = vadd.f32 %v5957_v63, %v5207_v8 }
0x1353   :  { %v5974_v62 = vpop.f32.mrb[184].mxu0 }
0x1354   :  { %v5975_v0 = vpop.f32.mrb[185].mxu0 }
0x1355   :  { %v5976_v15 = vadd.f32 %v5975_v0, %v5974_v62  ;;  %v5977_v2 = vpop.f32.mrb[186].mxu0 }
0x1356   :  { %v5978_v40 = vpop.f32.mrb[187].mxu0 }
0x1357   :  { %v5294_v24 = vadd.f32 %v5976_v15, %v5245_v32  ;;  %v5979_v22 = vadd.f32 %v5978_v40, %v5977_v2 }
0x1359   :  { %v5297_v4 = vadd.f32 %v5979_v22, %v5248_v14 }
0x135b   :  { %v5980_v43 = vpop.f32.mrb[188].mxu0 }
0x135c   :  { %v5981_v27 = vpop.f32.mrb[189].mxu0 }
0x135d   :  { %v5982_v23 = vadd.f32 %v5981_v27, %v5980_v43  ;;  %v5983_v51 = vpop.f32.mrb[190].mxu0 }
0x135e   :  { %v5984_v25 = vpop.f32.mrb[191].mxu0 }
0x135f   :  { %v5302_v46 = vadd.f32 %v5982_v23, %v5253_v53  ;;  %v5985_v59 = vadd.f32 %v5984_v25, %v5983_v51 }
0x1361   :  { %v5305_v55 = vadd.f32 %v5985_v59, %v5256_v52 }
0x13e5   :  { %v6002_v58 = vpop.f32.mrb[184].mxu1 }
0x13e6   :  { %v6003_v61 = vpop.f32.mrb[185].mxu1 }
0x13e7   :  { %v6004_v10 = vadd.f32 %v6003_v61, %v6002_v58  ;;  %v6005_v57 = vpop.f32.mrb[186].mxu1 }
0x13e8   :  { %v6006_v34 = vpop.f32.mrb[187].mxu1 }
0x13e9   :  { %v5343_v35 = vadd.f32 %v6004_v10, %v5294_v24  ;;  %v6007_v12 = vadd.f32 %v6006_v34, %v6005_v57 }
0x13eb   :  { %5357 = vst [vmem:[#allocation7] sm:$0xff] %v5343_v35  ;;  %v5346_v7 = vadd.f32 %v6007_v12, %v5297_v4 }
0x13ed   :  { %5358 = vst [vmem:[#allocation7 + $0x8] sm:$0xff] %v5346_v7  ;;  %v6008_v13 = vpop.f32.mrb[188].mxu1 }
0x13ee   :  { %v6009_v38 = vpop.f32.mrb[189].mxu1 }
0x13ef   :  { %v6010_v26 = vadd.f32 %v6009_v38, %v6008_v13  ;;  %v6011_v56 = vpop.f32.mrb[190].mxu1 }
0x13f0   :  { %v6012_v3 = vpop.f32.mrb[191].mxu1 }
0x13f1   :  { %v5351_v50 = vadd.f32 %v6010_v26, %v5302_v46  ;;  %v6013_v60 = vadd.f32 %v6012_v3, %v6011_v56 }
0x13f3   :  { %5359 = vst [vmem:[#allocation7 + $0x10] sm:$0xff] %v5351_v50  ;;  %v5354_v16 = vadd.f32 %v6013_v60, %v5305_v55 }
0x13f5   :  { %5360 = vst [vmem:[#allocation7 + $0x18] sm:$0xff] %v5354_v16 }
0x13f6   :  { %6659 = shalt.err (!%p6656_p6)
}
0x13f7   :  { %s6660_s24 = scalar_lea.hbm %s7606_s4, 512 }
0x13f8   :  { %p6661_p7 = scmp.ne.s32.totalorder %s7606_s4, %s6660_s24  ;;  %p6664_p8 = scmp.lt.u32.totalorder %s6660_s24, %s7606_s4 }
0x13fa   :  { %p6666_p9 = pnand %p6664_p8, %p6661_p7 }
0x13fc   :  { %6669 = shalt.err (!%p6666_p9)
}
0x13fd   :  { %s6686_s29 = smov 128   ;;  %s6687_s30 = smov 8  }
0x13fe   :  { %5372 = dma.vmem_to_hbm [thread:$0]  %s5367_s20, 512, %s7606_s4, [#allocation4], %s6686_s29, %s6686_s29, %s6687_s30  }
0x13ff   :  { %6674 = dma.done.wait [#allocation4], 512  }
0x1400   :  { %6675 = vsyncadd [#allocation4], 4294966784 }
0x1401   :  { %5376 = vsyncpa [#allocation3], 1 }
0x1402   :  { %5377 = vsyncpa [#allocation6], 1 }
0x1403   :  { %5378 = vsyncpa [#allocation4], 1 }

</bundles_post_ra>
